<compile_context>
chip_gen: v6e
topology: v6e:2x2x1
jax: 0.10.0
libtpu: 0.0.40
codegen_flags: <defaults>
</compile_context>

<pallas_src>
import functools

import jax
import jax.numpy as jnp
from jax import lax
from jax.experimental import pallas as pl
from jax.experimental.pallas import tpu as pltpu

LANE = 128


# ----------------------------------------------------------------------------
# Kernel 1: per (image, row-tile) conv GEMM (sum of KH*KW shifted GEMMs) plus
#           per-tile BN partial sums / sums-of-squares.
# ----------------------------------------------------------------------------
def _conv_stats_kernel(x_ref, w_ref, conv_ref, sum_ref, ssq_ref, *,
                       kh, kw, sw, dw, wout, tho, hout, hout_pad, cout_pad):
    rows = tho * wout
    acc = None
    for i in range(kh):                       # static loops: KH*KW small
        xk = x_ref[i]                         # (tho, Wp, Cin) bf16, row-shifted by i
        for j in range(kw):
            w0 = j * dw
            if sw == 1:
                a = xk[:, w0:w0 + wout, :]
            else:
                # W-direction stride handled with a strided dynamic slice.
                a = x_ref[i, :, pl.ds(w0, wout, sw), :]
            a = a.reshape(rows, a.shape[-1])
            part = jnp.dot(a, w_ref[i * kw + j],
                           preferred_element_type=jnp.float32)
            acc = part if acc is None else acc + part

    # bf16 intermediate (stats below are taken from the f32 accumulator).
    conv_ref[...] = acc.astype(conv_ref.dtype).reshape(1, rows, cout_pad)

    # BN partial statistics; mask rows of the (padded) last H tile if needed.
    if hout_pad != hout:
        r = lax.broadcasted_iota(jnp.int32, (rows, 1), 0)
        ho = pl.program_id(1) * tho + r // wout
        m = (ho < hout).astype(jnp.float32)
        acc_m = acc * m
    else:
        acc_m = acc
    sq_m = acc_m * acc
    if rows % 8 == 0:
        s8 = acc_m.reshape(rows // 8, 8, cout_pad).sum(axis=0)
        q8 = sq_m.reshape(rows // 8, 8, cout_pad).sum(axis=0)
    else:
        row0 = lax.broadcasted_iota(jnp.int32, (8, cout_pad), 0) == 0
        s8 = jnp.where(row0, acc_m.sum(axis=0, keepdims=True), 0.0)
        q8 = jnp.where(row0, sq_m.sum(axis=0, keepdims=True), 0.0)
    sum_ref[...] = s8.reshape(1, 1, 8, cout_pad)
    ssq_ref[...] = q8.reshape(1, 1, 8, cout_pad)


# ----------------------------------------------------------------------------
# Kernel 2: BN apply + NHWC->NCHW transpose fused; lane-dense (Cout, HW) write.
# ----------------------------------------------------------------------------
def _bn_nchw_kernel(conv_ref, scale_ref, shift_ref, out_ref, *, cout):
    x = conv_ref[0].astype(jnp.float32)           # (tm2, Cout_pad)
    y = x * scale_ref[...] + shift_ref[...]       # (1, Cout_pad) broadcasts
    yt = y.T                                      # 2-D transpose on the XLU
    out_ref[...] = yt[:cout, :].reshape(1, cout, -1)


# ----------------------------------------------------------------------------
# Helpers.
# ----------------------------------------------------------------------------
def _as_pair(v):
    if isinstance(v, (tuple, list)):
        return int(v[0]), int(v[1])
    return int(v), int(v)


def _pick_tho(hout, wout, wp, cin, cout_pad, n_kh, budget=8 << 20):
    """Rows-of-output tile height, sized from a VMEM budget (target ~512 rows)."""
    tho = max(1, min(hout, max(1, 512 // max(wout, 1))))

    def need(t):
        rows = t * wout
        return (n_kh * t * wp * cin * 2          # bf16 input block
                + rows * cout_pad * 2            # bf16 conv output block
                + rows * cout_pad * 4)           # f32 accumulator value

    while tho > 1 and need(tho) > budget:
        tho -= 1
    t = tho                                      # prefer rows % 8 == 0
    while t > 1 and (t * wout) % 8:
        t -= 1
    if (t * wout) % 8 == 0:
        tho = t
    return tho


def _pick_tm2(hw, cout_pad, budget=8 << 20):
    """Epilogue tile: largest 128-multiple divisor of HW within budget."""
    best = None
    t = LANE
    while t <= min(hw, 2048):
        if hw % t == 0 and t * cout_pad * 8 <= budget:
            best = t
        t += LANE
    return best if best is not None else hw


def _vmem_limit(block_bytes):
    need = 2 * block_bytes + (8 << 20)
    return int(min(max(need, 32 << 20), 64 << 20))


# ----------------------------------------------------------------------------
# Forward: BatchNorm2d(Conv2d(x))  (training-mode batch stats, no bias).
# ----------------------------------------------------------------------------
def conv_bn2d_forward(x, weight, gamma, beta, *, stride=(1, 1), padding=(1, 1),
                      dilation=(1, 1), groups=1, eps=1e-5):
    if groups != 1:
        # TODO(synk): grouped convolution not implemented in the fused Pallas path.
        raise NotImplementedError("groups != 1 not supported")

    n, cin, h, w = x.shape
    cout, cin_w, kh, kw = weight.shape
    assert cin_w == cin
    sh, sw = _as_pair(stride)
    ph, pw = _as_pair(padding)
    dh, dw = _as_pair(dilation)

    hout = (h + 2 * ph - dh * (kh - 1) - 1) // sh + 1
    wout = (w + 2 * pw - dw * (kw - 1) - 1) // sw + 1
    wp = w + 2 * pw
    cout_pad = ((cout + LANE - 1) // LANE) * LANE

    tho = _pick_tho(hout, wout, wp, cin, cout_pad, kh)
    t_tiles = -(-hout // tho)
    hout_pad = t_tiles * tho
    rows = tho * wout

    # -------- NCHW -> padded NHWC (bf16), KH row-shifted stack (no im2col) --------
    xt = jnp.transpose(x, (0, 2, 3, 1)).astype(jnp.bfloat16)        # (N,H,W,Cin)
    hp_need = (hout_pad - 1) * sh + (kh - 1) * dh + 1
    extra = max(0, hp_need - (h + 2 * ph))
    xp = jnp.pad(xt, ((0, 0), (ph, ph + extra), (pw, pw), (0, 0)))
    xrows = jnp.stack(
        [xp[:, i * dh: i * dh + (hout_pad - 1) * sh + 1: sh, :, :]
         for i in range(kh)], axis=1)                               # (N,KH,Hout_pad,Wp,Cin)
    xrows = xrows.reshape(n * kh, hout_pad, wp, cin)

    # -------- weight -> (KH*KW, Cin, Cout_pad) bf16 (resident in VMEM) --------
    w_mat = jnp.transpose(weight, (2, 3, 1, 0)).reshape(kh * kw, cin, cout)
    w_mat = jnp.pad(w_mat, ((0, 0), (0, 0), (0, cout_pad - cout))).astype(jnp.bfloat16)

    kern1 = functools.partial(
        _conv_stats_kernel, kh=kh, kw=kw, sw=sw, dw=dw, wout=wout, tho=tho,
        hout=hout, hout_pad=hout_pad, cout_pad=cout_pad)

    blk1_bytes = (kh * tho * wp * cin * 2 + kh * kw * cin * cout_pad * 2
                  + rows * cout_pad * 2 + 2 * 8 * cout_pad * 4
                  + rows * cout_pad * 4)

    # -------- Pass 1: conv GEMMs + per-tile BN partial stats --------
    conv_out, psum, pssq = pl.pallas_call(
        kern1,
        out_shape=(
            jax.ShapeDtypeStruct((n, hout_pad * wout, cout_pad), jnp.bfloat16),
            jax.ShapeDtypeStruct((n, t_tiles, 8, cout_pad), jnp.float32),
            jax.ShapeDtypeStruct((n, t_tiles, 8, cout_pad), jnp.float32),
        ),
        grid_spec=pltpu.PrefetchScalarGridSpec(
            num_scalar_prefetch=0,
            grid=(n, t_tiles),
            in_specs=[
                pl.BlockSpec((kh, tho, wp, cin), lambda ni, ti: (ni, ti, 0, 0)),
                pl.BlockSpec((kh * kw, cin, cout_pad), lambda ni, ti: (0, 0, 0)),
            ],
            out_specs=[
                pl.BlockSpec((1, rows, cout_pad), lambda ni, ti: (ni, ti, 0)),
                pl.BlockSpec((1, 1, 8, cout_pad), lambda ni, ti: (ni, ti, 0, 0)),
                pl.BlockSpec((1, 1, 8, cout_pad), lambda ni, ti: (ni, ti, 0, 0)),
            ],
        ),
        compiler_params=pltpu.CompilerParams(
            dimension_semantics=("parallel", "parallel"),
            vmem_limit_bytes=_vmem_limit(blk1_bytes)),
    )(xrows, w_mat)

    # -------- BN scalar math on (Cout_pad,) vectors (f32 partials) --------
    count = jnp.float32(n * hout * wout)
    ch_sum = jnp.sum(psum, axis=(0, 1, 2))
    ch_ssq = jnp.sum(pssq, axis=(0, 1, 2))
    mean = ch_sum / count
    var = jnp.maximum(ch_ssq / count - mean * mean, 0.0)   # biased (PyTorch BN)
    inv_std = lax.rsqrt(var + eps)
    g = jnp.pad(gamma.astype(jnp.float32), (0, cout_pad - cout))
    b = jnp.pad(beta.astype(jnp.float32), (0, cout_pad - cout))
    scale = (g * inv_std).reshape(1, cout_pad)
    shift = (b - mean * g * inv_std).reshape(1, cout_pad)

    # -------- Pass 2: BN apply + transpose fused, lane-dense NCHW writes --------
    hw_pad = hout_pad * wout
    tm2 = _pick_tm2(hw_pad, cout_pad)
    t2 = hw_pad // tm2
    kern2 = functools.partial(_bn_nchw_kernel, cout=cout)
    blk2_bytes = tm2 * cout_pad * 2 + 2 * cout_pad * 4 + cout * tm2 * 4

    y = pl.pallas_call(
        kern2,
        out_shape=jax.ShapeDtypeStruct((n, cout, hw_pad), jnp.float32),
        grid_spec=pltpu.PrefetchScalarGridSpec(
            num_scalar_prefetch=0,
            grid=(n, t2),
            in_specs=[
                pl.BlockSpec((1, tm2, cout_pad), lambda ni, ti: (ni, ti, 0)),
                pl.BlockSpec((1, cout_pad), lambda ni, ti: (0, 0)),
                pl.BlockSpec((1, cout_pad), lambda ni, ti: (0, 0)),
            ],
            out_specs=pl.BlockSpec((1, cout, tm2), lambda ni, ti: (ni, 0, ti)),
        ),
        compiler_params=pltpu.CompilerParams(
            dimension_semantics=("parallel", "parallel"),
            vmem_limit_bytes=_vmem_limit(blk2_bytes)),
    )(conv_out, scale, shift)

    # (N, Cout, Hout_pad*Wout) -> (N, Cout, Hout, Wout); free when no padding.
    return y[:, :, :hout * wout].reshape(n, cout, hout, wout)


# ----------------------------------------------------------------------------
# Pure-JAX reference for sanity checking.
# ----------------------------------------------------------------------------
def _reference(x, weight, gamma, beta, *, stride, padding, dilation, eps=1e-5):
    sh, sw = _as_pair(stride)
    ph, pw = _as_pair(padding)
    dh, dw = _as_pair(dilation)
    conv = lax.conv_general_dilated(
        x.astype(jnp.float32), weight.astype(jnp.float32),
        window_strides=(sh, sw), padding=[(ph, ph), (pw, pw)],
        rhs_dilation=(dh, dw), dimension_numbers=("NCHW", "OIHW", "NCHW"))
    mean = conv.mean(axis=(0, 2, 3), keepdims=True)
    var = conv.var(axis=(0, 2, 3), keepdims=True)           # biased
    xn = (conv - mean) * lax.rsqrt(var + eps)
    return xn * gamma.reshape(1, -1, 1, 1) + beta.reshape(1, -1, 1, 1)


if __name__ == "__main__":
    # ConvBn2d(in_channels=4, out_channels=8, kernel_size=(3,3), stride=(1,1), padding=(1,1))
    N, CIN, H, W = 2, 4, 16, 16
    COUT, KH, KW = 8, 3, 3
    STRIDE, PAD, DIL = (1, 1), (1, 1), (1, 1)

    key = jax.random.PRNGKey(0)
    kx, kw_, kg, kb = jax.random.split(key, 4)
    x = jax.random.normal(kx, (N, CIN, H, W), dtype=jnp.float32)
    weight = 0.1 * jax.random.normal(kw_, (COUT, CIN, KH, KW), dtype=jnp.float32)
    gamma = 1.0 + 0.1 * jax.random.normal(kg, (COUT,), dtype=jnp.float32)
    beta = 0.1 * jax.random.normal(kb, (COUT,), dtype=jnp.float32)

    fwd = jax.jit(functools.partial(
        conv_bn2d_forward, stride=STRIDE, padding=PAD, dilation=DIL))
    out = jax.block_until_ready(fwd(x, weight, gamma, beta))

    # Reference computed on the same bf16-rounded operands: feeding the MXU in
    # bf16 (with f32 accumulation) is an intentional, review-requested change.
    x_r = x.astype(jnp.bfloat16).astype(jnp.float32)
    w_r = weight.astype(jnp.bfloat16).astype(jnp.float32)
    ref = _reference(x_r, w_r, gamma, beta, stride=STRIDE, padding=PAD,
                     dilation=DIL)

    assert out.shape == (N, COUT, H, W), out.shape
    err = float(jnp.max(jnp.abs(out - ref)))
    assert err < 3e-2, err
    print("KERNEL_OK")
</pallas_src>

<mosaic_0001>
module attributes {stable_mosaic.version = 11 : i64} {
  func.func @_bn_nchw_kernel(%arg0: i32, %arg1: i32, %arg2: memref<1x256x128xbf16, #tpu.memory_space<vmem>>, %arg3: memref<1x128xf32, #tpu.memory_space<vmem>>, %arg4: memref<1x128xf32, #tpu.memory_space<vmem>>, %arg5: memref<1x8x256xf32, #tpu.memory_space<vmem>>) attributes {dimension_semantics = [#tpu.dimension_semantics<parallel>, #tpu.dimension_semantics<parallel>], iteration_bounds = array<i64: 2, 1>, scalar_prefetch = 0 : i64, scratch_operands = 0 : i64, tpu.core_type = #tpu.core_type<tc>, window_params = [{transform_indices = @transform_0, window_bounds = array<i64: 1, 256, 128>}, {pipeline_mode = #tpu.pipeline_mode<synchronous>, transform_indices = @transform_1, window_bounds = array<i64: 1, 128>}, {pipeline_mode = #tpu.pipeline_mode<synchronous>, transform_indices = @transform_2, window_bounds = array<i64: 1, 128>}, {transform_indices = @transform_3, window_bounds = array<i64: 1, 8, 256>}]} {
    %c0 = arith.constant 0 : index
    %c0_0 = arith.constant 0 : index
    %c0_1 = arith.constant 0 : index
    %0 = vector.load %arg2[%c0, %c0_0, %c0_1] : memref<1x256x128xbf16, #tpu.memory_space<vmem>>, vector<1x256x128xbf16>
    %1 = vector.shape_cast %0 : vector<1x256x128xbf16> to vector<256x128xbf16>
    %2 = arith.extf %1 : vector<256x128xbf16> to vector<256x128xf32>
    %c0_2 = arith.constant 0 : index
    %c0_3 = arith.constant 0 : index
    %3 = vector.load %arg3[%c0_2, %c0_3] : memref<1x128xf32, #tpu.memory_space<vmem>>, vector<1x128xf32>
    %4 = vector.broadcast %3 : vector<1x128xf32> to vector<256x128xf32>
    %5 = arith.mulf %2, %4 : vector<256x128xf32>
    %c0_4 = arith.constant 0 : index
    %c0_5 = arith.constant 0 : index
    %6 = vector.load %arg4[%c0_4, %c0_5] : memref<1x128xf32, #tpu.memory_space<vmem>>, vector<1x128xf32>
    %7 = vector.broadcast %6 : vector<1x128xf32> to vector<256x128xf32>
    %8 = arith.addf %5, %7 : vector<256x128xf32>
    %9 = tpu.transpose %8, [1, 0] : vector<256x128xf32> -> vector<128x256xf32>
    %10 = vector.extract_strided_slice %9 {offsets = [0, 0], sizes = [8, 256], strides = [1, 1]} : vector<128x256xf32> to vector<8x256xf32>
    %11 = vector.shape_cast %10 : vector<8x256xf32> to vector<1x8x256xf32>
    %c0_6 = arith.constant 0 : index
    %c0_7 = arith.constant 0 : index
    %c0_8 = arith.constant 0 : index
    %12 = vector.load %arg5[%c0_6, %c0_7, %c0_8] : memref<1x8x256xf32, #tpu.memory_space<vmem>>, vector<1x8x256xf32>
    tpu.vector_store %arg5[%c0_6, %c0_7, %c0_8], %11 {strides = array<i32>} : memref<1x8x256xf32, #tpu.memory_space<vmem>>, vector<1x8x256xf32>,
    return
  }
  func.func @transform_0(%arg0: i32, %arg1: i32) -> (i32, i32, i32) {
    %c0_i32 = arith.constant 0 : i32
    %c0_i32_0 = arith.constant 0 : i32
    return %arg0, %arg1, %c0_i32 : i32, i32, i32
  }
  func.func @transform_1(%arg0: i32, %arg1: i32) -> (i32, i32) {
    %c0_i32 = arith.constant 0 : i32
    %c0_i32_0 = arith.constant 0 : i32
    %c0_i32_1 = arith.constant 0 : i32
    return %c0_i32, %c0_i32_0 : i32, i32
  }
  func.func @transform_2(%arg0: i32, %arg1: i32) -> (i32, i32) {
    %c0_i32 = arith.constant 0 : i32
    %c0_i32_0 = arith.constant 0 : i32
    %c0_i32_1 = arith.constant 0 : i32
    return %c0_i32, %c0_i32_0 : i32, i32
  }
  func.func @transform_3(%arg0: i32, %arg1: i32) -> (i32, i32, i32) {
    %c0_i32 = arith.constant 0 : i32
    %c0_i32_0 = arith.constant 0 : i32
    return %arg0, %c0_i32, %arg1 : i32, i32, i32
  }
}

module attributes {stable_mosaic.version = 11 : i64} {
  func.func @_conv_stats_kernel(%arg0: i32, %arg1: i32, %arg2: memref<3x16x18x4xbf16, #tpu.memory_space<vmem>>, %arg3: memref<9x4x128xbf16, #tpu.memory_space<vmem>>, %arg4: memref<1x256x128xbf16, #tpu.memory_space<vmem>>, %arg5: memref<1x1x8x128xf32, #tpu.memory_space<vmem>>, %arg6: memref<1x1x8x128xf32, #tpu.memory_space<vmem>>) attributes {dimension_semantics = [#tpu.dimension_semantics<parallel>, #tpu.dimension_semantics<parallel>], iteration_bounds = array<i64: 2, 1>, scalar_prefetch = 0 : i64, scratch_operands = 0 : i64, tpu.core_type = #tpu.core_type<tc>, window_params = [{transform_indices = @transform_0, window_bounds = array<i64: 3, 16, 18, 4>}, {pipeline_mode = #tpu.pipeline_mode<synchronous>, transform_indices = @transform_1, window_bounds = array<i64: 9, 4, 128>}, {transform_indices = @transform_2, window_bounds = array<i64: 1, 256, 128>}, {transform_indices = @transform_3, window_bounds = array<i64: 1, 1, 8, 128>}, {transform_indices = @transform_4, window_bounds = array<i64: 1, 1, 8, 128>}]} {
    %c0 = arith.constant 0 : index
    %c0_0 = arith.constant 0 : index
    %c0_1 = arith.constant 0 : index
    %c0_2 = arith.constant 0 : index
    %0 = vector.load %arg2[%c0, %c0_0, %c0_1, %c0_2] : memref<3x16x18x4xbf16, #tpu.memory_space<vmem>>, vector<1x16x18x4xbf16>
    %1 = vector.shape_cast %0 : vector<1x16x18x4xbf16> to vector<16x18x4xbf16>
    %2 = vector.extract_strided_slice %1 {offsets = [0, 0, 0], sizes = [16, 16, 4], strides = [1, 1, 1]} : vector<16x18x4xbf16> to vector<16x16x4xbf16>
    %3 = vector.shape_cast %2 : vector<16x16x4xbf16> to vector<256x4xbf16>
    %c0_3 = arith.constant 0 : index
    %c0_4 = arith.constant 0 : index
    %c0_5 = arith.constant 0 : index
    %4 = vector.load %arg3[%c0_3, %c0_4, %c0_5] : memref<9x4x128xbf16, #tpu.memory_space<vmem>>, vector<1x4x128xbf16>
    %5 = vector.shape_cast %4 : vector<1x4x128xbf16> to vector<4x128xbf16>
    %cst = arith.constant dense<0.000000e+00> : vector<256x128xf32>
    %6 = tpu.matmul %3, %5, %cst {dimension_numbers = #tpu.dot_dimension_numbers<[1], [0], [0], [1], [0, 0, 1, 1], [], []>} : vector<256x4xbf16>, vector<4x128xbf16>, vector<256x128xf32> -> vector<256x128xf32>
    %7 = vector.extract_strided_slice %1 {offsets = [0, 1, 0], sizes = [16, 16, 4], strides = [1, 1, 1]} : vector<16x18x4xbf16> to vector<16x16x4xbf16>
    %8 = vector.shape_cast %7 : vector<16x16x4xbf16> to vector<256x4xbf16>
    %c1 = arith.constant 1 : index
    %c0_6 = arith.constant 0 : index
    %c0_7 = arith.constant 0 : index
    %9 = vector.load %arg3[%c1, %c0_6, %c0_7] : memref<9x4x128xbf16, #tpu.memory_space<vmem>>, vector<1x4x128xbf16>
    %10 = vector.shape_cast %9 : vector<1x4x128xbf16> to vector<4x128xbf16>
    %cst_8 = arith.constant dense<0.000000e+00> : vector<256x128xf32>
    %11 = tpu.matmul %8, %10, %cst_8 {dimension_numbers = #tpu.dot_dimension_numbers<[1], [0], [0], [1], [0, 0, 1, 1], [], []>} : vector<256x4xbf16>, vector<4x128xbf16>, vector<256x128xf32> -> vector<256x128xf32>
    %12 = arith.addf %6, %11 : vector<256x128xf32>
    %13 = vector.extract_strided_slice %1 {offsets = [0, 2, 0], sizes = [16, 16, 4], strides = [1, 1, 1]} : vector<16x18x4xbf16> to vector<16x16x4xbf16>
    %14 = vector.shape_cast %13 : vector<16x16x4xbf16> to vector<256x4xbf16>
    %c2 = arith.constant 2 : index
    %c0_9 = arith.constant 0 : index
    %c0_10 = arith.constant 0 : index
    %15 = vector.load %arg3[%c2, %c0_9, %c0_10] : memref<9x4x128xbf16, #tpu.memory_space<vmem>>, vector<1x4x128xbf16>
    %16 = vector.shape_cast %15 : vector<1x4x128xbf16> to vector<4x128xbf16>
    %cst_11 = arith.constant dense<0.000000e+00> : vector<256x128xf32>
    %17 = tpu.matmul %14, %16, %cst_11 {dimension_numbers = #tpu.dot_dimension_numbers<[1], [0], [0], [1], [0, 0, 1, 1], [], []>} : vector<256x4xbf16>, vector<4x128xbf16>, vector<256x128xf32> -> vector<256x128xf32>
    %18 = arith.addf %12, %17 : vector<256x128xf32>
    %c1_12 = arith.constant 1 : index
    %c0_13 = arith.constant 0 : index
    %c0_14 = arith.constant 0 : index
    %c0_15 = arith.constant 0 : index
    %19 = vector.load %arg2[%c1_12, %c0_13, %c0_14, %c0_15] : memref<3x16x18x4xbf16, #tpu.memory_space<vmem>>, vector<1x16x18x4xbf16>
    %20 = vector.shape_cast %19 : vector<1x16x18x4xbf16> to vector<16x18x4xbf16>
    %21 = vector.extract_strided_slice %20 {offsets = [0, 0, 0], sizes = [16, 16, 4], strides = [1, 1, 1]} : vector<16x18x4xbf16> to vector<16x16x4xbf16>
    %22 = vector.shape_cast %21 : vector<16x16x4xbf16> to vector<256x4xbf16>
    %c3 = arith.constant 3 : index
    %c0_16 = arith.constant 0 : index
    %c0_17 = arith.constant 0 : index
    %23 = vector.load %arg3[%c3, %c0_16, %c0_17] : memref<9x4x128xbf16, #tpu.memory_space<vmem>>, vector<1x4x128xbf16>
    %24 = vector.shape_cast %23 : vector<1x4x128xbf16> to vector<4x128xbf16>
    %cst_18 = arith.constant dense<0.000000e+00> : vector<256x128xf32>
    %25 = tpu.matmul %22, %24, %cst_18 {dimension_numbers = #tpu.dot_dimension_numbers<[1], [0], [0], [1], [0, 0, 1, 1], [], []>} : vector<256x4xbf16>, vector<4x128xbf16>, vector<256x128xf32> -> vector<256x128xf32>
    %26 = arith.addf %18, %25 : vector<256x128xf32>
    %27 = vector.extract_strided_slice %20 {offsets = [0, 1, 0], sizes = [16, 16, 4], strides = [1, 1, 1]} : vector<16x18x4xbf16> to vector<16x16x4xbf16>
    %28 = vector.shape_cast %27 : vector<16x16x4xbf16> to vector<256x4xbf16>
    %c4 = arith.constant 4 : index
    %c0_19 = arith.constant 0 : index
    %c0_20 = arith.constant 0 : index
    %29 = vector.load %arg3[%c4, %c0_19, %c0_20] : memref<9x4x128xbf16, #tpu.memory_space<vmem>>, vector<1x4x128xbf16>
    %30 = vector.shape_cast %29 : vector<1x4x128xbf16> to vector<4x128xbf16>
    %cst_21 = arith.constant dense<0.000000e+00> : vector<256x128xf32>
    %31 = tpu.matmul %28, %30, %cst_21 {dimension_numbers = #tpu.dot_dimension_numbers<[1], [0], [0], [1], [0, 0, 1, 1], [], []>} : vector<256x4xbf16>, vector<4x128xbf16>, vector<256x128xf32> -> vector<256x128xf32>
    %32 = arith.addf %26, %31 : vector<256x128xf32>
    %33 = vector.extract_strided_slice %20 {offsets = [0, 2, 0], sizes = [16, 16, 4], strides = [1, 1, 1]} : vector<16x18x4xbf16> to vector<16x16x4xbf16>
    %34 = vector.shape_cast %33 : vector<16x16x4xbf16> to vector<256x4xbf16>
    %c5 = arith.constant 5 : index
    %c0_22 = arith.constant 0 : index
    %c0_23 = arith.constant 0 : index
    %35 = vector.load %arg3[%c5, %c0_22, %c0_23] : memref<9x4x128xbf16, #tpu.memory_space<vmem>>, vector<1x4x128xbf16>
    %36 = vector.shape_cast %35 : vector<1x4x128xbf16> to vector<4x128xbf16>
    %cst_24 = arith.constant dense<0.000000e+00> : vector<256x128xf32>
    %37 = tpu.matmul %34, %36, %cst_24 {dimension_numbers = #tpu.dot_dimension_numbers<[1], [0], [0], [1], [0, 0, 1, 1], [], []>} : vector<256x4xbf16>, vector<4x128xbf16>, vector<256x128xf32> -> vector<256x128xf32>
    %38 = arith.addf %32, %37 : vector<256x128xf32>
    %c2_25 = arith.constant 2 : index
    %c0_26 = arith.constant 0 : index
    %c0_27 = arith.constant 0 : index
    %c0_28 = arith.constant 0 : index
    %39 = vector.load %arg2[%c2_25, %c0_26, %c0_27, %c0_28] : memref<3x16x18x4xbf16, #tpu.memory_space<vmem>>, vector<1x16x18x4xbf16>
    %40 = vector.shape_cast %39 : vector<1x16x18x4xbf16> to vector<16x18x4xbf16>
    %41 = vector.extract_strided_slice %40 {offsets = [0, 0, 0], sizes = [16, 16, 4], strides = [1, 1, 1]} : vector<16x18x4xbf16> to vector<16x16x4xbf16>
    %42 = vector.shape_cast %41 : vector<16x16x4xbf16> to vector<256x4xbf16>
    %c6 = arith.constant 6 : index
    %c0_29 = arith.constant 0 : index
    %c0_30 = arith.constant 0 : index
    %43 = vector.load %arg3[%c6, %c0_29, %c0_30] : memref<9x4x128xbf16, #tpu.memory_space<vmem>>, vector<1x4x128xbf16>
    %44 = vector.shape_cast %43 : vector<1x4x128xbf16> to vector<4x128xbf16>
    %cst_31 = arith.constant dense<0.000000e+00> : vector<256x128xf32>
    %45 = tpu.matmul %42, %44, %cst_31 {dimension_numbers = #tpu.dot_dimension_numbers<[1], [0], [0], [1], [0, 0, 1, 1], [], []>} : vector<256x4xbf16>, vector<4x128xbf16>, vector<256x128xf32> -> vector<256x128xf32>
    %46 = arith.addf %38, %45 : vector<256x128xf32>
    %47 = vector.extract_strided_slice %40 {offsets = [0, 1, 0], sizes = [16, 16, 4], strides = [1, 1, 1]} : vector<16x18x4xbf16> to vector<16x16x4xbf16>
    %48 = vector.shape_cast %47 : vector<16x16x4xbf16> to vector<256x4xbf16>
    %c7 = arith.constant 7 : index
    %c0_32 = arith.constant 0 : index
    %c0_33 = arith.constant 0 : index
    %49 = vector.load %arg3[%c7, %c0_32, %c0_33] : memref<9x4x128xbf16, #tpu.memory_space<vmem>>, vector<1x4x128xbf16>
    %50 = vector.shape_cast %49 : vector<1x4x128xbf16> to vector<4x128xbf16>
    %cst_34 = arith.constant dense<0.000000e+00> : vector<256x128xf32>
    %51 = tpu.matmul %48, %50, %cst_34 {dimension_numbers = #tpu.dot_dimension_numbers<[1], [0], [0], [1], [0, 0, 1, 1], [], []>} : vector<256x4xbf16>, vector<4x128xbf16>, vector<256x128xf32> -> vector<256x128xf32>
    %52 = arith.addf %46, %51 : vector<256x128xf32>
    %53 = vector.extract_strided_slice %40 {offsets = [0, 2, 0], sizes = [16, 16, 4], strides = [1, 1, 1]} : vector<16x18x4xbf16> to vector<16x16x4xbf16>
    %54 = vector.shape_cast %53 : vector<16x16x4xbf16> to vector<256x4xbf16>
    %c8 = arith.constant 8 : index
    %c0_35 = arith.constant 0 : index
    %c0_36 = arith.constant 0 : index
    %55 = vector.load %arg3[%c8, %c0_35, %c0_36] : memref<9x4x128xbf16, #tpu.memory_space<vmem>>, vector<1x4x128xbf16>
    %56 = vector.shape_cast %55 : vector<1x4x128xbf16> to vector<4x128xbf16>
    %cst_37 = arith.constant dense<0.000000e+00> : vector<256x128xf32>
    %57 = tpu.matmul %54, %56, %cst_37 {dimension_numbers = #tpu.dot_dimension_numbers<[1], [0], [0], [1], [0, 0, 1, 1], [], []>} : vector<256x4xbf16>, vector<4x128xbf16>, vector<256x128xf32> -> vector<256x128xf32>
    %58 = arith.addf %52, %57 : vector<256x128xf32>
    %59 = arith.truncf %58 : vector<256x128xf32> to vector<256x128xbf16>
    %60 = vector.shape_cast %59 : vector<256x128xbf16> to vector<1x256x128xbf16>
    %c0_38 = arith.constant 0 : index
    %c0_39 = arith.constant 0 : index
    %c0_40 = arith.constant 0 : index
    %61 = vector.load %arg4[%c0_38, %c0_39, %c0_40] : memref<1x256x128xbf16, #tpu.memory_space<vmem>>, vector<1x256x128xbf16>
    tpu.vector_store %arg4[%c0_38, %c0_39, %c0_40], %60 {strides = array<i32>} : memref<1x256x128xbf16, #tpu.memory_space<vmem>>, vector<1x256x128xbf16>,
    %62 = arith.mulf %58, %58 : vector<256x128xf32>
    %63 = vector.shape_cast %58 : vector<256x128xf32> to vector<32x8x128xf32>
    %cst_41 = arith.constant dense<0.000000e+00> : vector<8x128xf32>
    %64 = vector.multi_reduction <add>, %63, %cst_41 [0] : vector<32x8x128xf32> to vector<8x128xf32>
    %65 = vector.shape_cast %62 : vector<256x128xf32> to vector<32x8x128xf32>
    %cst_42 = arith.constant dense<0.000000e+00> : vector<8x128xf32>
    %66 = vector.multi_reduction <add>, %65, %cst_42 [0] : vector<32x8x128xf32> to vector<8x128xf32>
    %67 = vector.shape_cast %64 : vector<8x128xf32> to vector<1x1x8x128xf32>
    %c0_43 = arith.constant 0 : index
    %c0_44 = arith.constant 0 : index
    %c0_45 = arith.constant 0 : index
    %c0_46 = arith.constant 0 : index
    %68 = vector.load %arg5[%c0_43, %c0_44, %c0_45, %c0_46] : memref<1x1x8x128xf32, #tpu.memory_space<vmem>>, vector<1x1x8x128xf32>
    tpu.vector_store %arg5[%c0_43, %c0_44, %c0_45, %c0_46], %67 {strides = array<i32>} : memref<1x1x8x128xf32, #tpu.memory_space<vmem>>, vector<1x1x8x128xf32>,
    %69 = vector.shape_cast %66 : vector<8x128xf32> to vector<1x1x8x128xf32>
    %c0_47 = arith.constant 0 : index
    %c0_48 = arith.constant 0 : index
    %c0_49 = arith.constant 0 : index
    %c0_50 = arith.constant 0 : index
    %70 = vector.load %arg6[%c0_47, %c0_48, %c0_49, %c0_50] : memref<1x1x8x128xf32, #tpu.memory_space<vmem>>, vector<1x1x8x128xf32>
    tpu.vector_store %arg6[%c0_47, %c0_48, %c0_49, %c0_50], %69 {strides = array<i32>} : memref<1x1x8x128xf32, #tpu.memory_space<vmem>>, vector<1x1x8x128xf32>,
    return
  }
  func.func @transform_0(%arg0: i32, %arg1: i32) -> (i32, i32, i32, i32) {
    %c0_i32 = arith.constant 0 : i32
    %c0_i32_0 = arith.constant 0 : i32
    %c0_i32_1 = arith.constant 0 : i32
    return %arg0, %arg1, %c0_i32, %c0_i32_0 : i32, i32, i32, i32
  }
  func.func @transform_1(%arg0: i32, %arg1: i32) -> (i32, i32, i32) {
    %c0_i32 = arith.constant 0 : i32
    %c0_i32_0 = arith.constant 0 : i32
    %c0_i32_1 = arith.constant 0 : i32
    %c0_i32_2 = arith.constant 0 : i32
    return %c0_i32, %c0_i32_0, %c0_i32_1 : i32, i32, i32
  }
  func.func @transform_2(%arg0: i32, %arg1: i32) -> (i32, i32, i32) {
    %c0_i32 = arith.constant 0 : i32
    %c0_i32_0 = arith.constant 0 : i32
    return %arg0, %arg1, %c0_i32 : i32, i32, i32
  }
  func.func @transform_3(%arg0: i32, %arg1: i32) -> (i32, i32, i32, i32) {
    %c0_i32 = arith.constant 0 : i32
    %c0_i32_0 = arith.constant 0 : i32
    %c0_i32_1 = arith.constant 0 : i32
    return %arg0, %arg1, %c0_i32, %c0_i32_0 : i32, i32, i32, i32
  }
  func.func @transform_4(%arg0: i32, %arg1: i32) -> (i32, i32, i32, i32) {
    %c0_i32 = arith.constant 0 : i32
    %c0_i32_0 = arith.constant 0 : i32
    %c0_i32_1 = arith.constant 0 : i32
    return %arg0, %arg1, %c0_i32, %c0_i32_0 : i32, i32, i32, i32
  }
}

</mosaic_0001>

<bundles_post_ra>
// kernel: conv_bn2d_forward.3
= control target key start
LH: loop header
LB: loop body
LE: loop exit
PB: predicated region body
PF: predicated region fallthrough
CT: control target
= control target key end

     0   :  { %s667_s12 = smov 0   ;;  %s669_s13 = smov 0   ;;  %s796_s0 = inlined_call_operand.vmem [shape: bf16[2,256,128], index: 0, kind: input, shape index: {}]   ;;  %s797_s1 = inlined_call_operand.vmem [shape: f32[1,128], index: 1, kind: input, shape index: {}]   ;;  %s798_s2 = inlined_call_operand.vmem [shape: f32[1,128], index: 2, kind: input, shape index: {}]   ;;  %s799_s3 = inlined_call_operand.vmem [shape: f32[2,8,256], index: 3, kind: output, shape index: {}]  }
   0x1   :  { %s671_s14 = smov 0  }
   0x2 LB: > { %s25_s15 = sadd.s32 1, %s641_s13  ;;  %p509_p0 = scmp.ge.s32.totalorder %s645_s14, 1  ;;  %s645_s14 = sphi %s671_s14, %s13_s14   ;;  %s641_s13 = sphi %s669_s13, %s801_s13   ;;  %s637_s12 = sphi %s667_s12, %s800_s12  }
   0x3   : > { %p27_p1 = scmp.ge.s32.totalorder %s25_s15, 2  ;;  %p158_p2 = scmp.lt.s32.totalorder %s645_s14, 3 }
   0x5   : > { %s803_s15 = smov (%p27_p1, %s25_s15), 0  ;;  %p159_p3 = pnand %p509_p0, %p158_p2 }
   0x6   : > { %p191_p4 = scmp.lt.s32.totalorder (!%p159_p3), %s637_s12, 1 }
   0x7   : > { %162 = sbr.rel (%p159_p3) target bundleno = 149 (0x95), region = 32 }
   0xc   : > { %s805_s12 = smov (!%p191_p4, %s637_s12), 1  ;;  %v696_v0 = vld [vmem:[%s797_s1] ss:$0 sm:$0xff] }
   0xd   : > { %s518_s16 = sshll.u32 %s805_s12, 7  ;;  %v705_v9 = vld [vmem:[%s798_s2] ss:$0 sm:$0xff]  ;;  %s519_s24 = sshll.u32 %s805_s12, 4 }
   0xe   : > { %s691_s19 = scalar_lea.vmem %s796_s0, %s518_s16  ;;  %s208_s27 = scalar_lea.vmem %s799_s3, %s519_s24 }
   0xf   : > { %v591_v1 = vld [vmem:[%s691_s19 + $0x40] sm:$0xff]   ;;  %v592_v3 = vld [vmem:[%s691_s19 + $0x48] sm:$0xff]   ;;  %v593_v24 = vld [vmem:[%s691_s19 + $0x50] sm:$0xff]  }
  0x10   : > { %v521_v2 = vld [vmem:[%s691_s19] sm:$0xff]   ;;  %v554_v4 = vunpack.c.l.bf16 %v591_v1  ;;  %v555_v6 = vunpack.c.h.bf16 %v591_v1  ;;  %v584_v8 = vld [vmem:[%s691_s19 + $0x8] sm:$0xff]   ;;  %v558_v10 = vunpack.c.l.bf16 %v592_v3  ;;  %v559_v19 = vunpack.c.h.bf16 %v592_v3  ;;  %v585_v25 = vld [vmem:[%s691_s19 + $0x10] sm:$0xff]  }
  0x11   : > { %v522_v5 = vunpack.c.l.bf16 %v521_v2  ;;  %v523_v7 = vunpack.c.h.bf16 %v521_v2  ;;  %v526_v11 = vunpack.c.l.bf16 %v584_v8  ;;  %v527_v20 = vunpack.c.h.bf16 %v584_v8  ;;  %v594_v38 = vld [vmem:[%s691_s19 + $0x58] sm:$0xff]   ;;  %v595_v52 = vld [vmem:[%s691_s19 + $0x60] sm:$0xff]   ;;  %v596_v3 = vld [vmem:[%s691_s19 + $0x68] sm:$0xff]  }
  0x12   : > { %v297_v12 = vmul.f32 %v554_v4, %v696_v0  ;;  %v298_v14 = vmul.f32 %v555_v6, %v696_v0  ;;  %v299_v18 = vmul.f32 %v558_v10, %v696_v0  ;;  %v300_v26 = vmul.f32 %v559_v19, %v696_v0  ;;  %v586_v39 = vld [vmem:[%s691_s19 + $0x18] sm:$0xff]   ;;  %v587_v53 = vld [vmem:[%s691_s19 + $0x20] sm:$0xff]   ;;  %v588_v4 = vld [vmem:[%s691_s19 + $0x28] sm:$0xff]  }
  0x13   : > { %v281_v13 = vmul.f32 %v522_v5, %v696_v0  ;;  %v282_v15 = vmul.f32 %v523_v7, %v696_v0  ;;  %v283_v23 = vmul.f32 %v526_v11, %v696_v0  ;;  %v284_v27 = vmul.f32 %v527_v20, %v696_v0  ;;  %v589_v19 = vld [vmem:[%s691_s19 + $0x30] sm:$0xff]  }
  0x14   : > { %v336_v16 = vadd.f32 %v705_v9, %v297_v12  ;;  %v337_v21 = vadd.f32 %v705_v9, %v298_v14  ;;  %v338_v28 = vadd.f32 %v705_v9, %v299_v18  ;;  %v562_v30 = vunpack.c.l.bf16 %v593_v24  ;;  %v597_v18 = vld [vmem:[%s691_s19 + $0x70] sm:$0xff]  }
  0x15   : > { %v320_v17 = vadd.f32 %v705_v9, %v281_v13  ;;  %v321_v22 = vadd.f32 %v705_v9, %v282_v15  ;;  %v322_v29 = vadd.f32 %v705_v9, %v283_v23  ;;  %v530_v31 = vunpack.c.l.bf16 %v585_v25 }
  0x16   : > { %384 = vxpose.xlu1.b32.start [1/16] (narrow) %v336_v16, 8  ;;  %v339_v32 = vadd.f32 %v705_v9, %v300_v26  ;;  %v563_v33 = vunpack.c.h.bf16 %v593_v24  ;;  %v323_v34 = vadd.f32 %v705_v9, %v284_v27  ;;  %v301_v35 = vmul.f32 %v562_v30, %v696_v0 }
  0x17   : > { %352 = vxpose.xlu0.b32.start [1/16] (narrow) %v320_v17, 8  ;;  %v285_v36 = vmul.f32 %v530_v31, %v696_v0  ;;  %v531_v37 = vunpack.c.h.bf16 %v585_v25  ;;  %v566_v41 = vunpack.c.l.bf16 %v594_v38  ;;  %v534_v45 = vunpack.c.l.bf16 %v586_v39 }
  0x18   : > { %v302_v40 = vmul.f32 %v563_v33, %v696_v0  ;;  %v340_v42 = vadd.f32 %v705_v9, %v301_v35  ;;  %v567_v47 = vunpack.c.h.bf16 %v594_v38  ;;  %v535_v51 = vunpack.c.h.bf16 %v586_v39  ;;  %v590_v33 = vld [vmem:[%s691_s19 + $0x38] sm:$0xff]  }
  0x19   : > { %v324_v43 = vadd.f32 %v705_v9, %v285_v36  ;;  %v286_v44 = vmul.f32 %v531_v37, %v696_v0  ;;  %v303_v46 = vmul.f32 %v566_v41, %v696_v0  ;;  %v287_v50 = vmul.f32 %v534_v45, %v696_v0 }
  0x1a   : > { %385 = vxpose.xlu1.b32.cont [2/16] (narrow) %v337_v21, 8  ;;  %v341_v48 = vadd.f32 %v705_v9, %v302_v40  ;;  %v304_v54 = vmul.f32 %v567_v47, %v696_v0  ;;  %v570_v55 = vunpack.c.l.bf16 %v595_v52  ;;  %v288_v58 = vmul.f32 %v535_v51, %v696_v0 }
  0x1b   : > { %353 = vxpose.xlu0.b32.cont [2/16] (narrow) %v321_v22, 8  ;;  %v325_v49 = vadd.f32 %v705_v9, %v286_v44  ;;  %v342_v56 = vadd.f32 %v705_v9, %v303_v46  ;;  %v326_v57 = vadd.f32 %v705_v9, %v287_v50  ;;  %v538_v59 = vunpack.c.l.bf16 %v587_v53 }
  0x1c   : > { %v343_v60 = vadd.f32 %v705_v9, %v304_v54  ;;  %v305_v61 = vmul.f32 %v570_v55, %v696_v0  ;;  %v327_v62 = vadd.f32 %v705_v9, %v288_v58  ;;  %v571_v1 = vunpack.c.h.bf16 %v595_v52 }
  0x1d   : > { %v289_v63 = vmul.f32 %v538_v59, %v696_v0  ;;  %v539_v2 = vunpack.c.h.bf16 %v587_v53  ;;  %v574_v6 = vunpack.c.l.bf16 %v596_v3  ;;  %v542_v11 = vunpack.c.l.bf16 %v588_v4 }
  0x1e   : > { %386 = vxpose.xlu1.b32.cont [3/16] (narrow) %v338_v28, 8  ;;  %v344_v5 = vadd.f32 %v705_v9, %v305_v61  ;;  %v306_v8 = vmul.f32 %v571_v1, %v696_v0  ;;  %v575_v13 = vunpack.c.h.bf16 %v596_v3  ;;  %v543_v17 = vunpack.c.h.bf16 %v588_v4 }
  0x1f   : > { %354 = vxpose.xlu0.b32.cont [3/16] (narrow) %v322_v29, 8  ;;  %v328_v7 = vadd.f32 %v705_v9, %v289_v63  ;;  %v290_v10 = vmul.f32 %v539_v2, %v696_v0  ;;  %v307_v12 = vmul.f32 %v574_v6, %v696_v0  ;;  %v291_v16 = vmul.f32 %v542_v11, %v696_v0 }
  0x20   : > { %v345_v14 = vadd.f32 %v705_v9, %v306_v8  ;;  %v308_v20 = vmul.f32 %v575_v13, %v696_v0  ;;  %v578_v21 = vunpack.c.l.bf16 %v597_v18  ;;  %v292_v24 = vmul.f32 %v543_v17, %v696_v0 }
  0x21   : > { %v329_v15 = vadd.f32 %v705_v9, %v290_v10  ;;  %v346_v22 = vadd.f32 %v705_v9, %v307_v12  ;;  %v330_v23 = vadd.f32 %v705_v9, %v291_v16  ;;  %v546_v25 = vunpack.c.l.bf16 %v589_v19 }
  0x22   : > { %387 = vxpose.xlu1.b32.cont [4/16] (narrow) %v339_v32, 8  ;;  %v347_v26 = vadd.f32 %v705_v9, %v308_v20  ;;  %v309_v27 = vmul.f32 %v578_v21, %v696_v0  ;;  %v331_v28 = vadd.f32 %v705_v9, %v292_v24  ;;  %v579_v30 = vunpack.c.h.bf16 %v597_v18  ;;  %v598_v32 = vld [vmem:[%s691_s19 + $0x78] sm:$0xff]  }
  0x23   : > { %355 = vxpose.xlu0.b32.cont [4/16] (narrow) %v323_v34, 8  ;;  %v293_v29 = vmul.f32 %v546_v25, %v696_v0  ;;  %v547_v31 = vunpack.c.h.bf16 %v589_v19  ;;  %v582_v35 = vunpack.c.l.bf16 %v598_v32  ;;  %v550_v39 = vunpack.c.l.bf16 %v590_v33 }
  0x24   : > { %v348_v34 = vadd.f32 %v705_v9, %v309_v27  ;;  %v310_v37 = vmul.f32 %v579_v30, %v696_v0  ;;  %v583_v41 = vunpack.c.h.bf16 %v598_v32  ;;  %v551_v45 = vunpack.c.h.bf16 %v590_v33 }
  0x25   : > { %v332_v36 = vadd.f32 %v705_v9, %v293_v29  ;;  %v294_v38 = vmul.f32 %v547_v31, %v696_v0  ;;  %v311_v40 = vmul.f32 %v582_v35, %v696_v0  ;;  %v295_v44 = vmul.f32 %v550_v39, %v696_v0 }
  0x26   : > { %388 = vxpose.xlu1.b32.cont [5/16] (narrow) %v340_v42, 8  ;;  %v349_v42 = vadd.f32 %v705_v9, %v310_v37  ;;  %v312_v46 = vmul.f32 %v583_v41, %v696_v0 }
  0x27   : > { %356 = vxpose.xlu0.b32.cont [5/16] (narrow) %v324_v43, 8  ;;  %v333_v43 = vadd.f32 %v705_v9, %v294_v38  ;;  %v350_v47 = vadd.f32 %v705_v9, %v311_v40 }
  0x28   : > { %v351_v50 = vadd.f32 %v705_v9, %v312_v46 }
  0x2a   : > { %389 = vxpose.xlu1.b32.cont [6/16] (narrow) %v341_v48, 8  ;;  %v334_v48 = vadd.f32 %v705_v9, %v295_v44 }
  0x2b   : > { %357 = vxpose.xlu0.b32.cont [6/16] (narrow) %v325_v49, 8  ;;  %v296_v49 = vmul.f32 %v551_v45, %v696_v0 }
  0x2d   : > { %v335_v51 = vadd.f32 %v705_v9, %v296_v49 }
  0x2e   : > { %390 = vxpose.xlu1.b32.cont [7/16] (narrow) %v342_v56, 8 }
  0x2f   : > { %358 = vxpose.xlu0.b32.cont [7/16] (narrow) %v326_v57, 8 }
  0x32   : > { %391 = vxpose.xlu1.b32.cont [8/16] (narrow) %v343_v60, 8 }
  0x33   : > { %359 = vxpose.xlu0.b32.cont [8/16] (narrow) %v327_v62, 8 }
  0x36   : > { %392 = vxpose.xlu1.b32.cont [9/16] (narrow) %v344_v5, 8 }
  0x37   : > { %360 = vxpose.xlu0.b32.cont [9/16] (narrow) %v328_v7, 8 }
  0x3a   : > { %393 = vxpose.xlu1.b32.cont [10/16] (narrow) %v345_v14, 8 }
  0x3b   : > { %361 = vxpose.xlu0.b32.cont [10/16] (narrow) %v329_v15, 8 }
  0x3e   : > { %394 = vxpose.xlu1.b32.cont [11/16] (narrow) %v346_v22, 8 }
  0x3f   : > { %362 = vxpose.xlu0.b32.cont [11/16] (narrow) %v330_v23, 8 }
  0x42   : > { %395 = vxpose.xlu1.b32.cont [12/16] (narrow) %v347_v26, 8 }
  0x43   : > { %363 = vxpose.xlu0.b32.cont [12/16] (narrow) %v331_v28, 8 }
  0x46   : > { %396 = vxpose.xlu1.b32.cont [13/16] (narrow) %v348_v34, 8 }
  0x47   : > { %364 = vxpose.xlu0.b32.cont [13/16] (narrow) %v332_v36, 8 }
  0x4a   : > { %397 = vxpose.xlu1.b32.cont [14/16] (narrow) %v349_v42, 8 }
  0x4b   : > { %365 = vxpose.xlu0.b32.cont [14/16] (narrow) %v333_v43, 8 }
  0x4e   : > { %398 = vxpose.xlu1.b32.cont [15/16] (narrow) %v350_v47, 8 }
  0x4f   : > { %366 = vxpose.xlu0.b32.cont [15/16] (narrow) %v334_v48, 8 }
  0x52   : > { %399 = vxpose.xlu1.b32.end [16/16] (narrow) %v351_v50, 8 }
  0x53   : > { %367 = vxpose.xlu0.b32.end [16/16] (narrow) %v335_v51, 8 }
  0x92   : > { %v400_v52 = vpop.trf.xlu1 }
  0x93   : > { %v368_v53 = vpop.trf.xlu0  ;;  %417 = vst [vmem:[%s208_s27 + $0x8] sm:$0xff] %v400_v52 }
  0x94   : > { %416 = vst [vmem:[%s208_s27] sm:$0xff] %v368_v53 }
  0x95 PF: > { %s13_s14 = sadd.s32 1, %s645_s14   ;;  %s800_s12 = smov %s641_s13 }
  0x96   : > { %p10_p5 = scmp.ge.s32.totalorder %s13_s14, 4   ;;  %s801_s13 = smov %s803_s15 }
  0x98   :  { %12 = sbr.rel (!%p10_p5) target bundleno = 2 (0x2), region = 62 }

// kernel: conv_bn2d_forward.2
= control target key start
LH: loop header
LB: loop body
LE: loop exit
PB: predicated region body
PF: predicated region fallthrough
CT: control target
= control target key end

     0   :  { %s6283_s15 = smov 0   ;;  %s6285_s16 = smov 0   ;;  %s9075_s0 = inlined_call_operand.vmem [shape: bf16[6,16,18,4], index: 0, kind: input, shape index: {}]   ;;  %s9076_s1 = inlined_call_operand.vmem [shape: bf16[9,4,128], index: 1, kind: input, shape index: {}]   ;;  %s9077_s2 = inlined_call_operand.vmem [shape: bf16[2,256,128], index: 2, kind: output, shape index: {0}]   ;;  %s9078_s3 = inlined_call_operand.vmem [shape: f32[2,1,8,128], index: 3, kind: output, shape index: {1}]   ;;  %s9079_s4 = inlined_call_operand.vmem [shape: f32[2,1,8,128], index: 4, kind: output, shape index: {2}]  }
   0x1   :  { %s6287_s17 = smov 0  }
   0x2 LB: > { %s27_s18 = sadd.s32 1, %s6252_s16  ;;  %p5082_p0 = scmp.ge.s32.totalorder %s6256_s17, 1  ;;  %s6256_s17 = sphi %s6287_s17, %s15_s17   ;;  %s6252_s16 = sphi %s6285_s16, %s9526_s16   ;;  %s6248_s15 = sphi %s6283_s15, %s9525_s15  }
   0x3   : > { %p29_p1 = scmp.ge.s32.totalorder %s27_s18, 2  ;;  %p195_p2 = scmp.lt.s32.totalorder %s6256_s17, 3 }
   0x5   : > { %s9528_s18 = smov (%p29_p1, %s27_s18), 0  ;;  %p196_p3 = pnand %p5082_p0, %p195_p2 }
   0x7   : > { %199 = sbr.rel (%p196_p3) target bundleno = 570 (0x23a), region = 28 }
   0xc   : > { %v5088_v0 = vld [vmem:[%s9076_s1 + $0x2] sm:$0x3]  ;;  %vm818_vm0 = vcmask 1041408   ;;  %s245_s21 = smul.u32 3, %s6248_s15  ;;  %v331_v2 = vld [vmem:[%s9076_s1] sm:$0x3] }
   0xd   : > { %6152 = vmatprep.subr.msk.bf16.mxu1 %vm818_vm0, %v5088_v0  ;;  %6151 = vmatprep.subr.msk.bf16.mxu0 %vm818_vm0, %v5088_v0  ;;  %v820_v1 = vsel %vm818_vm0, %v5088_v0, 0  ;;  %v5169_v3 = vld [vmem:[%s9076_s1 + $0x4] sm:$0x3]  ;;  %vm332_vm1 = vsmask.f32 3328  ;;  %v6324_v4 = vsel %vm818_vm0, %v331_v2, 0 }
   0xe   : > { %6150 = vmatpush3.bf16.msra.mxu1 %v820_v1  ;;  %5844 = vmatpush3.bf16.msra.mxu0 %v820_v1  ;;  %p247_p4 = scmp.lt.s32.totalorder %s245_s21, 5  ;;  %vm333_vm2 = vsmask.f32 7440  ;;  %v6327_v5 = vsel %vm818_vm0, %v5169_v3, 0  ;;  %vm769_vm3 = vcmask 31744   ;;  %v9148_v32 = vmov 0 }
   0xf   : > { %6153 = vmatprep.subr.msk.bf16.mxu1 %vm818_vm0, %v331_v2  ;;  %6154 = vmatprep.subr.msk.bf16.mxu0 %vm818_vm0, %v5169_v3  ;;  %vm6366_vm4 = vmor %vm332_vm1, %vm333_vm2  ;;  %vm1291_vm5 = vcmask 1042432   ;;  %vm1292_vm6 = vcmask 1046532   ;;  %p259_p5 = scmp.lt.s32.totalorder %s6248_s15, 1 }
  0x10   : > { %s9530_s21 = smov (!%p247_p4, %s245_s21), 5  ;;  %v9149_v32 = vsel %vm6366_vm4, 4294967295, %v9148_v32  ;;  %vm6651_vm7 = vmor %vm1291_vm5, %vm1292_vm6 }
  0x11   : > { %s6161_s26 = smul.u32 192, %s9530_s21  ;;  %9150 = vst [vmem:[#allocation2_spill] sm:$0xff] %v9149_v32  ;;  %s9532_s15 = smov (!%p259_p5, %s6248_s15), 1 }
  0x12   : > { %s5562_s20 = sshll.u32 %s9532_s15, 7  ;;  %s5086_s24 = sshll.u32 %s9532_s15, 3 }
  0x13   : > { %s6321_s29 = scalar_lea.vmem %s9075_s0, %s6161_s26  ;;  %s8977_s23 = scalar_lea.vmem %s9077_s2, %s5562_s20 }
  0x14   : > { %v6330_v6 = vld [vmem:[%s6321_s29] sm:$0xf]  ;;  %v6333_v7 = vld [vmem:[%s6321_s29 + $0x4] sm:$0xf]  ;;  %v6336_v8 = vld [vmem:[%s6321_s29 + $0x8] sm:$0x1]  ;;  %s274_s27 = scalar_lea.vmem %s9078_s3, %s5086_s24  ;;  %s281_s30 = scalar_lea.vmem %s9079_s4, %s5086_s24 }
  0x15   : > { %v336_v9 = vshrl.u32 %v6330_v6, 16  ;;  %v339_v10 = vshll.u32 %v6330_v6, 16  ;;  %v345_v11 = vshll.u32 %v6333_v7, 16  ;;  %v349_v12 = vshrl.u32 %v6333_v7, 16  ;;  %v6343_v13 = vld [vmem:[%s6321_s29 + $0x60] sm:$0xf] }
  0x16   : > { %v355_v14 = vshll.u32 %v6336_v8, 16  ;;  %v6348_v16 = vld [vmem:[%s6321_s29 + $0x64] sm:$0xf]  ;;  %v6351_v17 = vld [vmem:[%s6321_s29 + $0x68] sm:$0x1]  ;;  %v528_v23 = vshrl.u32 %v6343_v13, 16 }
  0x17   : > { %v338_v18 = vrot.slane %v336_v9, 4  ;;  %v341_v19 = vrot.slane %v339_v10, 5  ;;  %v347_v20 = vrot.slane %v345_v11, 5  ;;  %v351_v21 = vrot.slane %v349_v12, 4  ;;  %v6359_v30 = vld [vmem:[%s6321_s29 + $0xc] sm:$0xf] }
  0x18   : > { %v357_v22 = vrot.slane %v355_v14, 5  ;;  %v531_v24 = vshll.u32 %v6343_v13, 16  ;;  %v537_v25 = vshll.u32 %v6348_v16, 16  ;;  %v541_v28 = vshrl.u32 %v6348_v16, 16  ;;  %v6362_v31 = vld [vmem:[%s6321_s29 + $0x10] sm:$0xf] }
  0x19   : > { %v342_v26 = vor.u32 %v341_v19, %v338_v18  ;;  %v352_v27 = vor.u32 %v351_v21, %v347_v20  ;;  %v547_v29 = vshll.u32 %v6351_v17, 16  ;;  %v530_v33 = vrot.slane %v528_v23, 4  ;;  %v6373_v42 = vld [vmem:[%s6321_s29 + $0x14] sm:$0x1]  ;;  %v6384_v54 = vld [vmem:[%s6321_s29 + $0x6c] sm:$0xf] }
  0x1a   : > { %v533_v34 = vrot.slane %v531_v24, 5  ;;  %v539_v35 = vrot.slane %v537_v25, 5  ;;  %v543_v39 = vrot.slane %v541_v28, 4  ;;  %v360_v43 = vshrl.u32 %v6359_v30, 16  ;;  %9151 = vst [vmem:[#allocation3_spill] sm:$0xff] %v6384_v54 }
  0x1b   : > { %v343_v37 = vrot.slane %v342_v26, 4  ;;  %v353_v38 = vrot.slane %v352_v27, 4  ;;  %v549_v40 = vrot.slane %v547_v29, 5  ;;  %v363_v44 = vshll.u32 %v6359_v30, 16  ;;  %v6388_v59 = vld [vmem:[%s6321_s29 + $0x70] sm:$0xf] }
  0x1c   : > { %v534_v41 = vor.u32 %v533_v34, %v530_v33  ;;  %v369_v45 = vshll.u32 %v6362_v31, 16  ;;  %v544_v48 = vor.u32 %v543_v39, %v539_v35  ;;  %v373_v49 = vshrl.u32 %v6362_v31, 16  ;;  %v6396_v0 = vld [vmem:[%s6321_s29 + $0x74] sm:$0x1]  ;;  %v6402_v10 = vld [vmem:[%s6321_s29 + $0x18] sm:$0xf] }
  0x1d   : > { %v348_v46 = vsel %vm6366_vm4, %v343_v37, %v347_v20  ;;  %v358_v47 = vsel %vm6366_vm4, %v353_v38, %v357_v22  ;;  %v362_v52 = vrot.slane %v360_v43, 4  ;;  %v365_v53 = vrot.slane %v363_v44, 5  ;;  %9152 = vst [vmem:[#allocation4_spill] sm:$0xff] %v6396_v0  ;;  %v6409_v23 = vld [vmem:[%s6321_s29 + $0x1c] sm:$0xf] }
  0x1e   : > { %v5089_v50 = vcombine.low %v348_v46, %v358_v47  ;;  %v535_v51 = vrot.slane %v534_v41, 4  ;;  %v545_v55 = vrot.slane %v544_v48, 4  ;;  %v371_v56 = vrot.slane %v369_v45, 5  ;;  %v6415_v27 = vld [vmem:[%s6321_s29 + $0x20] sm:$0x1] }
  0x1f   : > { %v375_v57 = vrot.slane %v373_v49, 4  ;;  %v379_v58 = vshll.u32 %v6373_v42, 16  ;;  %v366_v61 = vor.u32 %v365_v53, %v362_v52  ;;  %v552_v9 = vshrl.u32 %v6384_v54, 16  ;;  %v6422_v37 = vld [vmem:[%s6321_s29 + $0x78] sm:$0xf] }
  0x20   : > { %5845 = vmatprep.mubr.msk.bf16.mxu0 %vm769_vm3, %v5089_v50  ;;  %v540_v60 = vsel %vm6366_vm4, %v535_v51, %v539_v35  ;;  %v550_v1 = vsel %vm6366_vm4, %v545_v55, %v549_v40  ;;  %v555_v14 = vshll.u32 %v6384_v54, 16  ;;  %v561_v18 = vshll.u32 %v6388_v59, 16  ;;  %9153 = vst [vmem:[#allocation5_spill] sm:$0xff] %v6422_v37  ;;  %v6428_v43 = vld [vmem:[%s9076_s1 + $0x8] sm:$0x3] }
  0x21   : > { %v376_v2 = vor.u32 %v375_v57, %v371_v56  ;;  %v381_v3 = vrot.slane %v379_v58, 5  ;;  %v5097_v11 = vcombine.low %v540_v60, %v550_v1  ;;  %v367_v12 = vrot.slane %v366_v61, 4  ;;  %v6433_v48 = vld [vmem:[%s6321_s29 + $0x7c] sm:$0xf]  ;;  %v6440_v58 = vld [vmem:[%s6321_s29 + $0x80] sm:$0x1] }
  0x22   : > { %v554_v20 = vrot.slane %v552_v9, 4  ;;  %v565_v21 = vshrl.u32 %v6388_v59, 16  ;;  %v571_v22 = vshll.u32 %v6396_v0, 16  ;;  %v557_v25 = vrot.slane %v555_v14, 5  ;;  %9154 = vst [vmem:[#allocation6_spill] sm:$0xff] %v6433_v48  ;;  %9155 = vst [vmem:[#allocation7_spill] sm:$0xff] %v6440_v58 }
  0x23   : > { %v377_v19 = vrot.slane %v376_v2, 4  ;;  %5861 = vmatprep.mubr.msk.bf16.mxu1 %vm769_vm3, %v5097_v11  ;;  %v372_v24 = vsel %vm6366_vm4, %v367_v12, %v371_v56  ;;  %v563_v26 = vrot.slane %v561_v18, 5  ;;  %v384_v28 = vshrl.u32 %v6402_v10, 16  ;;  %v6454_v14 = vld [vmem:[%s6321_s29 + $0x28] sm:$0xf] }
  0x24   : > { %v567_v33 = vrot.slane %v565_v21, 4  ;;  %v573_v34 = vrot.slane %v571_v22, 5  ;;  %v387_v35 = vshll.u32 %v6402_v10, 16  ;;  %v558_v39 = vor.u32 %v557_v25, %v554_v20  ;;  %v6460_v22 = vld [vmem:[%s9076_s1 + $0x6] sm:$0x3] }
  0x25   : > { %v382_v29 = vsel %vm6366_vm4, %v377_v19, %v381_v3  ;;  %v386_v40 = vrot.slane %v384_v28, 4  ;;  %v393_v41 = vshll.u32 %v6409_v23, 16  ;;  %v397_v46 = vshrl.u32 %v6409_v23, 16  ;;  %v6446_v3 = vld [vmem:[%s6321_s29 + $0x24] sm:$0xf] }
  0x26   : > { %v5090_v38 = vcombine.low %v372_v24, %v382_v29  ;;  %v568_v44 = vor.u32 %v567_v33, %v563_v26  ;;  %v389_v45 = vrot.slane %v387_v35, 5  ;;  %v403_v47 = vshll.u32 %v6415_v27, 16  ;;  %v6465_v28 = vld [vmem:[%s6321_s29 + $0x2c] sm:$0x1] }
  0x27   : > { %v559_v49 = vrot.slane %v558_v39, 4  ;;  %v395_v50 = vrot.slane %v393_v41, 5  ;;  %v576_v51 = vshrl.u32 %v6422_v37, 16  ;;  %v579_v52 = vshll.u32 %v6422_v37, 16  ;;  %v6472_v39 = vld [vmem:[%s6321_s29 + $0x84] sm:$0xf] }
  0x28   : > { %5846 = vmatmul.mubr.msk.bf16.vlgmr.msra.gmra.mxu0 %vm769_vm3, %v5090_v38  ;;  %v569_v53 = vrot.slane %v568_v44, 4  ;;  %v390_v55 = vor.u32 %v389_v45, %v386_v40  ;;  %v399_v56 = vrot.slane %v397_v46, 4  ;;  %v405_v57 = vrot.slane %v403_v47, 5  ;;  %v6479_v46 = vld [vmem:[%s6321_s29 + $0x88] sm:$0xf] }
  0x29   : > { %5912 = vmatpush3.bf16.msra.mxu0 %v6327_v5  ;;  %v564_v60 = vsel %vm6366_vm4, %v559_v49, %v563_v26  ;;  %v578_v61 = vrot.slane %v576_v51, 4  ;;  %v581_v1 = vrot.slane %v579_v52, 5  ;;  %v585_v2 = vshll.u32 %v6433_v48, 16 }
  0x2a   : > { %6156 = vmatprep.subr.msk.bf16.mxu0 %vm818_vm0, %v6428_v43  ;;  %v574_v5 = vsel %vm6366_vm4, %v569_v53, %v573_v34  ;;  %v391_v9 = vrot.slane %v390_v55, 4  ;;  %v400_v11 = vor.u32 %v399_v56, %v395_v50  ;;  %v589_v12 = vshrl.u32 %v6433_v48, 16  ;;  %v6487_v55 = vld [vmem:[%s6321_s29 + $0x8c] sm:$0x1]  ;;  %v6618_v48 = vld [vmem:[%s6321_s29 + $0x5c] sm:$0x1] }
  0x2b   : > { %v5098_v18 = vcombine.low %v564_v60, %v574_v5  ;;  %v582_v19 = vor.u32 %v581_v1, %v578_v61  ;;  %v587_v20 = vrot.slane %v585_v2, 5  ;;  %v595_v21 = vshll.u32 %v6440_v58, 16  ;;  %v6495_v2 = vld [vmem:[%s6321_s29 + $0x30] sm:$0xf] }
  0x2c   : > { %v396_v24 = vsel %vm6366_vm4, %v391_v9, %v395_v50  ;;  %v401_v25 = vrot.slane %v400_v11, 4  ;;  %v591_v26 = vrot.slane %v589_v12, 4  ;;  %v408_v29 = vshrl.u32 %v6446_v3, 16 }
  0x2d   : > { %5862 = vmatmul.mubr.msk.bf16.vlgmr.msra.gmra.mxu1 %vm769_vm3, %v5098_v18  ;;  %v583_v33 = vrot.slane %v582_v19, 4  ;;  %v597_v34 = vrot.slane %v595_v21, 5  ;;  %v411_v35 = vshll.u32 %v6446_v3, 16  ;;  %v417_v38 = vshll.u32 %v6454_v14, 16  ;;  %v6500_v18 = vld [vmem:[%s6321_s29 + $0x34] sm:$0xf] }
  0x2e   : > { %5878 = vmatpush3.bf16.msra.mxu1 %v6324_v4  ;;  %v406_v40 = vsel %vm6366_vm4, %v401_v25, %v405_v57  ;;  %v592_v41 = vor.u32 %v591_v26, %v587_v20  ;;  %v410_v44 = vrot.slane %v408_v29, 4  ;;  %v421_v45 = vshrl.u32 %v6454_v14, 16 }
  0x2f   : > { %v5091_v47 = vcombine.low %v396_v24, %v406_v40  ;;  %v588_v49 = vsel %vm6366_vm4, %v583_v33, %v587_v20  ;;  %v413_v50 = vrot.slane %v411_v35, 5  ;;  %v419_v51 = vrot.slane %v417_v38, 5  ;;  %6155 = vmatprep.subr.msk.bf16.mxu1 %vm818_vm0, %v6460_v22  ;;  %v6508_v38 = vld [vmem:[%s6321_s29 + $0x38] sm:$0x1] }
  0x30   : > { %v593_v4 = vrot.slane %v592_v41, 4  ;;  %v423_v52 = vrot.slane %v421_v45, 4  ;;  %v427_v53 = vshll.u32 %v6465_v28, 16  ;;  %v600_v56 = vshrl.u32 %v6472_v39, 16 }
  0x31   : > { %5849 = vmatprep.mubr.msk.bf16.mxu0 %vm769_vm3, %v5091_v47  ;;  %v414_v57 = vor.u32 %v413_v50, %v410_v44  ;;  %v603_v60 = vshll.u32 %v6472_v39, 16  ;;  %v609_v61 = vshll.u32 %v6479_v46, 16  ;;  %v613_v1 = vshrl.u32 %v6479_v46, 16  ;;  %v6513_v44 = vld [vmem:[%s6321_s29 + $0x90] sm:$0xf] }
  0x32   : > { %v598_v5 = vsel %vm6366_vm4, %v593_v4, %v597_v34  ;;  %v424_v9 = vor.u32 %v423_v52, %v419_v51  ;;  %v429_v11 = vrot.slane %v427_v53, 5  ;;  %v602_v12 = vrot.slane %v600_v56, 4  ;;  %v6518_v4 = vld [vmem:[%s6321_s29 + $0x94] sm:$0xf] }
  0x33   : > { %v5099_v19 = vcombine.low %v588_v49, %v598_v5  ;;  %v415_v20 = vrot.slane %v414_v57, 4  ;;  %v605_v21 = vrot.slane %v603_v60, 5  ;;  %v611_v24 = vrot.slane %v609_v61, 5 }
  0x34   : > { %v425_v25 = vrot.slane %v424_v9, 4  ;;  %v615_v26 = vrot.slane %v613_v1, 4  ;;  %v619_v29 = vshll.u32 %v6487_v55, 16  ;;  %v432_v33 = vshrl.u32 %v6495_v2, 16 }
  0x35   : > { %5865 = vmatprep.mubr.msk.bf16.mxu1 %vm769_vm3, %v5099_v19  ;;  %v420_v34 = vsel %vm6366_vm4, %v415_v20, %v419_v51  ;;  %v606_v35 = vor.u32 %v605_v21, %v602_v12  ;;  %v435_v40 = vshll.u32 %v6495_v2, 16  ;;  %v441_v41 = vshll.u32 %v6500_v18, 16  ;;  %v6532_v20 = vld [vmem:[%s6321_s29 + $0x3c] sm:$0xf] }
  0x36   : > { %v430_v45 = vsel %vm6366_vm4, %v425_v25, %v429_v11  ;;  %v616_v47 = vor.u32 %v615_v26, %v611_v24  ;;  %v621_v49 = vrot.slane %v619_v29, 5  ;;  %v434_v50 = vrot.slane %v432_v33, 4  ;;  %v6527_v11 = vld [vmem:[%s6321_s29 + $0x98] sm:$0x1]  ;;  %v6537_v33 = vld [vmem:[%s6321_s29 + $0x40] sm:$0xf] }
  0x37   : > { %v5092_v51 = vcombine.low %v420_v34, %v430_v45  ;;  %v607_v52 = vrot.slane %v606_v35, 4  ;;  %v437_v53 = vrot.slane %v435_v40, 5  ;;  %v443_v56 = vrot.slane %v441_v41, 5 }
  0x38   : > { %v617_v57 = vrot.slane %v616_v47, 4  ;;  %v445_v60 = vshrl.u32 %v6500_v18, 16  ;;  %v451_v61 = vshll.u32 %v6508_v38, 16  ;;  %v624_v1 = vshrl.u32 %v6513_v44, 16 }
  0x39   : > { %5850 = vmatmul.mubr.msk.bf16.gmra.mxu0 %vm769_vm3, %v5092_v51  ;;  %v612_v5 = vsel %vm6366_vm4, %v607_v52, %v611_v24  ;;  %v438_v9 = vor.u32 %v437_v53, %v434_v50  ;;  %v627_v12 = vshll.u32 %v6513_v44, 16  ;;  %v633_v19 = vshll.u32 %v6518_v4, 16  ;;  %v6546_v52 = vld [vmem:[%s6321_s29 + $0x44] sm:$0x1] }
  0x3a   : > { %v622_v21 = vsel %vm6366_vm4, %v617_v57, %v621_v49  ;;  %v447_v25 = vrot.slane %v445_v60, 4  ;;  %v453_v26 = vrot.slane %v451_v61, 5  ;;  %v626_v29 = vrot.slane %v624_v1, 4  ;;  %v6551_v60 = vld [vmem:[%s6321_s29 + $0x9c] sm:$0xf] }
  0x3b   : > { %v5100_v24 = vcombine.low %v612_v5, %v622_v21  ;;  %v439_v34 = vrot.slane %v438_v9, 4  ;;  %v629_v35 = vrot.slane %v627_v12, 5  ;;  %v635_v40 = vrot.slane %v633_v19, 5  ;;  %9156 = vst [vmem:[#allocation8_spill] sm:$0xff] %v6551_v60 }
  0x3c   : > { %v448_v41 = vor.u32 %v447_v25, %v443_v56  ;;  %v637_v45 = vshrl.u32 %v6518_v4, 16  ;;  %v643_v47 = vshll.u32 %v6527_v11, 16  ;;  %v456_v50 = vshrl.u32 %v6532_v20, 16 }
  0x3d   : > { %5866 = vmatmul.mubr.msk.bf16.gmra.mxu1 %vm769_vm3, %v5100_v24  ;;  %v444_v49 = vsel %vm6366_vm4, %v439_v34, %v443_v56  ;;  %v630_v51 = vor.u32 %v629_v35, %v626_v29  ;;  %v459_v53 = vshll.u32 %v6532_v20, 16  ;;  %v465_v57 = vshll.u32 %v6537_v33, 16  ;;  %v6558_v34 = vld [vmem:[%s6321_s29 + $0xa0] sm:$0xf] }
  0x3e   : > { %v449_v61 = vrot.slane %v448_v41, 4  ;;  %v639_v1 = vrot.slane %v637_v45, 4  ;;  %v645_v5 = vrot.slane %v643_v47, 5  ;;  %v458_v9 = vrot.slane %v456_v50, 4 }
  0x3f   : > { %v631_v12 = vrot.slane %v630_v51, 4  ;;  %v461_v19 = vrot.slane %v459_v53, 5  ;;  %v467_v21 = vrot.slane %v465_v57, 5  ;;  %v469_v56 = vshrl.u32 %v6537_v33, 16  ;;  %v6564_v51 = vld [vmem:[%s6321_s29 + $0xa4] sm:$0x1] }
  0x40   : > { %v454_v25 = vsel %vm6366_vm4, %v449_v61, %v453_v26  ;;  %v640_v29 = vor.u32 %v639_v1, %v635_v40  ;;  %v475_v24 = vshll.u32 %v6546_v52, 16  ;;  %v648_v35 = vshrl.u32 %v6551_v60, 16  ;;  %9157 = vst [vmem:[#allocation9_spill] sm:$0xff] %v6564_v51  ;;  %v6567_v53 = vld [vmem:[%s6321_s29 + $0x48] sm:$0xf] }
  0x41   : > { %v5093_v41 = vcombine.low %v444_v49, %v454_v25  ;;  %v636_v45 = vsel %vm6366_vm4, %v631_v12, %v635_v40  ;;  %v462_v47 = vor.u32 %v461_v19, %v458_v9  ;;  %v471_v50 = vrot.slane %v469_v56, 4  ;;  %v6577_v56 = vld [vmem:[%s6321_s29 + $0x4c] sm:$0xf] }
  0x42   : > { %v641_v57 = vrot.slane %v640_v29, 4  ;;  %v477_v26 = vrot.slane %v475_v24, 5  ;;  %v650_v61 = vrot.slane %v648_v35, 4  ;;  %v651_v1 = vshll.u32 %v6551_v60, 16 }
  0x43   : > { %5853 = vmatprep.mubr.msk.bf16.mxu0 %vm769_vm3, %v5093_v41  ;;  %v463_v36 = vrot.slane %v462_v47, 4  ;;  %v472_v49 = vor.u32 %v471_v50, %v467_v21  ;;  %v657_v25 = vshll.u32 %v6558_v34, 16  ;;  %v661_v40 = vshrl.u32 %v6558_v34, 16  ;;  %v6583_v50 = vld [vmem:[%s6321_s29 + $0x50] sm:$0x1] }
  0x44   : > { %v646_v9 = vsel %vm6366_vm4, %v641_v57, %v645_v5  ;;  %v653_v12 = vrot.slane %v651_v1, 5  ;;  %v667_v19 = vshll.u32 %v6564_v51, 16  ;;  %v480_v29 = vshrl.u32 %v6567_v53, 16  ;;  %v6586_v57 = vld [vmem:[%s6321_s29 + $0xa8] sm:$0xf] }
  0x45   : > { %v5101_v24 = vcombine.low %v636_v45, %v646_v9  ;;  %v468_v35 = vsel %vm6366_vm4, %v463_v36, %v467_v21  ;;  %v473_v41 = vrot.slane %v472_v49, 4  ;;  %v659_v47 = vrot.slane %v657_v25, 5  ;;  %9158 = vst [vmem:[#allocation10_spill] sm:$0xff] %v6586_v57  ;;  %v6596_v9 = vld [vmem:[%s6321_s29 + $0xac] sm:$0xf] }
  0x46   : > { %v654_v63 = vor.u32 %v653_v12, %v650_v61  ;;  %v663_v15 = vrot.slane %v661_v40, 4  ;;  %v669_v62 = vrot.slane %v667_v19, 5  ;;  %v482_v5 = vrot.slane %v480_v29, 4  ;;  %9159 = vst [vmem:[#allocation11_spill] sm:$0xff] %v6596_v9 }
  0x47   : > { %5869 = vmatprep.mubr.msk.bf16.mxu1 %vm769_vm3, %v5101_v24  ;;  %v478_v45 = vsel %vm6366_vm4, %v473_v41, %v477_v26  ;;  %v483_v1 = vshll.u32 %v6567_v53, 16  ;;  %v489_v36 = vshll.u32 %v6577_v56, 16  ;;  %v493_v21 = vshrl.u32 %v6577_v56, 16  ;;  %v6599_v24 = vld [vmem:[%s6321_s29 + $0xb0] sm:$0x1] }
  0x48   : > { %v5094_v49 = vcombine.low %v468_v35, %v478_v45  ;;  %v655_v25 = vrot.slane %v654_v63, 4  ;;  %v664_v61 = vor.u32 %v663_v15, %v659_v47  ;;  %v499_v40 = vshll.u32 %v6583_v50, 16  ;;  %9160 = vst [vmem:[#allocation12_spill] sm:$0xff] %v6599_v24 }
  0x49   : > { %v485_v12 = vrot.slane %v483_v1, 5  ;;  %v491_v19 = vrot.slane %v489_v36, 5  ;;  %v495_v29 = vrot.slane %v493_v21, 4  ;;  %v672_v26 = vshrl.u32 %v6586_v57, 16  ;;  %v6608_v36 = vld [vmem:[%s6321_s29 + $0x54] sm:$0xf] }
  0x4a   : > { %5854 = vmatmul.mubr.msk.bf16.gmra.mxu0 %vm769_vm3, %v5094_v49  ;;  %v660_v35 = vsel %vm6366_vm4, %v655_v25, %v659_v47  ;;  %v665_v63 = vrot.slane %v664_v61, 4  ;;  %v501_v15 = vrot.slane %v499_v40, 5  ;;  %v675_v41 = vshll.u32 %v6586_v57, 16  ;;  %v6615_v61 = vld [vmem:[%s6321_s29 + $0x58] sm:$0xf] }
  0x4b   : > { %v486_v45 = vor.u32 %v485_v12, %v482_v5  ;;  %v496_v58 = vor.u32 %v495_v29, %v491_v19  ;;  %v674_v37 = vrot.slane %v672_v26, 4  ;;  %v681_v1 = vshll.u32 %v6596_v9, 16 }
  0x4c   : > { %v670_v21 = vsel %vm6366_vm4, %v665_v63, %v669_v62  ;;  %v677_v49 = vrot.slane %v675_v41, 5  ;;  %v685_v47 = vshrl.u32 %v6596_v9, 16  ;;  %v691_v25 = vshll.u32 %v6599_v24, 16  ;;  %v6642_v24 = vld [vmem:[%s6321_s29 + $0xbc] sm:$0x1] }
  0x4d   : > { %v5102_v5 = vcombine.low %v660_v35, %v670_v21  ;;  %v487_v40 = vrot.slane %v486_v45, 4  ;;  %v497_v12 = vrot.slane %v496_v58, 4  ;;  %v683_v29 = vrot.slane %v681_v1, 5  ;;  %v6629_v45 = vld [vmem:[%s6321_s29 + $0xb4] sm:$0xf] }
  0x4e   : > { %v678_v26 = vor.u32 %v677_v49, %v674_v37  ;;  %v687_v0 = vrot.slane %v685_v47, 4  ;;  %v693_v54 = vrot.slane %v691_v25, 5  ;;  %v504_v62 = vshrl.u32 %v6608_v36, 16  ;;  %9161 = vst [vmem:[#allocation13_spill] sm:$0xff] %v6629_v45  ;;  %v6632_v47 = vld [vmem:[%s6321_s29 + $0xb8] sm:$0xf] }
  0x4f   : > { %5870 = vmatmul.mubr.msk.bf16.gmra.mxu1 %vm769_vm3, %v5102_v5  ;;  %v492_v63 = vsel %vm6366_vm4, %v487_v40, %v491_v19  ;;  %v502_v41 = vsel %vm6366_vm4, %v497_v12, %v501_v15  ;;  %v507_v35 = vshll.u32 %v6608_v36, 16  ;;  %v513_v58 = vshll.u32 %v6615_v61, 16 }
  0x50   : > { %v5095_v37 = vcombine.low %v492_v63, %v502_v41  ;;  %v679_v1 = vrot.slane %v678_v26, 4  ;;  %v688_v21 = vor.u32 %v687_v0, %v683_v29  ;;  %v506_v49 = vrot.slane %v504_v62, 4 }
  0x51   : > { %v509_v25 = vrot.slane %v507_v35, 5  ;;  %v515_v5 = vrot.slane %v513_v58, 5  ;;  %v517_v19 = vshrl.u32 %v6615_v61, 16  ;;  %v523_v40 = vshll.u32 %v6618_v48, 16 }
  0x52   : > { %5857 = vmatprep.mubr.msk.bf16.mxu0 %vm769_vm3, %v5095_v37  ;;  %v684_v15 = vsel %vm6366_vm4, %v679_v1, %v683_v29  ;;  %v689_v12 = vrot.slane %v688_v21, 4  ;;  %v696_v63 = vshrl.u32 %v6629_v45, 16  ;;  %v699_v26 = vshll.u32 %v6629_v45, 16 }
  0x53   : > { %v510_v0 = vor.u32 %v509_v25, %v506_v49  ;;  %v519_v62 = vrot.slane %v517_v19, 4  ;;  %v525_v41 = vrot.slane %v523_v40, 5  ;;  %v705_v35 = vshll.u32 %v6632_v47, 16 }
  0x54   : > { %v694_v58 = vsel %vm6366_vm4, %v689_v12, %v693_v54  ;;  %v698_v57 = vrot.slane %v696_v63, 4  ;;  %v701_v37 = vrot.slane %v699_v26, 5  ;;  %v709_v9 = vshrl.u32 %v6632_v47, 16 }
  0x55   : > { %v5103_v29 = vcombine.low %v684_v15, %v694_v58  ;;  %v511_v1 = vrot.slane %v510_v0, 4  ;;  %v520_v21 = vor.u32 %v519_v62, %v515_v5  ;;  %v707_v51 = vrot.slane %v705_v35, 5 }
  0x56   : > { %v702_v60 = vor.u32 %v701_v37, %v698_v57  ;;  %v711_v45 = vrot.slane %v709_v9, 4  ;;  %v715_v49 = vshll.u32 %v6642_v24, 16  ;;  %v9162_v25 = vmov 0 }
  0x57   : > { %v9163_v25 = vsel %vm6651_vm7, 4294967295, %v9162_v25  ;;  %v5153_v54 = vrot.slane %v6330_v6, 9  ;;  %5873 = vmatprep.mubr.msk.bf16.mxu1 %vm769_vm3, %v5103_v29  ;;  %v516_v19 = vsel %vm6366_vm4, %v511_v1, %v515_v5  ;;  %v521_v40 = vrot.slane %v520_v21, 4 }
  0x58   : > { %9164 = vst [vmem:[#allocation14_spill] sm:$0xff] %v9163_v25  ;;  %v1296_v15 = vrot.slane %v6333_v7, 5  ;;  %v5122_v57 = vcombine.low %v6359_v30, %v6362_v31  ;;  %v703_v9 = vrot.slane %v702_v60, 4  ;;  %v712_v12 = vor.u32 %v711_v45, %v707_v51 }
  0x59   : > { %v717_v63 = vrot.slane %v715_v49, 5  ;;  %v5154_v26 = vrot.slane %v6359_v30, 9  ;;  %v526_v0 = vsel %vm6366_vm4, %v521_v40, %v525_v41  ;;  %v9165_v5 = vrot.slane %v6362_v31, 5 }
  0x5a   : > { %v1297_v62 = vsel %vm6651_vm7, %v5153_v54, %v1296_v15  ;;  %v1298_v35 = vrot.slane %v1296_v15, 4  ;;  %v5096_v37 = vcombine.low %v516_v19, %v526_v0  ;;  %v708_v29 = vsel %vm6366_vm4, %v703_v9, %v707_v51 }
  0x5b   : > { %v1305_v58 = vrot.slane %v9165_v5, 4  ;;  %v713_v1 = vrot.slane %v712_v12, 4  ;;  %v9166_v60 = vmov %v9165_v5  ;;  %v9167_v45 = vrot.slane %v6336_v8, 5 }
  0x5c   : > { %v1304_v30 = vsel %vm6651_vm7, %v5154_v26, %v9166_v60  ;;  %v9168_v21 = vrot.slane %v6373_v42, 5  ;;  %v5123_v54 = vcombine.low %v6402_v10, %v6409_v23  ;;  %v5155_v51 = vrot.slane %v6402_v10, 9  ;;  %5858 = vmatmul.mubr.msk.bf16.gmra.mxu0 %vm769_vm3, %v5096_v37 }
  0x5d   : > { %v1300_v41 = vsel %vm6651_vm7, %v1298_v35, %v9167_v45  ;;  %v718_v31 = vsel %vm6366_vm4, %v713_v1, %v717_v63  ;;  %v1310_v40 = vrot.slane %v6409_v23, 5  ;;  %v1313_v42 = vrot.slane %v6415_v27, 5 }
  0x5e   : > { %v1307_v49 = vsel %vm6651_vm7, %v1305_v58, %v9168_v21  ;;  %v5170_v19 = vcombine.low %v1297_v62, %v1300_v41  ;;  %v5104_v15 = vcombine.low %v708_v29, %v718_v31  ;;  %v1317_v10 = vrot.slane %v6454_v14, 5  ;;  %v6735_v31 = vld [vmem:[%s9076_s1 + $0xa] sm:$0x3] }
  0x5f   : > { %v5171_v8 = vcombine.low %v1304_v30, %v1307_v49  ;;  %v1311_v9 = vsel %vm6651_vm7, %v5155_v51, %v1310_v40  ;;  %v1312_v12 = vrot.slane %v1310_v40, 4  ;;  %v5156_v26 = vrot.slane %v6446_v3, 9 }
  0x60   : > { %5913 = vmatprep.mubr.msk.bf16.mxu0 %vm769_vm3, %v5170_v19  ;;  %5874 = vmatmul.mubr.msk.bf16.gmra.mxu1 %vm769_vm3, %v5104_v15  ;;  %v5157_v63 = vrot.slane %v6495_v2, 9  ;;  %v1324_v0 = vrot.slane %v6500_v18, 5  ;;  %v9169_v23 = vcombine.low %v6330_v6, %v6333_v7  ;;  %v1319_v62 = vrot.slane %v1317_v10, 4 }
  0x61   : > { %v1314_v27 = vsel %vm6651_vm7, %v1312_v12, %v1313_v42  ;;  %v1320_v35 = vrot.slane %v6465_v28, 5  ;;  %v1327_v5 = vrot.slane %v6508_v38, 5  ;;  %v2558_v29 = vsel %vm818_vm0, %v6428_v43, 0  ;;  %v6720_v38 = vld [vmem:[%s9076_s1 + $0xc] sm:$0x3] }
  0x62   : > { %5879 = vmatprep.mubr.msk.bf16.mxu1 %vm769_vm3, %v9169_v23  ;;  %v5172_v58 = vcombine.low %v1311_v9, %v1314_v27  ;;  %v1326_v37 = vrot.slane %v1324_v0, 4  ;;  %v1331_v1 = vrot.slane %v6537_v33, 5  ;;  %v1880_v6 = vsel %vm818_vm0, %v6460_v22, 0 }
  0x63   : > { %v1318_v7 = vsel %vm6651_vm7, %v5156_v26, %v1317_v10  ;;  %v1325_v60 = vsel %vm6651_vm7, %v5157_v63, %v1324_v0  ;;  %v1338_v28 = vrot.slane %v6577_v56, 5  ;;  %v1321_v43 = vsel %vm6651_vm7, %v1319_v62, %v1320_v35 }
  0x64   : > { %5914 = vmatmul.mubr.msk.bf16.vlgmr.msra.gmra.mxu0 %vm769_vm3, %v5171_v8  ;;  %v1328_v22 = vsel %vm6651_vm7, %v1326_v37, %v1327_v5  ;;  %v5158_v30 = vrot.slane %v6532_v20, 9  ;;  %v1334_v45 = vrot.slane %v6546_v52, 5  ;;  %v1333_v41 = vrot.slane %v1331_v1, 4 }
  0x65   : > { %5980 = vmatpush3.bf16.msra.mxu0 %v2558_v29  ;;  %5917 = vmatprep.mubr.msk.bf16.mxu0 %vm769_vm3, %v5172_v58  ;;  %v5159_v21 = vrot.slane %v6567_v53, 9  ;;  %v1340_v49 = vrot.slane %v1338_v28, 4  ;;  %v1341_v51 = vrot.slane %v6583_v50, 5  ;;  %v5173_v52 = vcombine.low %v1318_v7, %v1321_v43  ;;  %v9170_v29 = vld [vmem:[#allocation8_spill] sm:$0xff] }
  0x66   : > { %6158 = vmatprep.subr.msk.bf16.mxu0 %vm818_vm0, %v6720_v38  ;;  %v5174_v19 = vcombine.low %v1325_v60, %v1328_v22  ;;  %v1332_v8 = vsel %vm6651_vm7, %v5158_v30, %v1331_v1  ;;  %v1335_v50 = vsel %vm6651_vm7, %v1333_v41, %v1334_v45  ;;  %v1345_v42 = vrot.slane %v6615_v61, 5  ;;  %v9171_v30 = vld [vmem:[#allocation9_spill] sm:$0xff]  ;;  %v9172_v41 = vld [vmem:[#allocation11_spill] sm:$0xff] }
  0x67   : > { %v1339_v40 = vsel %vm6651_vm7, %v5159_v21, %v1338_v28  ;;  %v1342_v15 = vsel %vm6651_vm7, %v1340_v49, %v1341_v51  ;;  %v5161_v9 = vrot.slane %v6343_v13, 9  ;;  %v1352_v12 = vrot.slane %v6348_v16, 5  ;;  %v9173_v21 = vld [vmem:[#allocation10_spill] sm:$0xff] }
  0x68   : > { %5880 = vmatmul.mubr.msk.bf16.vlgmr.msra.gmra.mxu1 %vm769_vm3, %v5122_v57  ;;  %v1355_v57 = vrot.slane %v6351_v17, 5  ;;  %v5124_v10 = vcombine.low %v6446_v3, %v6454_v14  ;;  %v5125_v26 = vcombine.low %v6495_v2, %v6500_v18  ;;  %v5126_v63 = vcombine.low %v6532_v20, %v6537_v33  ;;  %v6948_v49 = vld [vmem:[%s6321_s29 + $0xe0] sm:$0x1] }
  0x69   : > { %5946 = vmatpush3.bf16.msra.mxu1 %v1880_v6  ;;  %5883 = vmatprep.mubr.msk.bf16.mxu1 %vm769_vm3, %v5123_v54  ;;  %v5160_v54 = vrot.slane %v6608_v36, 9  ;;  %v5127_v0 = vcombine.low %v6567_v53, %v6577_v56  ;;  %v5175_v17 = vcombine.low %v1332_v8, %v1335_v50  ;;  %v5176_v23 = vcombine.low %v1339_v40, %v1342_v15  ;;  %v9174_v8 = vld [vmem:[#allocation12_spill] sm:$0xff] }
  0x6a   : > { %6157 = vmatprep.subr.msk.bf16.mxu1 %vm818_vm0, %v6735_v31  ;;  %v1348_v27 = vrot.slane %v6618_v48, 5  ;;  %v1347_v3 = vrot.slane %v1345_v42, 4  ;;  %v5164_v14 = vrot.slane %v6472_v39, 9  ;;  %v1373_v2 = vrot.slane %v6479_v46, 5 }
  0x6b   : > { %v1376_v18 = vrot.slane %v6487_v55, 5  ;;  %v1346_v20 = vsel %vm6651_vm7, %v5160_v54, %v1345_v42  ;;  %v1353_v33 = vsel %vm6651_vm7, %v5161_v9, %v1352_v12  ;;  %v1354_v53 = vrot.slane %v1352_v12, 4  ;;  %v9175_v54 = vld [vmem:[#allocation13_spill] sm:$0xff] }
  0x6c   : > { %5918 = vmatmul.mubr.msk.bf16.gmra.mxu0 %vm769_vm3, %v5173_v52  ;;  %v6781_v56 = vsel %vm6651_vm7, %v5164_v14, %v1373_v2  ;;  %v1375_v35 = vrot.slane %v1373_v2, 4  ;;  %v5165_v5 = vrot.slane %v6513_v44, 9  ;;  %v1380_v55 = vrot.slane %v6518_v4, 5 }
  0x6d   : > { %5921 = vmatprep.mubr.msk.bf16.mxu0 %vm769_vm3, %v5174_v19  ;;  %v1359_v58 = vrot.slane %v6388_v59, 5  ;;  %v1383_v37 = vrot.slane %v6527_v11, 5  ;;  %v5166_v6 = vrot.slane %v9170_v29, 9  ;;  %v1349_v7 = vsel %vm6651_vm7, %v1347_v3, %v1348_v27  ;;  %v9176_v3 = vld [vmem:[#allocation6_spill] sm:$0xff]  ;;  %v6954_v11 = vld [vmem:[%s6321_s29 + $0xf4] sm:$0xf] }
  0x6e   : > { %v6795_v60 = vsel %vm6651_vm7, %v1375_v35, %v1376_v18  ;;  %v6799_v28 = vsel %vm6651_vm7, %v5165_v5, %v1380_v55  ;;  %v1382_v43 = vrot.slane %v1380_v55, 4  ;;  %v1387_v22 = vrot.slane %v6558_v34, 5  ;;  %9184 = vst [vmem:[#allocation10_spill] sm:$0xff] %v6954_v11 }
  0x6f   : > { %v1390_v45 = vrot.slane %v9171_v30, 5  ;;  %v5167_v52 = vrot.slane %v9173_v21, 9  ;;  %v1394_v19 = vrot.slane %v9172_v41, 5  ;;  %v1397_v50 = vrot.slane %v9174_v8, 5  ;;  %v9180_v8 = vld [vmem:[#allocation7_spill] sm:$0xff] }
  0x70   : > { %5884 = vmatmul.mubr.msk.bf16.gmra.mxu1 %vm769_vm3, %v5124_v10  ;;  %v6809_v51 = vsel %vm6651_vm7, %v1382_v43, %v1383_v37  ;;  %v6819_v15 = vsel %vm6651_vm7, %v5166_v6, %v1387_v22  ;;  %v1389_v42 = vrot.slane %v1387_v22, 4  ;;  %v1356_v27 = vsel %vm6651_vm7, %v1354_v53, %v1355_v57  ;;  %v9178_v43 = vld [vmem:[#allocation4_spill] sm:$0xff] }
  0x71   : > { %5887 = vmatprep.mubr.msk.bf16.mxu1 %vm769_vm3, %v5125_v26  ;;  %v6826_v12 = vsel %vm6651_vm7, %v5167_v52, %v1394_v19  ;;  %v1396_v10 = vrot.slane %v1394_v19, 4  ;;  %v5168_v26 = vrot.slane %v9175_v54, 9  ;;  %v1366_v14 = vrot.slane %v9176_v3, 5 }
  0x72   : > { %v6835_v2 = vsel %vm6651_vm7, %v1389_v42, %v1390_v45  ;;  %v5177_v5 = vcombine.low %v1346_v20, %v1349_v7  ;;  %v5178_v37 = vcombine.low %v1353_v33, %v1356_v27  ;;  %v1361_v6 = vrot.slane %v1359_v58, 4  ;;  %v9179_v45 = vld [vmem:[#allocation5_spill] sm:$0xff]  ;;  %v6865_v7 = vld [vmem:[%s6321_s29 + $0xc0] sm:$0xf]  ;;  %v6871_v42 = vld [vmem:[%s6321_s29 + $0xc4] sm:$0xf] }
  0x73   : > { %v6843_v35 = vsel %vm6651_vm7, %v1396_v10, %v1397_v50  ;;  %v1362_v22 = vrot.slane %v9178_v43, 5  ;;  %v5163_v52 = vrot.slane %v9179_v45, 9  ;;  %v1368_v19 = vrot.slane %v1366_v14, 4  ;;  %v6887_v27 = vld [vmem:[%s6321_s29 + $0xc8] sm:$0x1] }
  0x74   : > { %5922 = vmatmul.mubr.msk.bf16.gmra.mxu0 %vm769_vm3, %v5175_v17  ;;  %v1401_v17 = vrot.slane %v6632_v47, 5  ;;  %v5128_v33 = vcombine.low %v6608_v36, %v6615_v61  ;;  %v5129_v50 = vcombine.low %v6343_v13, %v6348_v16  ;;  %v2076_v13 = vshrl.u32 %v6865_v7, 16  ;;  %9181 = vst [vmem:[#allocation8_spill] sm:$0xff] %v6887_v27 }
  0x75   : > { %5925 = vmatprep.mubr.msk.bf16.mxu0 %vm769_vm3, %v5176_v23  ;;  %v1404_v23 = vrot.slane %v6642_v24, 5  ;;  %v9177_v24 = vld [vmem:[#allocation3_spill] sm:$0xff]  ;;  %v1367_v36 = vsel %vm6651_vm7, %v5163_v52, %v1366_v14  ;;  %v2079_v16 = vshll.u32 %v6865_v7, 16  ;;  %v2095_v43 = vshll.u32 %v6887_v27, 16  ;;  %v6903_v52 = vld [vmem:[%s6321_s29 + $0xdc] sm:$0xf] }
  0x76   : > { %v6847_v57 = vsel %vm6651_vm7, %v5168_v26, %v1401_v17  ;;  %v1403_v53 = vrot.slane %v1401_v17, 4  ;;  %v5162_v55 = vrot.slane %v9177_v24, 9  ;;  %v1363_v26 = vsel %vm6651_vm7, %v1361_v6, %v1362_v22 }
  0x77   : > { %v2089_v17 = vshrl.u32 %v6871_v42, 16  ;;  %v2081_v6 = vrot.slane %v2079_v16, 5  ;;  %v9187_v27 = vcombine.low %v6799_v28, %v6809_v51  ;;  %v9188_v28 = vcombine.low %v6472_v39, %v6479_v46 }
  0x78   : > { %5888 = vmatmul.mubr.msk.bf16.gmra.mxu1 %vm769_vm3, %v5126_v63  ;;  %v6856_v30 = vsel %vm6651_vm7, %v1403_v53, %v1404_v23  ;;  %v1360_v10 = vsel %vm6651_vm7, %v5162_v55, %v1359_v58  ;;  %v6890_v58 = vld [vmem:[%s6321_s29 + $0xcc] sm:$0xf]  ;;  %v2085_v23 = vshll.u32 %v6871_v42, 16  ;;  %v6898_v55 = vld [vmem:[%s6321_s29 + $0xd8] sm:$0xf] }
  0x79   : > { %5891 = vmatprep.mubr.msk.bf16.mxu1 %vm769_vm3, %v5127_v0  ;;  %v1369_v0 = vrot.slane %v9180_v8, 5  ;;  %v5179_v14 = vcombine.low %v1360_v10, %v1363_v26  ;;  %v2100_v22 = vshrl.u32 %v6890_v58, 16  ;;  %v5131_v8 = vcombine.low %v9179_v45, %v9176_v3 }
  0x7a   : > { %v6915_v10 = vrot.slane %v2085_v23, 5  ;;  %v2103_v26 = vshll.u32 %v6890_v58, 16  ;;  %v2124_v3 = vshrl.u32 %v6898_v55, 16  ;;  %v2127_v45 = vshll.u32 %v6898_v55, 16  ;;  %v6933_v23 = vld [vmem:[%s6321_s29 + $0xd4] sm:$0x1] }
  0x7b   : > { %v1370_v61 = vsel %vm6651_vm7, %v1368_v19, %v1369_v0  ;;  %v5130_v19 = vcombine.low %v9177_v24, %v6388_v59  ;;  %v6921_v24 = vld [vmem:[%s6321_s29 + $0xe8] sm:$0xf]  ;;  %9182 = vst [vmem:[#allocation9_spill] sm:$0xff] %v6933_v23  ;;  %v2102_v0 = vrot.slane %v2100_v22, 4  ;;  %v2119_v40 = vshll.u32 %v6933_v23, 16 }
  0x7c   : > { %5926 = vmatmul.mubr.msk.bf16.gmra.mxu0 %vm769_vm3, %v5177_v5  ;;  %v5180_v53 = vcombine.low %v1367_v36, %v1370_v61  ;;  %v6895_v5 = vld [vmem:[%s6321_s29 + $0xd0] sm:$0xf]  ;;  %v2137_v61 = vshrl.u32 %v6903_v52, 16  ;;  %v2161_v20 = vshrl.u32 %v6921_v24, 16  ;;  %v2126_v1 = vrot.slane %v2124_v3, 4 }
  0x7d   : > { %5929 = vmatprep.mubr.msk.bf16.mxu0 %vm769_vm3, %v5178_v37  ;;  %v2078_v37 = vrot.slane %v2076_v13, 4  ;;  %v2113_v36 = vshrl.u32 %v6895_v5, 16  ;;  %v2109_v59 = vshll.u32 %v6895_v5, 16  ;;  %v2133_v13 = vshll.u32 %v6903_v52, 16 }
  0x7e   : > { %v2129_v63 = vrot.slane %v2127_v45, 5  ;;  %v2139_v48 = vrot.slane %v2137_v61, 4  ;;  %v2163_v3 = vrot.slane %v2161_v20, 4  ;;  %v9186_v45 = vcombine.low %v6781_v56, %v6795_v60 }
  0x7f   : > { %v2082_v16 = vor.u32 %v2081_v6, %v2078_v37  ;;  %v2157_v37 = vshll.u32 %v6921_v24, 16  ;;  %v6941_v6 = vld [vmem:[%s6321_s29 + $0xf0] sm:$0xf]  ;;  %v6945_v22 = vrot.slane %v2109_v59, 5  ;;  %v6950_v18 = vrot.slane %v2133_v13, 5 }
  0x80   : > { %5892 = vmatmul.mubr.msk.bf16.gmra.mxu1 %vm769_vm3, %v5128_v33  ;;  %v2091_v33 = vrot.slane %v2089_v17, 4  ;;  %v6928_v17 = vrot.slane %v2095_v43, 5  ;;  %9183 = vst [vmem:[#allocation11_spill] sm:$0xff] %v6941_v6  ;;  %v2143_v23 = vshll.u32 %v6948_v49, 16  ;;  %v2181_v56 = vshll.u32 %v6954_v11, 16 }
  0x81   : > { %5895 = vmatprep.mubr.msk.bf16.mxu1 %vm769_vm3, %v5129_v50  ;;  %v6912_v50 = vld [vmem:[%s6321_s29 + $0xe4] sm:$0xf]  ;;  %v2083_v62 = vrot.slane %v2082_v16, 4  ;;  %v6961_v25 = vrot.slane %v2157_v37, 5  ;;  %v2140_v20 = vor.u32 %v2139_v48, %v6950_v18  ;;  %v6978_v60 = vsel %vm818_vm0, %v6735_v31, 0 }
  0x82   : > { %v2151_v9 = vshll.u32 %v6912_v50, 16  ;;  %v2092_v43 = vor.u32 %v2091_v33, %v6915_v10  ;;  %v2175_v33 = vshll.u32 %v6941_v6, 16  ;;  %v6990_v31 = vld [vmem:[%s6321_s29 + $0xfc] sm:$0xf] }
  0x83   : > { %v2088_v48 = vsel %vm6366_vm4, %v2083_v62, %v6915_v10  ;;  %9189 = vst [vmem:[#allocation13_spill] sm:$0xff] %v6990_v31  ;;  %v7000_v62 = vld [vmem:[%s6321_s29 + $0x100] sm:$0xf]  ;;  %v2141_v10 = vrot.slane %v2140_v20, 4  ;;  %v7022_v20 = vsel %vm818_vm0, %v6720_v38, 0 }
  0x84   : > { %5930 = vmatmul.mubr.msk.bf16.gmra.mxu0 %vm769_vm3, %v5179_v14  ;;  %v2105_v14 = vrot.slane %v2103_v26, 5  ;;  %v6959_v26 = vld [vmem:[%s6321_s29 + $0xec] sm:$0x1]  ;;  %v2093_v61 = vrot.slane %v2092_v43, 4  ;;  %v2177_v37 = vrot.slane %v2175_v33, 5  ;;  %9191 = vst [vmem:[#allocation6_spill] sm:$0xff] %v7000_v62 }
  0x85   : > { %5933 = vmatprep.mubr.msk.bf16.mxu0 %vm769_vm3, %v5180_v53  ;;  %v2148_v53 = vshrl.u32 %v6912_v50, 16  ;;  %9185 = vst [vmem:[#allocation12_spill] sm:$0xff] %v6959_v26 }
  0x86   : > { %v2106_v13 = vor.u32 %v2105_v14, %v2102_v0  ;;  %v2167_v0 = vshll.u32 %v6959_v26, 16  ;;  %v2098_v39 = vsel %vm6366_vm4, %v2093_v61, %v6928_v17  ;;  %v2205_v61 = vshll.u32 %v7000_v62, 16  ;;  %v7334_v26 = vld [vmem:[%s6321_s29 + $0x174] sm:$0xf] }
  0x87   : > { %v2150_v59 = vrot.slane %v2148_v53, 4  ;;  %v2185_v53 = vshrl.u32 %v6954_v11, 16 }
  0x88   : > { %5896 = vmatmul.mubr.msk.bf16.gmra.mxu1 %vm769_vm3, %v5130_v19  ;;  %v2115_v19 = vrot.slane %v2113_v36, 4  ;;  %v2153_v36 = vrot.slane %v2151_v9, 5  ;;  %v2130_v9 = vor.u32 %v2129_v63, %v2126_v1  ;;  %v2121_v1 = vrot.slane %v2119_v40, 5 }
  0x89   : > { %5899 = vmatprep.mubr.msk.bf16.mxu1 %vm769_vm3, %v5131_v8  ;;  %v2172_v8 = vshrl.u32 %v6941_v6, 16  ;;  %v2164_v63 = vor.u32 %v2163_v3, %v6961_v25  ;;  %v2107_v46 = vrot.slane %v2106_v13, 4  ;;  %v2187_v33 = vrot.slane %v2185_v53, 4 }
  0x8a   : > { %v2116_v16 = vor.u32 %v2115_v19, %v6945_v22  ;;  %v2154_v51 = vor.u32 %v2153_v36, %v2150_v59  ;;  %v2145_v19 = vrot.slane %v2143_v23, 5  ;;  %v2131_v40 = vrot.slane %v2130_v9, 4  ;;  %v7005_v36 = vld [vmem:[%s6321_s29 + $0xf8] sm:$0x1] }
  0x8b   : > { %v2174_v14 = vrot.slane %v2172_v8, 4  ;;  %v7002_v8 = vrot.slane %v2181_v56, 5  ;;  %v2169_v59 = vrot.slane %v2167_v0, 5  ;;  %9192 = vst [vmem:[#allocation3_spill] sm:$0xff] %v7005_v36  ;;  %v2199_v3 = vshll.u32 %v6990_v31, 16 }
  0x8c   : > { %5934 = vmatmul.mubr.msk.bf16.gmra.mxu0 %vm769_vm3, %v9186_v45  ;;  %v2117_v43 = vrot.slane %v2116_v16, 4  ;;  %v2155_v45 = vrot.slane %v2154_v51, 4  ;;  %v2165_v17 = vrot.slane %v2164_v63, 4  ;;  %v2209_v23 = vshrl.u32 %v7000_v62, 16  ;;  %v7054_v63 = vld [vmem:[%s6321_s29 + $0x108] sm:$0xf] }
  0x8d   : > { %5937 = vmatprep.mubr.msk.bf16.mxu0 %vm769_vm3, %v9187_v27  ;;  %v9190_v27 = vcombine.low %v6513_v44, %v6518_v4  ;;  %v2178_v44 = vor.u32 %v2177_v37, %v2174_v14  ;;  %v2196_v4 = vshrl.u32 %v6990_v31, 16  ;;  %v9193_v13 = vcombine.low %v6819_v15, %v6835_v2  ;;  %9197 = vst [vmem:[#allocation5_spill] sm:$0xff] %v7054_v63 }
  0x8e   : > { %v2112_v16 = vsel %vm6366_vm4, %v2107_v46, %v6945_v22  ;;  %v2122_v9 = vsel %vm6366_vm4, %v2117_v43, %v2121_v1  ;;  %v5253_v53 = vcombine.low %v6898_v55, %v6903_v52  ;;  %v9194_v56 = vcombine.low %v6826_v12, %v6843_v35  ;;  %v7040_v12 = vld [vmem:[%s6321_s29 + $0x104] sm:$0x1]  ;;  %v7069_v46 = vld [vmem:[%s6321_s29 + $0x10c] sm:$0xf]  ;;  %v7072_v43 = vld [vmem:[%s6321_s29 + $0x114] sm:$0xf] }
  0x8f   : > { %v2136_v15 = vsel %vm6366_vm4, %v2131_v40, %v6950_v18  ;;  %v2146_v2 = vsel %vm6366_vm4, %v2141_v10, %v2145_v19  ;;  %v2188_v22 = vor.u32 %v2187_v33, %v7002_v8  ;;  %v2191_v38 = vshll.u32 %v7005_v36, 16  ;;  %9195 = vst [vmem:[#allocation4_spill] sm:$0xff] %v7040_v12  ;;  %9199 = vst [vmem:[#allocation7_spill] sm:$0xff] %v7069_v46  ;;  %v7078_v10 = vld [vmem:[%s6321_s29 + $0x118] sm:$0xf] }
  0x90   : > { %5900 = vmatmul.mubr.msk.bf16.gmra.mxu1 %vm769_vm3, %v9188_v28  ;;  %v5284_v0 = vcombine.low %v2088_v48, %v2098_v39  ;;  %v7037_v14 = vrot.slane %v2178_v44, 4  ;;  %v2198_v35 = vrot.slane %v2196_v4, 4  ;;  %v2201_v37 = vrot.slane %v2199_v3, 5  ;;  %9200 = vst [vmem:[#allocation15_spill] sm:$0xff] %v7072_v43  ;;  %9201 = vst [vmem:[#allocation16_spill] sm:$0xff] %v7078_v10 }
  0x91   : > { %5903 = vmatprep.mubr.msk.bf16.mxu1 %vm769_vm3, %v9190_v27  ;;  %v9196_v28 = vcombine.low %v9170_v29, %v6558_v34  ;;  %v2160_v18 = vsel %vm6366_vm4, %v2155_v45, %v6961_v25  ;;  %v2170_v48 = vsel %vm6366_vm4, %v2165_v17, %v2169_v59  ;;  %v7051_v1 = vrot.slane %v2205_v61, 5  ;;  %v7088_v3 = vld [vmem:[%s6321_s29 + $0x120] sm:$0xf]  ;;  %v7300_v36 = vld [vmem:[%s6321_s29 + $0x16c] sm:$0xf] }
  0x92   : > { %v2211_v51 = vrot.slane %v2209_v23, 4  ;;  %v9198_v27 = vcombine.low %v9173_v21, %v9172_v41  ;;  %v7060_v34 = vcombine.low %v2112_v16, %v2122_v9  ;;  %v7062_v29 = vcombine.low %v2136_v15, %v2146_v2 }
  0x93   : > { %v2189_v19 = vrot.slane %v2188_v22, 4  ;;  %v2193_v41 = vrot.slane %v2191_v38, 5  ;;  %v2215_v40 = vshll.u32 %v7040_v12, 16  ;;  %v7080_v33 = vcombine.low %v2160_v18, %v2170_v48 }
  0x94   : > { %5938 = vmatmul.mubr.msk.bf16.gmra.mxu0 %vm769_vm3, %v9193_v13  ;;  %v2184_v59 = vsel %vm6366_vm4, %v7037_v14, %v7002_v8  ;;  %v2202_v44 = vor.u32 %v2201_v37, %v2198_v35  ;;  %v2220_v4 = vshrl.u32 %v7054_v63, 16  ;;  %v2212_v45 = vor.u32 %v2211_v51, %v7051_v1  ;;  %v7095_v13 = vld [vmem:[%s6321_s29 + $0x124] sm:$0xf]  ;;  %v7115_v14 = vld [vmem:[%s6321_s29 + $0x110] sm:$0x1] }
  0x95   : > { %5941 = vmatprep.mubr.msk.bf16.mxu0 %vm769_vm3, %v9194_v56  ;;  %v2223_v17 = vshll.u32 %v7054_v63, 16  ;;  %v2233_v23 = vshrl.u32 %v7069_v46, 16  ;;  %v2229_v61 = vshll.u32 %v7069_v46, 16  ;;  %v9202_v16 = vcombine.low %v6847_v57, %v6856_v30  ;;  %9203 = vst [vmem:[#allocation17_spill] sm:$0xff] %v7115_v14 }
  0x96   : > { %v2244_v8 = vshrl.u32 %v7072_v43, 16  ;;  %v2247_v9 = vshll.u32 %v7072_v43, 16  ;;  %v2257_v56 = vshrl.u32 %v7078_v10, 16  ;;  %v2253_v15 = vshll.u32 %v7078_v10, 16 }
  0x97   : > { %v2194_v2 = vsel %vm6366_vm4, %v2189_v19, %v2193_v41  ;;  %v7108_v22 = vrot.slane %v2215_v40, 5  ;;  %v2268_v57 = vshrl.u32 %v7088_v3, 16  ;;  %v2271_v30 = vshll.u32 %v7088_v3, 16  ;;  %v7131_v41 = vld [vmem:[%s6321_s29 + $0x130] sm:$0xf] }
  0x98   : > { %5904 = vmatmul.mubr.msk.bf16.gmra.mxu1 %vm769_vm3, %v9196_v28  ;;  %v7112_v38 = vrot.slane %v2202_v44, 4  ;;  %v2222_v35 = vrot.slane %v2220_v4, 4  ;;  %v2281_v37 = vshrl.u32 %v7095_v13, 16  ;;  %v7120_v28 = vld [vmem:[%s6321_s29 + $0x12c] sm:$0xf]  ;;  %v9204_v18 = vcombine.low %v9175_v54, %v6632_v47 }
  0x99   : > { %5907 = vmatprep.mubr.msk.bf16.mxu1 %vm769_vm3, %v9198_v27  ;;  %v7126_v48 = vrot.slane %v2212_v45, 4  ;;  %v2225_v51 = vrot.slane %v2223_v17, 5  ;;  %v7128_v27 = vrot.slane %v2229_v61, 5  ;;  %v2235_v19 = vrot.slane %v2233_v23, 4  ;;  %v7138_v44 = vld [vmem:[%s6321_s29 + $0x11c] sm:$0x1] }
  0x9a   : > { %v9205_v40 = vcombine.low %v6865_v7, %v6871_v42  ;;  %9206 = vst [vmem:[#allocation18_spill] sm:$0xff] %v7138_v44  ;;  %v2246_v4 = vrot.slane %v2244_v8, 4  ;;  %v2249_v47 = vrot.slane %v2247_v9, 5  ;;  %v7140_v54 = vrot.slane %v2253_v15, 5  ;;  %v7145_v61 = vld [vmem:[%s6321_s29 + $0x128] sm:$0x1] }
  0x9b   : > { %v2270_v45 = vrot.slane %v2268_v57, 4  ;;  %v2292_v17 = vshrl.u32 %v7120_v28, 16  ;;  %v2295_v23 = vshll.u32 %v7120_v28, 16  ;;  %9207 = vst [vmem:[#allocation19_spill] sm:$0xff] %v7145_v61  ;;  %v2283_v39 = vrot.slane %v2281_v37, 4 }
  0x9c   : > { %5942 = vmatmul.mubr.msk.bf16.gmra.mxu0 %vm769_vm3, %v9202_v16  ;;  %v2259_v16 = vrot.slane %v2257_v56, 4  ;;  %v2301_v25 = vshll.u32 %v7131_v41, 16  ;;  %v2226_v8 = vor.u32 %v2225_v51, %v2222_v35  ;;  %v2236_v9 = vor.u32 %v2235_v19, %v7128_v27  ;;  %v7157_v57 = vld [vmem:[%s9076_s1 + $0x10] sm:$0x3]  ;;  %v7175_v19 = vld [vmem:[%s6321_s29 + $0x138] sm:$0xf] }
  0x9d   : > { %5981 = vmatprep.mubr.msk.bf16.mxu0 %vm769_vm3, %v5284_v0  ;;  %v2277_v0 = vshll.u32 %v7095_v13, 16  ;;  %v2239_v56 = vshll.u32 %v7115_v14, 16  ;;  %v2263_v15 = vshll.u32 %v7138_v44, 16  ;;  %v2208_v35 = vsel %vm6366_vm4, %v7112_v38, %v7051_v1 }
  0x9e   : > { %v2250_v37 = vor.u32 %v2249_v47, %v2246_v4  ;;  %v2297_v51 = vrot.slane %v2295_v23, 5  ;;  %v7178_v4 = vrot.slane %v2301_v25, 5  ;;  %v7181_v47 = vld [vmem:[%s6321_s29 + $0x13c] sm:$0xf]  ;;  %v2316_v23 = vshrl.u32 %v7175_v19, 16 }
  0x9f   : > { %v7147_v21 = vrot.slane %v2277_v0, 5  ;;  %v2260_v0 = vor.u32 %v2259_v16, %v7140_v54  ;;  %v2241_v25 = vrot.slane %v2239_v56, 5  ;;  %v2265_v16 = vrot.slane %v2263_v15, 5 }
  0xa0   : > { %5908 = vmatmul.mubr.msk.bf16.gmra.mxu1 %vm769_vm3, %v9204_v18  ;;  %v2273_v18 = vrot.slane %v2271_v30, 5  ;;  %v5288_v30 = vcombine.low %v2184_v59, %v2194_v2  ;;  %v2287_v59 = vshll.u32 %v7145_v61, 16  ;;  %v2294_v2 = vrot.slane %v2292_v17, 4 }
  0xa1   : > { %5947 = vmatprep.mubr.msk.bf16.mxu1 %vm769_vm3, %v9205_v40  ;;  %v2305_v40 = vshrl.u32 %v7131_v41, 16  ;;  %v2284_v38 = vor.u32 %v2283_v39, %v7147_v21  ;;  %v2237_v39 = vrot.slane %v2236_v9, 4  ;;  %v2261_v17 = vrot.slane %v2260_v0, 4  ;;  %v7235_v0 = vld [vmem:[%s6321_s29 + $0x144] sm:$0xf] }
  0xa2   : > { %v2274_v1 = vor.u32 %v2273_v18, %v2270_v45  ;;  %v7195_v45 = vld [vmem:[%s6321_s29 + $0x134] sm:$0x1]  ;;  %v2251_v18 = vrot.slane %v2250_v37, 4  ;;  %v2329_v9 = vshrl.u32 %v7181_v47, 16  ;;  %v2325_v56 = vshll.u32 %v7181_v47, 16 }
  0xa3   : > { %9209 = vst [vmem:[#allocation20_spill] sm:$0xff] %v7195_v45  ;;  %v2285_v15 = vrot.slane %v2284_v38, 4  ;;  %v2311_v37 = vshll.u32 %v7195_v45, 16  ;;  %v2266_v38 = vsel %vm6366_vm4, %v2261_v17, %v2265_v16  ;;  %v7243_v17 = vld [vmem:[%s6321_s29 + $0x148] sm:$0xf] }
  0xa4   : > { %5982 = vmatmul.mubr.msk.bf16.vlgmr.msra.gmra.mxu0 %vm769_vm3, %v7060_v34  ;;  %v2218_v34 = vsel %vm6366_vm4, %v7126_v48, %v7108_v22  ;;  %v9208_v22 = vcombine.low %v6890_v58, %v6895_v5  ;;  %v2227_v48 = vrot.slane %v2226_v8, 4  ;;  %v2298_v8 = vor.u32 %v2297_v51, %v2294_v2  ;;  %v7294_v45 = vld [vmem:[%s6321_s29 + $0x168] sm:$0xf] }
  0xa5   : > { %6048 = vmatpush3.bf16.msra.mxu0 %v7022_v20  ;;  %5985 = vmatprep.mubr.msk.bf16.mxu0 %vm769_vm3, %v7062_v29  ;;  %v2307_v20 = vrot.slane %v2305_v40, 4  ;;  %v7186_v29 = vld [vmem:[%s9076_s1 + $0xe] sm:$0x3]  ;;  %v2319_v40 = vshll.u32 %v7175_v19, 16  ;;  %v2242_v2 = vsel %vm6366_vm4, %v2237_v39, %v2241_v25  ;;  %v5289_v39 = vcombine.low %v2208_v35, %v2218_v34 }
  0xa6   : > { %6160 = vmatprep.subr.msk.bf16.mxu0 %vm818_vm0, %v7157_v57  ;;  %v7230_v25 = vrot.slane %v2298_v8, 4  ;;  %v2331_v51 = vrot.slane %v2329_v9, 4  ;;  %v9211_v35 = vcombine.low %v6912_v50, %v6921_v24  ;;  %v7259_v8 = vld [vmem:[%s6321_s29 + $0x154] sm:$0xf]  ;;  %v9212_v9 = vcombine.low %v6941_v6, %v6954_v11 }
  0xa7   : > { %v9215_v11 = vcombine.low %v7054_v63, %v7069_v46 }
  0xa8   : > { %5948 = vmatmul.mubr.msk.bf16.vlgmr.msra.gmra.mxu1 %vm769_vm3, %v9208_v22  ;;  %v2289_v22 = vrot.slane %v2287_v59, 5  ;;  %v2232_v59 = vsel %vm6366_vm4, %v2227_v48, %v7128_v27  ;;  %v2318_v27 = vrot.slane %v2316_v23, 4  ;;  %v2321_v48 = vrot.slane %v2319_v40, 5 }
  0xa9   : > { %6014 = vmatpush3.bf16.msra.mxu1 %v6978_v60  ;;  %5951 = vmatprep.mubr.msk.bf16.mxu1 %vm769_vm3, %v5253_v53  ;;  %v2275_v60 = vrot.slane %v2274_v1, 4  ;;  %v2308_v53 = vor.u32 %v2307_v20, %v7178_v4  ;;  %v2256_v1 = vsel %vm6366_vm4, %v2251_v18, %v7140_v54  ;;  %v7227_v20 = vld [vmem:[%s6321_s29 + $0x140] sm:$0x1]  ;;  %v5290_v34 = vcombine.low %v2232_v59, %v2242_v2 }
  0xaa   : > { %6159 = vmatprep.subr.msk.bf16.mxu1 %vm818_vm0, %v7186_v29  ;;  %9210 = vst [vmem:[#allocation21_spill] sm:$0xff] %v7227_v20  ;;  %v2290_v16 = vsel %vm6366_vm4, %v2285_v15, %v2289_v22  ;;  %v7249_v23 = vcombine.low %v2256_v1, %v2266_v38  ;;  %v7256_v22 = vld [vmem:[%s6321_s29 + $0x150] sm:$0xf]  ;;  %v2340_v15 = vshrl.u32 %v7235_v0, 16  ;;  %v2304_v2 = vsel %vm6366_vm4, %v7230_v25, %v7178_v4 }
  0xab   : > { %v2280_v54 = vsel %vm6366_vm4, %v2275_v60, %v7147_v21  ;;  %v2309_v18 = vrot.slane %v2308_v53, 4  ;;  %v2335_v60 = vshll.u32 %v7227_v20, 16  ;;  %v2343_v53 = vshll.u32 %v7235_v0, 16 }
  0xac   : > { %5986 = vmatmul.mubr.msk.bf16.gmra.mxu0 %vm769_vm3, %v7080_v33  ;;  %v7232_v33 = vrot.slane %v2325_v56, 5  ;;  %v2322_v56 = vor.u32 %v2321_v48, %v2318_v27  ;;  %v5292_v59 = vcombine.low %v2280_v54, %v2290_v16  ;;  %v2353_v38 = vshrl.u32 %v7243_v17, 16  ;;  %v7283_v54 = vld [vmem:[%s6321_s29 + $0x160] sm:$0xf]  ;;  %v7286_v16 = vld [vmem:[%s6321_s29 + $0x14c] sm:$0x1] }
  0xad   : > { %5989 = vmatprep.mubr.msk.bf16.mxu0 %vm769_vm3, %v5288_v30  ;;  %v2313_v30 = vrot.slane %v2311_v37, 5  ;;  %v7269_v37 = vld [vmem:[%s6321_s29 + $0x15c] sm:$0xf]  ;;  %v2349_v48 = vshll.u32 %v7243_v17, 16  ;;  %9213 = vst [vmem:[#allocation22_spill] sm:$0xff] %v7286_v16  ;;  %v2377_v4 = vshrl.u32 %v7259_v8, 16 }
  0xae   : > { %v2332_v1 = vor.u32 %v2331_v51, %v7232_v33  ;;  %v2373_v51 = vshll.u32 %v7259_v8, 16  ;;  %v2388_v25 = vshrl.u32 %v7269_v37, 16  ;;  %v2391_v21 = vshll.u32 %v7269_v37, 16 }
  0xaf   : > { %v2314_v27 = vsel %vm6366_vm4, %v2309_v18, %v2313_v30  ;;  %v2323_v18 = vrot.slane %v2322_v56, 4  ;;  %v2337_v30 = vrot.slane %v2335_v60, 5  ;;  %v2342_v40 = vrot.slane %v2340_v15, 4 }
  0xb0   : > { %5952 = vmatmul.mubr.msk.bf16.gmra.mxu1 %vm769_vm3, %v9211_v35  ;;  %v2364_v35 = vshrl.u32 %v7256_v22, 16  ;;  %v2345_v20 = vrot.slane %v2343_v53, 5  ;;  %v2333_v61 = vrot.slane %v2332_v1, 4  ;;  %v2355_v44 = vrot.slane %v2353_v38, 4 }
  0xb1   : > { %5955 = vmatprep.mubr.msk.bf16.mxu1 %vm769_vm3, %v9212_v9  ;;  %v2367_v9 = vshll.u32 %v7256_v22, 16  ;;  %v2401_v14 = vshrl.u32 %v7283_v54, 16  ;;  %v2397_v12 = vshll.u32 %v7283_v54, 16  ;;  %v7302_v6 = vrot.slane %v2349_v48, 5  ;;  %v7316_v48 = vld [vmem:[%s6321_s29 + $0x158] sm:$0x1] }
  0xb2   : > { %v2366_v56 = vrot.slane %v2364_v35, 4  ;;  %v9214_v15 = vcombine.low %v6990_v31, %v7000_v62  ;;  %v2379_v53 = vrot.slane %v2377_v4, 4  ;;  %v2390_v1 = vrot.slane %v2388_v25, 4  ;;  %9216 = vst [vmem:[#allocation23_spill] sm:$0xff] %v7316_v48  ;;  %v7331_v62 = vld [vmem:[%s6321_s29 + $0x164] sm:$0x1] }
  0xb3   : > { %v2369_v60 = vrot.slane %v2367_v9, 5  ;;  %v2393_v38 = vrot.slane %v2391_v21, 5  ;;  %v2412_v35 = vshrl.u32 %v7294_v45, 16  ;;  %v2415_v9 = vshll.u32 %v7294_v45, 16  ;;  %9217 = vst [vmem:[#allocation24_spill] sm:$0xff] %v7331_v62 }
  0xb4   : > { %5990 = vmatmul.mubr.msk.bf16.gmra.mxu0 %vm769_vm3, %v5289_v39  ;;  %v2359_v39 = vshll.u32 %v7286_v16, 16  ;;  %v2421_v4 = vshll.u32 %v7300_v36, 16  ;;  %v2328_v21 = vsel %vm6366_vm4, %v2323_v18, %v7232_v33  ;;  %v7325_v25 = vrot.slane %v2397_v12, 5  ;;  %v7339_v18 = vld [vmem:[%s6321_s29 + $0x178] sm:$0xf] }
  0xb5   : > { %5993 = vmatprep.mubr.msk.bf16.mxu0 %vm769_vm3, %v5290_v34  ;;  %v7309_v34 = vrot.slane %v2373_v51, 5  ;;  %v5293_v51 = vcombine.low %v2304_v2, %v2314_v27  ;;  %v2403_v16 = vrot.slane %v2401_v14, 4  ;;  %v2346_v63 = vor.u32 %v2345_v20, %v2342_v40 }
  0xb6   : > { %v2356_v46 = vor.u32 %v2355_v44, %v7302_v6  ;;  %v2361_v31 = vrot.slane %v2359_v39, 5  ;;  %v2370_v2 = vor.u32 %v2369_v60, %v2366_v56  ;;  %v2383_v33 = vshll.u32 %v7316_v48, 16  ;;  %v7349_v39 = vld [vmem:[%s6321_s29 + $0x170] sm:$0x1] }
  0xb7   : > { %v2380_v27 = vor.u32 %v2379_v53, %v7309_v34  ;;  %v2394_v12 = vor.u32 %v2393_v38, %v2390_v1  ;;  %v2414_v14 = vrot.slane %v2412_v35, 4  ;;  %v7343_v44 = vrot.slane %v2421_v4, 5 }
  0xb8   : > { %5956 = vmatmul.mubr.msk.bf16.gmra.mxu1 %vm769_vm3, %v9214_v15  ;;  %v2425_v15 = vshrl.u32 %v7300_v36, 16  ;;  %v2404_v40 = vor.u32 %v2403_v16, %v7325_v25  ;;  %v2436_v56 = vshrl.u32 %v7334_v26, 16  ;;  %v2439_v60 = vshll.u32 %v7334_v26, 16 }
  0xb9   : > { %5959 = vmatprep.mubr.msk.bf16.mxu1 %vm769_vm3, %v9215_v11  ;;  %v2338_v11 = vsel %vm6366_vm4, %v2333_v61, %v2337_v30  ;;  %v2417_v61 = vrot.slane %v2415_v9, 5  ;;  %v2407_v30 = vshll.u32 %v7331_v62, 16  ;;  %v2347_v1 = vrot.slane %v2346_v63, 4 }
  0xba   : > { %v2427_v20 = vrot.slane %v2425_v15, 4  ;;  %v5294_v53 = vcombine.low %v2328_v21, %v2338_v11  ;;  %v2445_v38 = vshll.u32 %v7339_v18, 16  ;;  %v9218_v35 = vcombine.low %v7072_v43, %v7078_v10 }
  0xbb   : > { %v2371_v16 = vrot.slane %v2370_v2, 4  ;;  %v2381_v9 = vrot.slane %v2380_v27, 4  ;;  %v2385_v15 = vrot.slane %v2383_v33, 5  ;;  %v9219_v4 = vcombine.low %v7088_v3, %v7095_v13  ;;  %v7370_v27 = vld [vmem:[%s6321_s29 + $0x17c] sm:$0x1] }
  0xbc   : > { %5994 = vmatmul.mubr.msk.bf16.gmra.mxu0 %vm769_vm3, %v7249_v23  ;;  %v2449_v23 = vshrl.u32 %v7339_v18, 16  ;;  %v2395_v63 = vrot.slane %v2394_v12, 4  ;;  %v2418_v21 = vor.u32 %v2417_v61, %v2414_v14  ;;  %v2428_v11 = vor.u32 %v2427_v20, %v7343_v44 }
  0xbd   : > { %5997 = vmatprep.mubr.msk.bf16.mxu0 %vm769_vm3, %v5292_v59  ;;  %v2357_v59 = vrot.slane %v2356_v46, 4  ;;  %v2431_v48 = vshll.u32 %v7349_v39, 16  ;;  %v2405_v62 = vrot.slane %v2404_v40, 4  ;;  %v2409_v43 = vrot.slane %v2407_v30, 5 }
  0xbe   : > { %v2438_v10 = vrot.slane %v2436_v56, 4  ;;  %v5261_v46 = vcombine.low %v7175_v19, %v7181_v47  ;;  %v5262_v2 = vcombine.low %v7235_v0, %v7243_v17  ;;  %v7372_v33 = vrot.slane %v2445_v38, 5 }
  0xbf   : > { %v2451_v12 = vrot.slane %v2449_v23, 4  ;;  %v2352_v14 = vsel %vm6366_vm4, %v2347_v1, %v7302_v6  ;;  %v2362_v61 = vsel %vm6366_vm4, %v2357_v59, %v2361_v31  ;;  %v2376_v20 = vsel %vm6366_vm4, %v2371_v16, %v7309_v34 }
  0xc0   : > { %5960 = vmatmul.mubr.msk.bf16.gmra.mxu1 %vm769_vm3, %v9218_v35  ;;  %v2441_v35 = vrot.slane %v2439_v60, 5  ;;  %v2386_v40 = vsel %vm6366_vm4, %v2381_v9, %v2385_v15  ;;  %v2400_v30 = vsel %vm6366_vm4, %v2395_v63, %v7325_v25  ;;  %v2419_v56 = vrot.slane %v2418_v21, 4  ;;  %v7418_v63 = vld [vmem:[%s6321_s29 + $0x184] sm:$0xf] }
  0xc1   : > { %5963 = vmatprep.mubr.msk.bf16.mxu1 %vm769_vm3, %v9219_v4  ;;  %v2429_v60 = vrot.slane %v2428_v11, 4  ;;  %v2433_v23 = vrot.slane %v2431_v48, 5  ;;  %v2410_v6 = vsel %vm6366_vm4, %v2405_v62, %v2409_v43  ;;  %v2455_v34 = vshll.u32 %v7370_v27, 16  ;;  %v7415_v4 = vld [vmem:[%s6321_s29 + $0x180] sm:$0xf] }
  0xc2   : > { %v2442_v31 = vor.u32 %v2441_v35, %v2438_v10  ;;  %v2771_v1 = vrot.slane %v6871_v42, 5  ;;  %v5263_v38 = vcombine.low %v7256_v22, %v7259_v8  ;;  %v5264_v25 = vcombine.low %v7269_v37, %v7283_v54  ;;  %v9221_v35 = vld [vmem:[#allocation8_spill] sm:$0xff] }
  0xc3   : > { %v2452_v48 = vor.u32 %v2451_v12, %v7372_v33  ;;  %v5296_v62 = vcombine.low %v2376_v20, %v2386_v40  ;;  %v5265_v42 = vcombine.low %v7294_v45, %v7300_v36  ;;  %v2778_v10 = vrot.slane %v6895_v5, 5  ;;  %v7427_v40 = vld [vmem:[%s6321_s29 + $0x190] sm:$0xf] }
  0xc4   : > { %5998 = vmatmul.mubr.msk.bf16.gmra.mxu0 %vm769_vm3, %v5293_v51  ;;  %v5295_v51 = vcombine.low %v2352_v14, %v2362_v61  ;;  %v5297_v59 = vcombine.low %v2400_v30, %v2410_v6  ;;  %v2424_v16 = vsel %vm6366_vm4, %v2419_v56, %v7343_v44  ;;  %v2434_v9 = vsel %vm6366_vm4, %v2429_v60, %v2433_v23  ;;  %v9223_v44 = vld [vmem:[#allocation9_spill] sm:$0xff] }
  0xc5   : > { %6001 = vmatprep.mubr.msk.bf16.mxu0 %vm769_vm3, %v5294_v53  ;;  %v9220_v53 = vcombine.low %v7120_v28, %v7131_v41  ;;  %v5316_v15 = vrot.slane %v6865_v7, 9  ;;  %v2443_v21 = vrot.slane %v2442_v31, 4  ;;  %v2457_v11 = vrot.slane %v2455_v34, 5 }
  0xc6   : > { %v2773_v5 = vrot.slane %v2771_v1, 4  ;;  %v2774_v12 = vrot.slane %v9221_v35, 5  ;;  %v2453_v14 = vrot.slane %v2452_v48, 4  ;;  %v5317_v61 = vrot.slane %v6890_v58, 9  ;;  %v9239_v58 = vld [vmem:[#allocation4_spill] sm:$0xff] }
  0xc7   : > { %v2781_v20 = vrot.slane %v9223_v44, 5  ;;  %v2780_v30 = vrot.slane %v2778_v10, 4  ;;  %v3584_v60 = vshll.u32 %v7427_v40, 16  ;;  %v3588_v23 = vshrl.u32 %v7427_v40, 16 }
  0xc8   : > { %5964 = vmatmul.mubr.msk.bf16.gmra.mxu1 %vm769_vm3, %v9220_v53  ;;  %v5298_v6 = vcombine.low %v2424_v16, %v2434_v9  ;;  %v7436_v34 = vsel %vm6651_vm7, %v5316_v15, %v2771_v1  ;;  %v2448_v53 = vsel %vm6366_vm4, %v2443_v21, %v7372_v33  ;;  %v7447_v35 = vsel %vm6651_vm7, %v2773_v5, %v2774_v12  ;;  %v7554_v12 = vld [vmem:[%s6321_s29 + $0x1b0] sm:$0xf] }
  0xc9   : > { %5967 = vmatprep.mubr.msk.bf16.mxu1 %vm769_vm3, %v5261_v46  ;;  %v7422_v46 = vld [vmem:[%s6321_s29 + $0x18c] sm:$0xf]  ;;  %v2785_v1 = vrot.slane %v6903_v52, 5  ;;  %v2458_v16 = vsel %vm6366_vm4, %v2453_v14, %v2457_v11  ;;  %v9121_v33 = vrot.slane %v7427_v40, 5  ;;  %v7461_v15 = vsel %vm6651_vm7, %v2780_v30, %v2781_v20  ;;  %v7473_v14 = vld [vmem:[%s6321_s29 + $0x198] sm:$0xf] }
  0xca   : > { %9222 = vst [vmem:[#allocation8_spill] sm:$0xff] %v7422_v46  ;;  %v3575_v7 = vshrl.u32 %v7422_v46, 16  ;;  %v3578_v56 = vshll.u32 %v7422_v46, 16  ;;  %v7463_v5 = vrot.slane %v3584_v60, 5  ;;  %v3590_v52 = vrot.slane %v3588_v23, 4 }
  0xcb   : > { %v5299_v44 = vcombine.low %v2448_v53, %v2458_v16  ;;  %v2787_v20 = vrot.slane %v2785_v1, 4  ;;  %v7489_v60 = vsel %vm818_vm0, %v7186_v29, 0  ;;  %v5319_v29 = vrot.slane %v6912_v50, 9  ;;  %v7564_v11 = vld [vmem:[%s6321_s29 + $0x1b4] sm:$0xf] }
  0xcc   : > { %6002 = vmatmul.mubr.msk.bf16.gmra.mxu0 %vm769_vm3, %v5295_v51  ;;  %v3577_v9 = vrot.slane %v3575_v7, 4  ;;  %v3580_v21 = vrot.slane %v3578_v56, 5  ;;  %9225 = vst [vmem:[#allocation9_spill] sm:$0xff] %v7463_v5  ;;  %v2788_v7 = vrot.slane %v6948_v49, 5  ;;  %v3591_v53 = vor.u32 %v3590_v52, %v7463_v5  ;;  %v7507_v52 = vld [vmem:[%s6321_s29 + $0x1a4] sm:$0xf] }
  0xcd   : > { %6005 = vmatprep.mubr.msk.bf16.mxu0 %vm769_vm3, %v5296_v62  ;;  %v7455_v62 = vsel %vm6651_vm7, %v5317_v61, %v2778_v10  ;;  %v7476_v61 = vld [vmem:[%s6321_s29 + $0x19c] sm:$0xf]  ;;  %v7494_v49 = vsel %vm818_vm0, %v7157_v57, 0  ;;  %v3626_v50 = vshll.u32 %v7507_v52, 16  ;;  %v9231_v51 = vld [vmem:[#allocation6_spill] sm:$0xff] }
  0xce   : > { %v3581_v23 = vor.u32 %v3580_v21, %v3577_v9  ;;  %v9227_v9 = vld [vmem:[#allocation12_spill] sm:$0xff]  ;;  %v7512_v57 = vsel %vm6651_vm7, %v2787_v20, %v2788_v7  ;;  %v7529_v7 = vrot.slane %v3591_v53, 4  ;;  %v2806_v56 = vrot.slane %v9231_v51, 5  ;;  %v9232_v53 = vld [vmem:[#allocation11_spill] sm:$0xff]  ;;  %v9243_v5 = vld [vmem:[#allocation5_spill] sm:$0xff] }
  0xcf   : > { %v2795_v21 = vrot.slane %v9227_v9, 5 }
  0xd0   : > { %5968 = vmatmul.mubr.msk.bf16.gmra.mxu1 %vm769_vm3, %v5262_v2  ;;  %v5318_v2 = vrot.slane %v6898_v55, 9  ;;  %v7485_v55 = vrot.slane %v9121_v33, 4  ;;  %v7527_v20 = vrot.slane %v3581_v23, 4  ;;  %v2808_v43 = vrot.slane %v2806_v56, 4 }
  0xd1   : > { %5971 = vmatprep.mubr.msk.bf16.mxu1 %vm769_vm3, %v5263_v38  ;;  %v2792_v38 = vrot.slane %v6921_v24, 5  ;;  %v9234_v24 = vld [vmem:[#allocation3_spill] sm:$0xff] }
  0xd2   : > { %9226 = vst [vmem:[#allocation14_spill] sm:$0xff] %v7485_v55  ;;  %v7501_v16 = vsel %vm6651_vm7, %v5318_v2, %v2785_v1  ;;  %v3623_v1 = vshrl.u32 %v7507_v52, 16  ;;  %v9228_v2 = vld [vmem:[#allocation10_spill] sm:$0xff]  ;;  %9229 = vst [vmem:[#allocation12_spill] sm:$0xff] %v7527_v20  ;;  %v2802_v48 = vrot.slane %v9234_v24, 5  ;;  %v9244_v20 = vcombine.low %v7436_v34, %v7447_v35  ;;  %v9256_v55 = vld [vmem:[#allocation19_spill] sm:$0xff] }
  0xd3   : > { %v2794_v33 = vrot.slane %v2792_v38, 4  ;;  %v2799_v10 = vrot.slane %v9228_v2, 5  ;;  %9230 = vst [vmem:[#allocation10_spill] sm:$0xff] %v7529_v7  ;;  %v5320_v2 = vrot.slane %v9232_v53, 9  ;;  %v2809_v7 = vrot.slane %v9239_v58, 5 }
  0xd4   : > { %6006 = vmatmul.mubr.msk.bf16.gmra.mxu0 %vm769_vm3, %v5297_v59  ;;  %v7515_v59 = vld [vmem:[%s6321_s29 + $0x1a8] sm:$0xf]  ;;  %v7550_v30 = vrot.slane %v3623_v1, 4  ;;  %v7570_v24 = vld [vmem:[%s6321_s29 + $0x1bc] sm:$0xf]  ;;  %v9241_v58 = vcombine.low %v7415_v4, %v7418_v63 }
  0xd5   : > { %6009 = vmatprep.mubr.msk.bf16.mxu0 %vm769_vm3, %v5298_v6  ;;  %v3632_v9 = vshll.u32 %v7515_v59, 16  ;;  %v3636_v6 = vshrl.u32 %v7515_v59, 16  ;;  %v7548_v51 = vsel %vm6651_vm7, %v2794_v33, %v2795_v21  ;;  %v9238_v21 = vld [vmem:[#allocation13_spill] sm:$0xff]  ;;  %v3671_v53 = vshrl.u32 %v7570_v24, 16  ;;  %v9240_v33 = vld [vmem:[#allocation7_spill] sm:$0xff] }
  0xd6   : > { %9233 = vst [vmem:[#allocation6_spill] sm:$0xff] %v7550_v30  ;;  %v5321_v1 = vrot.slane %v9238_v21, 9  ;;  %v2813_v21 = vrot.slane %v9240_v33, 5  ;;  %v7610_v32 = vsel %vm6651_vm7, %v2808_v43, %v2809_v7  ;;  %v7623_v43 = vld [vmem:[%s6321_s29 + $0x1c8] sm:$0xf]  ;;  %v9246_v7 = vld [vmem:[#allocation16_spill] sm:$0xff] }
  0xd7   : > { %v7560_v23 = vrot.slane %v3636_v6, 4  ;;  %v7580_v6 = vld [vmem:[%s6321_s29 + $0x1c0] sm:$0xf]  ;;  %v7626_v33 = vrot.slane %v3671_v53, 4  ;;  %v7635_v35 = vld [vmem:[%s6321_s29 + $0x1cc] sm:$0xf] }
  0xd8   : > { %5972 = vmatmul.mubr.msk.bf16.gmra.mxu1 %vm769_vm3, %v5264_v25  ;;  %v7541_v25 = vsel %vm6651_vm7, %v5319_v29, %v2792_v38  ;;  %v7556_v38 = vrot.slane %v3626_v50, 5  ;;  %v7558_v29 = vrot.slane %v3632_v9, 5  ;;  %v7577_v9 = vsel %vm6651_vm7, %v5320_v2, %v2799_v10  ;;  %v7642_v30 = vld [vmem:[%s6321_s29 + $0x1d4] sm:$0xf] }
  0xd9   : > { %5975 = vmatprep.mubr.msk.bf16.mxu1 %vm769_vm3, %v5265_v42  ;;  %v2801_v42 = vrot.slane %v2799_v10, 4  ;;  %9237 = vst [vmem:[#allocation25_spill] sm:$0xff] %v7560_v23  ;;  %v3674_v50 = vshll.u32 %v7570_v24, 16  ;;  %v3680_v10 = vshll.u32 %v7580_v6, 16  ;;  %v3684_v2 = vshrl.u32 %v7580_v6, 16  ;;  %9247 = vst [vmem:[#allocation13_spill] sm:$0xff] %v7626_v33 }
  0xda   : > { %9235 = vst [vmem:[#allocation11_spill] sm:$0xff] %v7556_v38  ;;  %9236 = vst [vmem:[#allocation3_spill] sm:$0xff] %v7558_v29  ;;  %v2820_v29 = vrot.slane %v9246_v7, 5  ;;  %v2827_v53 = vrot.slane %v7095_v13, 5  ;;  %v9253_v7 = vld [vmem:[#allocation18_spill] sm:$0xff] }
  0xdb   : > { %v7628_v38 = vrot.slane %v3674_v50, 5  ;;  %v7632_v34 = vrot.slane %v3684_v2, 4 }
  0xdc   : > { %6010 = vmatmul.mubr.msk.bf16.gmra.mxu0 %vm769_vm3, %v5299_v44  ;;  %v7590_v44 = vsel %vm6651_vm7, %v2801_v42, %v2802_v48  ;;  %v9242_v48 = vcombine.low %v7334_v26, %v7339_v18  ;;  %v7606_v42 = vsel %vm6651_vm7, %v5321_v1, %v2806_v56  ;;  %v2815_v56 = vrot.slane %v2813_v21, 4  ;;  %v9245_v1 = vld [vmem:[#allocation17_spill] sm:$0xff] }
  0xdd   : > { %6049 = vmatprep.mubr.msk.bf16.mxu0 %vm769_vm3, %v9241_v58  ;;  %v5322_v58 = vrot.slane %v9243_v5, 9  ;;  %v2816_v23 = vrot.slane %v9245_v1, 5  ;;  %9248 = vst [vmem:[#allocation4_spill] sm:$0xff] %v7628_v38  ;;  %v7630_v5 = vrot.slane %v3680_v10, 5  ;;  %9250 = vst [vmem:[#allocation5_spill] sm:$0xff] %v7632_v34  ;;  %v9252_v10 = vld [vmem:[#allocation15_spill] sm:$0xff]  ;;  %v9254_v1 = vcombine.low %v7422_v46, %v7427_v40 }
  0xde   : > { %9251 = vst [vmem:[#allocation17_spill] sm:$0xff] %v7642_v30  ;;  %v5323_v2 = vrot.slane %v9252_v10, 9  ;;  %v2823_v34 = vrot.slane %v9253_v7, 5  ;;  %v9255_v10 = vcombine.low %v7473_v14, %v7476_v61  ;;  %v2829_v33 = vrot.slane %v2827_v53, 4 }
  0xdf   : > { %9249 = vst [vmem:[#allocation7_spill] sm:$0xff] %v7630_v5  ;;  %v7647_v50 = vsel %vm6651_vm7, %v5322_v58, %v2813_v21  ;;  %v7652_v5 = vld [vmem:[%s6321_s29 + $0x1d8] sm:$0xf]  ;;  %v7661_v13 = vsel %vm6651_vm7, %v2815_v56, %v2816_v23  ;;  %v3722_v21 = vshll.u32 %v7642_v30, 16  ;;  %v5324_v56 = vrot.slane %v7088_v3, 9 }
  0xe0   : > { %5976 = vmatmul.mubr.msk.bf16.gmra.mxu1 %vm769_vm3, %v9242_v48  ;;  %v2822_v48 = vrot.slane %v2820_v29, 4  ;;  %v3728_v58 = vshll.u32 %v7652_v5, 16  ;;  %v2834_v46 = vrot.slane %v7131_v41, 5  ;;  %v7686_v3 = vsel %vm6651_vm7, %v5323_v2, %v2820_v29  ;;  %v7692_v41 = vld [vmem:[%s6321_s29 + $0x1e0] sm:$0xf] }
  0xe1   : > { %6015 = vmatprep.mubr.msk.bf16.mxu1 %vm769_vm3, %v9244_v20  ;;  %v3719_v20 = vshrl.u32 %v7642_v30, 16  ;;  %9258 = vst [vmem:[#allocation16_spill] sm:$0xff] %v7692_v41  ;;  %v7705_v2 = vrot.slane %v3722_v21, 5  ;;  %v7710_v23 = vld [vmem:[%s6321_s29 + $0x1e4] sm:$0xf]  ;;  %v9276_v7 = vcombine.low %v7577_v9, %v7590_v44  ;;  %v9284_v9 = vcombine.low %v7570_v24, %v7580_v6 }
  0xe2   : > { %9261 = vst [vmem:[#allocation18_spill] sm:$0xff] %v7710_v23  ;;  %v7727_v21 = vld [vmem:[%s6321_s29 + $0x1f0] sm:$0xf]  ;;  %v7804_v44 = vld [vmem:[%s6321_s29 + $0x204] sm:$0xf] }
  0xe3   : > { %v7703_v29 = vrot.slane %v3719_v20, 4  ;;  %v2836_v20 = vrot.slane %v2834_v46, 4 }
  0xe4   : > { %6050 = vmatmul.mubr.msk.bf16.vlgmr.msra.gmra.mxu0 %vm769_vm3, %v9254_v1 }
  0xe5   : > { %6116 = vmatpush3.bf16.msra.mxu0 %v7494_v49  ;;  %6053 = vmatprep.mubr.msk.bf16.mxu0 %vm769_vm3, %v9255_v10  ;;  %v2830_v49 = vrot.slane %v9256_v55, 5  ;;  %v9257_v10 = vcombine.low %v7455_v62, %v7461_v15  ;;  %v3732_v55 = vshrl.u32 %v7652_v5, 16  ;;  %v9259_v62 = vcombine.low %v7501_v16, %v7512_v57  ;;  %v9262_v57 = vld [vmem:[#allocation20_spill] sm:$0xff] }
  0xe6   : > { %v7701_v15 = vsel %vm6651_vm7, %v2822_v48, %v2823_v34  ;;  %v5325_v16 = vrot.slane %v7120_v28, 9  ;;  %v7720_v48 = vld [vmem:[%s6321_s29 + $0x1ec] sm:$0xf]  ;;  %9264 = vst [vmem:[#allocation20_spill] sm:$0xff] %v7727_v21  ;;  %v3780_v28 = vshrl.u32 %v7727_v21, 16 }
  0xe7   : > { %9263 = vst [vmem:[#allocation19_spill] sm:$0xff] %v7720_v48  ;;  %v7724_v34 = vsel %vm6651_vm7, %v2829_v33, %v2830_v49  ;;  %v3770_v38 = vshll.u32 %v7720_v48, 16  ;;  %v9266_v33 = vcombine.low %v7507_v52, %v7515_v59  ;;  %v9273_v49 = vcombine.low %v7541_v25, %v7548_v51 }
  0xe8   : > { %6016 = vmatmul.mubr.msk.bf16.vlgmr.msra.gmra.mxu1 %vm769_vm3, %v9257_v10  ;;  %v7707_v10 = vrot.slane %v3728_v58, 5  ;;  %v3767_v58 = vshrl.u32 %v7720_v48, 16  ;;  %v7744_v1 = vpop.f32.mrf.mxu0  ;;  %v7791_v25 = vrot.slane %v3780_v28, 4  ;;  %v2848_v28 = vrot.slane %v7243_v17, 5 }
  0xe9   : > { %6082 = vmatpush3.bf16.msra.mxu1 %v7489_v60  ;;  %6019 = vmatprep.mubr.msk.bf16.mxu1 %vm769_vm3, %v9259_v62  ;;  %v7715_v60 = vsel %vm6651_vm7, %v5324_v56, %v2827_v53  ;;  %v2837_v62 = vrot.slane %v9262_v57, 5  ;;  %v7733_v56 = vrot.slane %v3732_v55, 4  ;;  %v2841_v57 = vrot.slane %v7181_v47, 5  ;;  %9267 = vst [vmem:[#allocation27_spill] sm:$0xff] %v7744_v1  ;;  %v7774_v53 = vld [vmem:[%s6321_s29 + $0x1fc] sm:$0xf] }
  0xea   : > { %9260 = vst [vmem:[#allocation15_spill] sm:$0xff] %v7707_v10  ;;  %v3776_v55 = vshll.u32 %v7727_v21, 16  ;;  %v9268_v47 = vcombine.low %v7554_v12, %v7564_v11  ;;  %v7760_v1 = vsel %vm6651_vm7, %v5325_v16, %v2834_v46  ;;  %v7766_v10 = vrot.slane %v3767_v58, 4  ;;  %9272 = vst [vmem:[#allocation31_spill] sm:$0xff] %v7774_v53  ;;  %v7793_v51 = vpop.f32.mrf.mxu0 }
  0xeb   : > { %9265 = vst [vmem:[#allocation26_spill] sm:$0xff] %v7733_v56  ;;  %v7764_v56 = vsel %vm6651_vm7, %v2836_v20, %v2837_v62  ;;  %v5326_v16 = vrot.slane %v7175_v19, 9  ;;  %v2843_v62 = vrot.slane %v2841_v57, 4  ;;  %v9275_v20 = vld [vmem:[#allocation21_spill] sm:$0xff]  ;;  %9278 = vst [vmem:[#allocation33_spill] sm:$0xff] %v7791_v25  ;;  %v9280_v19 = vld [vmem:[#allocation24_spill] sm:$0xff] }
  0xec   : > { %6054 = vmatmul.mubr.msk.bf16.gmra.mxu0 %vm769_vm3, %v9266_v33  ;;  %9269 = vst [vmem:[#allocation28_spill] sm:$0xff] %v7766_v10  ;;  %v7771_v33 = vld [vmem:[%s6321_s29 + $0x1f8] sm:$0xf]  ;;  %v2844_v58 = vrot.slane %v9275_v20, 5  ;;  %9279 = vst [vmem:[#allocation34_spill] sm:$0xff] %v7793_v51  ;;  %v5327_v17 = vrot.slane %v7235_v0, 9  ;;  %v9286_v0 = vcombine.low %v7623_v43, %v7635_v35 }
  0xed   : > { %6057 = vmatprep.mubr.msk.bf16.mxu0 %vm769_vm3, %v9268_v47  ;;  %v7768_v47 = vrot.slane %v3770_v38, 5  ;;  %9271 = vst [vmem:[#allocation30_spill] sm:$0xff] %v7771_v33  ;;  %v7780_v46 = vpop.f32.mrf.mxu1  ;;  %v5329_v38 = vrot.slane %v7269_v37, 9  ;;  %9281 = vst [vmem:[#allocation24_spill] sm:$0xff] %v7804_v44  ;;  %v7819_v37 = vsel %vm6651_vm7, %v5326_v16, %v2841_v57  ;;  %v3815_v57 = vshrl.u32 %v7804_v44, 16 }
  0xee   : > { %9274 = vst [vmem:[#allocation32_spill] sm:$0xff] %v7780_v46  ;;  %v2865_v46 = vrot.slane %v9280_v19, 5  ;;  %v7823_v10 = vsel %vm6651_vm7, %v2843_v62, %v2844_v58  ;;  %v2855_v16 = vrot.slane %v7259_v8, 5  ;;  %v9287_v58 = vld [vmem:[#allocation22_spill] sm:$0xff]  ;;  %v5331_v8 = vrot.slane %v7334_v26, 9 }
  0xef   : > { %9270 = vst [vmem:[#allocation29_spill] sm:$0xff] %v7768_v47  ;;  %v7789_v47 = vrot.slane %v3776_v55, 5  ;;  %v7809_v55 = vld [vmem:[%s6321_s29 + $0x208] sm:$0xf]  ;;  %v7815_v20 = vpop.f32.mrf.mxu1  ;;  %v2876_v25 = vrot.slane %v7339_v18, 5 }
  0xf0   : > { %6020 = vmatmul.mubr.msk.bf16.gmra.mxu1 %vm769_vm3, %v9273_v49  ;;  %v2862_v49 = vrot.slane %v7283_v54, 5  ;;  %9282 = vst [vmem:[#allocation35_spill] sm:$0xff] %v7809_v55  ;;  %9283 = vst [vmem:[#allocation36_spill] sm:$0xff] %v7815_v20  ;;  %v5328_v20 = vrot.slane %v7256_v22, 9  ;;  %v2879_v22 = vrot.slane %v7370_v27, 5 }
  0xf1   : > { %6023 = vmatprep.mubr.msk.bf16.mxu1 %vm769_vm3, %v9276_v7  ;;  %9277 = vst [vmem:[#allocation21_spill] sm:$0xff] %v7789_v47  ;;  %v2851_v7 = vrot.slane %v9287_v58, 5  ;;  %v7858_v58 = vpop.f32.mrf.mxu1  ;;  %v9290_v47 = vcombine.low %v7647_v50, %v7661_v13  ;;  %v7880_v18 = vld [vmem:[%s6321_s29 + $0x210] sm:$0xf]  ;;  %v2869_v50 = vrot.slane %v7300_v36, 5  ;;  %v7885_v13 = vsel %vm6651_vm7, %v5331_v8, %v2876_v25 }
  0xf2   : > { %v7813_v54 = vsel %vm6651_vm7, %v5329_v38, %v2862_v49  ;;  %v2864_v19 = vrot.slane %v2862_v49, 4  ;;  %v7831_v38 = vpop.f32.mrf.mxu0  ;;  %v3818_v49 = vshll.u32 %v7804_v44, 16  ;;  %9289 = vst [vmem:[#allocation22_spill] sm:$0xff] %v7858_v58  ;;  %v7903_v36 = vsel %vm6651_vm7, %v5328_v20, %v2855_v16  ;;  %v7906_v8 = vld [vmem:[%s6321_s29 + $0x214] sm:$0xf] }
  0xf3   : > { %9285 = vst [vmem:[#allocation37_spill] sm:$0xff] %v7831_v38  ;;  %v3828_v38 = vshrl.u32 %v7809_v55, 16 }
  0xf4   : > { %6058 = vmatmul.mubr.msk.bf16.gmra.mxu0 %vm769_vm3, %v9284_v9  ;;  %v7838_v62 = vsel %vm6651_vm7, %v2864_v19, %v2865_v46  ;;  %v2850_v46 = vrot.slane %v2848_v28, 4  ;;  %v3824_v19 = vshll.u32 %v7809_v55, 16  ;;  %v7862_v9 = vsel %vm6651_vm7, %v5327_v17, %v2848_v28  ;;  %v9293_v28 = vld [vmem:[#allocation23_spill] sm:$0xff] }
  0xf5   : > { %6061 = vmatprep.mubr.msk.bf16.mxu0 %vm769_vm3, %v9286_v0  ;;  %v9288_v0 = vcombine.low %v7606_v42, %v7610_v32  ;;  %v7871_v32 = vpop.f32.mrf.mxu0  ;;  %v7873_v42 = vrot.slane %v3815_v57, 4  ;;  %v2858_v17 = vrot.slane %v9293_v28, 5  ;;  %v7877_v26 = vrot.slane %v3818_v49, 5  ;;  %v7897_v49 = vld [vmem:[%s6321_s29 + $0x21c] sm:$0xf] }
  0xf6   : > { %9291 = vst [vmem:[#allocation38_spill] sm:$0xff] %v7871_v32  ;;  %v7889_v57 = vsel %vm6651_vm7, %v2850_v46, %v2851_v7  ;;  %v7891_v58 = vrot.slane %v3824_v19, 5  ;;  %v7893_v28 = vrot.slane %v3828_v38, 4  ;;  %v3863_v7 = vshrl.u32 %v7897_v49, 16  ;;  %v7960_v32 = vld [vmem:[%s6321_s29 + $0x22c] sm:$0xf] }
  0xf7   : > { %9292 = vst [vmem:[#allocation39_spill] sm:$0xff] %v7873_v42  ;;  %9294 = vst [vmem:[#allocation23_spill] sm:$0xff] %v7877_v26  ;;  %v7899_v26 = vpop.f32.mrf.mxu1  ;;  %v3866_v46 = vshll.u32 %v7897_v49, 16  ;;  %v9298_v19 = vcombine.low %v7642_v30, %v7652_v5  ;;  %v7977_v42 = vld [vmem:[%s6321_s29 + $0x234] sm:$0xf] }
  0xf8   : > { %6024 = vmatmul.mubr.msk.bf16.gmra.mxu1 %vm769_vm3, %v9288_v0  ;;  %v2857_v0 = vrot.slane %v2855_v16, 4  ;;  %9295 = vst [vmem:[#allocation40_spill] sm:$0xff] %v7891_v58  ;;  %9296 = vst [vmem:[#allocation41_spill] sm:$0xff] %v7893_v28  ;;  %v7957_v28 = vld [vmem:[%s6321_s29 + $0x228] sm:$0xf] }
  0xf9   : > { %6027 = vmatprep.mubr.msk.bf16.mxu1 %vm769_vm3, %v9290_v47  ;;  %v2878_v47 = vrot.slane %v2876_v25, 4  ;;  %9297 = vst [vmem:[#allocation42_spill] sm:$0xff] %v7899_v26  ;;  %v7909_v25 = vld [vmem:[%s6321_s29 + $0x220] sm:$0xf]  ;;  %v7921_v27 = vpop.f32.mrf.mxu0 }
  0xfa   : > { %9299 = vst [vmem:[#allocation43_spill] sm:$0xff] %v7921_v27  ;;  %v7925_v20 = vsel %vm6651_vm7, %v2857_v0, %v2858_v17  ;;  %v3872_v16 = vshll.u32 %v7909_v25, 16  ;;  %v3876_v26 = vshrl.u32 %v7909_v25, 16  ;;  %v2871_v0 = vrot.slane %v2869_v50, 4 }
  0xfb   : > { %v7915_v38 = vsel %vm6651_vm7, %v2878_v47, %v2879_v22  ;;  %v9300_v22 = vcombine.low %v7692_v41, %v7710_v23  ;;  %v2872_v17 = vrot.slane %v7349_v39, 5  ;;  %v3560_v27 = vshll.u32 %v7418_v63, 16  ;;  %v8060_v41 = vld [vmem:[%s6321_s29 + $0x1ac] sm:$0x1] }
  0xfc   : > { %6062 = vmatmul.mubr.msk.bf16.gmra.mxu0 %vm769_vm3, %v9298_v19  ;;  %v5330_v19 = vrot.slane %v7294_v45, 9  ;;  %v7970_v47 = vrot.slane %v3866_v46, 5  ;;  %v7972_v58 = vrot.slane %v3872_v16, 5  ;;  %v7974_v39 = vrot.slane %v3876_v26, 4  ;;  %v5367_v16 = vld [vmem:[%s6321_s29 + $0x188] sm:$0x1] }
  0xfd   : > { %6065 = vmatprep.mubr.msk.bf16.mxu0 %vm769_vm3, %v9300_v22  ;;  %v9301_v22 = vcombine.low %v7686_v3, %v7701_v15  ;;  %v7948_v45 = vpop.f32.mrf.mxu1  ;;  %v9303_v3 = vcombine.low %v7715_v60, %v7724_v34  ;;  %v7966_v15 = vpop.f32.mrf.mxu0  ;;  %v7986_v34 = vsel %vm6651_vm7, %v2871_v0, %v2872_v17  ;;  %v3911_v46 = vshrl.u32 %v7977_v42, 16 }
  0xfe   : > { %9302 = vst [vmem:[#allocation44_spill] sm:$0xff] %v7948_v45  ;;  %9304 = vst [vmem:[#allocation45_spill] sm:$0xff] %v7966_v15  ;;  %v7982_v60 = vsel %vm6651_vm7, %v5330_v19, %v2869_v50  ;;  %v9309_v26 = vshrl.u32 %v7415_v4, 16  ;;  %v7997_v45 = vrot.slane %v3560_v27, 5  ;;  %v9311_v50 = vshrl.u32 %v7418_v63, 16 }
  0xff   : > { %9306 = vst [vmem:[#allocation47_spill] sm:$0xff] %v7970_v47  ;;  %9307 = vst [vmem:[#allocation48_spill] sm:$0xff] %v7972_v58  ;;  %v8001_v47 = vpop.f32.mrf.mxu1  ;;  %v3914_v15 = vshll.u32 %v7977_v42, 16  ;;  %v8013_v27 = vpop.f32.mrf.mxu0  ;;  %v4246_v17 = vrot.slane %v7418_v63, 5  ;;  %v3570_v0 = vshll.u32 %v5367_v16, 16 }
 0x100   : > { %6028 = vmatmul.mubr.msk.bf16.gmra.mxu1 %vm769_vm3, %v9301_v22  ;;  %v7968_v22 = vrot.slane %v3863_v7, 4  ;;  %9308 = vst [vmem:[#allocation49_spill] sm:$0xff] %v7974_v39  ;;  %v7989_v7 = vld [vmem:[%s6321_s29 + $0x238] sm:$0xf]  ;;  %v9310_v39 = vshll.u32 %v7415_v4, 16  ;;  %v3566_v19 = vrot.slane %v9311_v50, 4 }
 0x101   : > { %6031 = vmatprep.mubr.msk.bf16.mxu1 %vm769_vm3, %v9303_v3  ;;  %v3553_v3 = vrot.slane %v9309_v26, 4  ;;  %9312 = vst [vmem:[#allocation50_spill] sm:$0xff] %v8001_v47  ;;  %v5370_v26 = vld [vmem:[%s6321_s29 + $0x194] sm:$0x1]  ;;  %9314 = vst [vmem:[#allocation51_spill] sm:$0xff] %v8013_v27  ;;  %v3920_v27 = vshll.u32 %v7989_v7, 16 }
 0x102   : > { %9305 = vst [vmem:[#allocation46_spill] sm:$0xff] %v7968_v22  ;;  %v3556_v58 = vrot.slane %v9310_v39, 5  ;;  %v9313_v39 = vcombine.low %v7720_v48, %v7727_v21  ;;  %v9315_v22 = vcombine.low %v7771_v33, %v7774_v53  ;;  %v3608_v50 = vshll.u32 %v7476_v61, 16 }
 0x103   : > { %v3567_v21 = vor.u32 %v3566_v19, %v7997_v45  ;;  %v3594_v63 = vshll.u32 %v5370_v26, 16  ;;  %v9317_v33 = vcombine.low %v7760_v1, %v7764_v56  ;;  %v8037_v48 = vrot.slane %v3914_v15, 5 }
 0x104   : > { %6066 = vmatmul.mubr.msk.bf16.gmra.mxu0 %vm769_vm3, %v9313_v39  ;;  %v8026_v39 = vrot.slane %v3911_v46, 4  ;;  %v3557_v47 = vor.u32 %v3556_v58, %v3553_v3  ;;  %v3924_v46 = vshrl.u32 %v7989_v7, 16  ;;  %v4249_v53 = vrot.slane %v5367_v16, 5  ;;  %v8045_v3 = vpop.f32.mrf.mxu0  ;;  %v5373_v16 = vld [vmem:[%s6321_s29 + $0x1a0] sm:$0x1] }
 0x105   : > { %6069 = vmatprep.mubr.msk.bf16.mxu0 %vm769_vm3, %v9315_v22  ;;  %v8035_v22 = vpop.f32.mrf.mxu1  ;;  %9319 = vst [vmem:[#allocation54_spill] sm:$0xff] %v8037_v48  ;;  %v9320_v58 = vcombine.low %v7819_v37, %v7823_v10  ;;  %9321 = vst [vmem:[#allocation55_spill] sm:$0xff] %v8045_v3  ;;  %v4248_v1 = vrot.slane %v4246_v17, 4  ;;  %v4256_v56 = vrot.slane %v5370_v26, 5  ;;  %v9323_v15 = vshll.u32 %v7473_v14, 16 }
 0x106   : > { %9316 = vst [vmem:[#allocation52_spill] sm:$0xff] %v8026_v39  ;;  %9318 = vst [vmem:[#allocation53_spill] sm:$0xff] %v8035_v22  ;;  %v5479_v39 = vrot.slane %v7415_v4, 9  ;;  %v8051_v48 = vrot.slane %v3920_v27, 5  ;;  %v8055_v51 = vrot.slane %v3608_v50, 5  ;;  %v9325_v10 = vshrl.u32 %v7476_v61, 16 }
 0x107   : > { %v3604_v22 = vrot.slane %v9323_v15, 5  ;;  %v3568_v3 = vrot.slane %v3567_v21, 4  ;;  %v3572_v30 = vrot.slane %v3570_v0, 5  ;;  %v3596_v26 = vrot.slane %v3594_v63, 5  ;;  %v9329_v15 = vld [vmem:[#allocation8_spill] sm:$0xff] }
 0x108   : > { %6032 = vmatmul.mubr.msk.bf16.gmra.mxu1 %vm769_vm3, %v9317_v33  ;;  %v9322_v33 = vshrl.u32 %v7473_v14, 16  ;;  %9324 = vst [vmem:[#allocation56_spill] sm:$0xff] %v8051_v48  ;;  %v3614_v37 = vrot.slane %v9325_v10, 4  ;;  %v8064_v23 = vrot.slane %v3924_v46, 4  ;;  %v8068_v27 = vsel %vm6651_vm7, %v5479_v39, %v4246_v17  ;;  %v9340_v48 = vld [vmem:[#allocation12_spill] sm:$0xff] }
 0x109   : > { %6035 = vmatprep.mubr.msk.bf16.mxu1 %vm769_vm3, %v9320_v58  ;;  %v3558_v58 = vrot.slane %v3557_v47, 4  ;;  %v9328_v50 = vrot.slane %v7427_v40, 5  ;;  %v9330_v4 = vrot.slane %v9329_v15, 9  ;;  %v4260_v21 = vrot.slane %v7476_v61, 5  ;;  %v9332_v40 = vld [vmem:[#allocation14_spill] sm:$0xff]  ;;  %v9335_v15 = vld [vmem:[#allocation11_spill] sm:$0xff] }
 0x10a   : > { %v3601_v19 = vrot.slane %v9322_v33, 4  ;;  %v8062_v33 = vpop.f32.mrf.mxu1  ;;  %9327 = vst [vmem:[#allocation58_spill] sm:$0xff] %v8064_v23  ;;  %v9331_v0 = vcombine.low %v7804_v44, %v7809_v55  ;;  %v8083_v63 = vpop.f32.mrf.mxu0  ;;  %v8087_v17 = vsel %vm6651_vm7, %v4248_v1, %v4249_v53  ;;  %v8092_v39 = vsel %vm6651_vm7, %v9332_v40, %v4256_v56  ;;  %v9337_v53 = vld [vmem:[#allocation25_spill] sm:$0xff] }
 0x10b   : > { %9326 = vst [vmem:[#allocation57_spill] sm:$0xff] %v8062_v33  ;;  %v8076_v47 = vsel %vm6651_vm7, %v9330_v4, %v9328_v50  ;;  %v3618_v4 = vshll.u32 %v5373_v16, 16  ;;  %v9333_v61 = vcombine.low %v7880_v18, %v7906_v8  ;;  %v3615_v10 = vor.u32 %v3614_v37, %v8055_v51  ;;  %v9334_v50 = vld [vmem:[#allocation6_spill] sm:$0xff]  ;;  %v9336_v33 = vld [vmem:[#allocation3_spill] sm:$0xff]  ;;  %v9339_v40 = vld [vmem:[#allocation9_spill] sm:$0xff] }
 0x10c   : > { %6070 = vmatmul.mubr.msk.bf16.gmra.mxu0 %vm769_vm3, %v9331_v0  ;;  %v3605_v46 = vor.u32 %v3604_v22, %v3601_v19  ;;  %v3629_v0 = vor.u32 %v9335_v15, %v9334_v50  ;;  %v3639_v1 = vor.u32 %v9337_v53, %v9336_v33  ;;  %v3642_v23 = vshll.u32 %v8060_v41, 16 }
 0x10d   : > { %6073 = vmatprep.mubr.msk.bf16.mxu0 %vm769_vm3, %v9333_v61  ;;  %v3563_v22 = vsel %vm6366_vm4, %v3558_v58, %v7997_v45  ;;  %v3573_v19 = vsel %vm6366_vm4, %v3568_v3, %v3572_v30  ;;  %v3587_v37 = vsel %vm6366_vm4, %v9340_v48, %v9339_v40  ;;  %v9341_v61 = vld [vmem:[#allocation10_spill] sm:$0xff]  ;;  %v9342_v15 = vcombine.low %v7862_v9, %v7889_v57  ;;  %v8128_v40 = vpop.f32.mrf.mxu0 }
 0x10e   : > { %v3597_v50 = vsel %vm6366_vm4, %v9341_v61, %v3596_v26  ;;  %v5481_v45 = vrot.slane %v7473_v14, 9  ;;  %v4262_v58 = vrot.slane %v4260_v21, 4  ;;  %v4263_v30 = vrot.slane %v5373_v16, 5  ;;  %9345 = vst [vmem:[#allocation14_spill] sm:$0xff] %v8128_v40 }
 0x10f   : > { %v8120_v53 = vpop.f32.mrf.mxu1  ;;  %v3656_v3 = vshll.u32 %v7564_v11, 16  ;;  %v9344_v48 = vcombine.low %v7903_v36, %v7925_v20  ;;  %v3606_v26 = vrot.slane %v3605_v46, 4  ;;  %v3620_v14 = vrot.slane %v3618_v4, 5  ;;  %v8153_v4 = vld [vmem:[%s6321_s29 + $0x1b8] sm:$0x1] }
 0x110   : > { %6036 = vmatmul.mubr.msk.bf16.gmra.mxu1 %vm769_vm3, %v9342_v15  ;;  %9343 = vst [vmem:[#allocation8_spill] sm:$0xff] %v8120_v53  ;;  %v3616_v61 = vrot.slane %v3615_v10, 4  ;;  %v3630_v16 = vrot.slane %v3629_v0, 4  ;;  %v3640_v15 = vrot.slane %v3639_v1, 4  ;;  %v3644_v53 = vrot.slane %v3642_v23, 5 }
 0x111   : > { %6039 = vmatprep.mubr.msk.bf16.mxu1 %vm769_vm3, %v9344_v48  ;;  %v8134_v44 = vcombine.low %v3563_v22, %v3573_v19  ;;  %v8136_v36 = vcombine.low %v3587_v37, %v3597_v50  ;;  %v9346_v20 = vshrl.u32 %v7554_v12, 16  ;;  %v9347_v55 = vshll.u32 %v7554_v12, 16  ;;  %v8142_v40 = vpop.f32.mrf.mxu1  ;;  %v8163_v22 = vpop.f32.mrf.mxu0 }
 0x112   : > { %9348 = vst [vmem:[#allocation6_spill] sm:$0xff] %v8142_v40  ;;  %v8146_v46 = vsel %vm6651_vm7, %v5481_v45, %v4260_v21  ;;  %v8150_v23 = vsel %vm6651_vm7, %v4262_v58, %v4263_v30  ;;  %v8155_v10 = vrot.slane %v3656_v3, 5  ;;  %v9349_v0 = vshrl.u32 %v7564_v11, 16  ;;  %v8180_v3 = vld [vmem:[%s6321_s29 + $0x1c4] sm:$0x1] }
 0x113   : > { %v3649_v48 = vrot.slane %v9346_v20, 4  ;;  %v3652_v9 = vrot.slane %v9347_v55, 5  ;;  %v9350_v55 = vcombine.low %v7897_v49, %v7909_v25  ;;  %v3611_v21 = vsel %vm6366_vm4, %v3606_v26, %v8055_v51  ;;  %v8238_v40 = vld [vmem:[%s6321_s29 + $0x1dc] sm:$0x1] }
 0x114   : > { %v3662_v1 = vrot.slane %v9349_v0, 4  ;;  %v9351_v19 = vrot.slane %v7515_v59, 5  ;;  %v9352_v37 = vrot.slane %v7507_v52, 9  ;;  %v4270_v30 = vrot.slane %v8060_v41, 5 }
 0x115   : > { %6074 = vmatmul.mubr.msk.bf16.gmra.mxu0 %vm769_vm3, %v9350_v55  ;;  %v9354_v20 = vcombine.low %v7957_v28, %v7960_v32  ;;  %v3621_v51 = vsel %vm6366_vm4, %v3616_v61, %v3620_v14  ;;  %v3635_v52 = vsel %vm6366_vm4, %v3630_v16, %v9336_v33  ;;  %v3645_v59 = vsel %vm6366_vm4, %v3640_v15, %v3644_v53  ;;  %v8202_v61 = vpop.f32.mrf.mxu1  ;;  %v9357_v53 = vld [vmem:[#allocation13_spill] sm:$0xff]  ;;  %v9358_v16 = vld [vmem:[#allocation4_spill] sm:$0xff] }
 0x116   : > { %v8174_v50 = vsel %vm6651_vm7, %v9352_v37, %v9351_v19  ;;  %v9353_v45 = vmov %v9351_v19  ;;  %v3704_v26 = vshll.u32 %v7635_v35, 16  ;;  %v3653_v0 = vor.u32 %v3652_v9, %v3649_v48  ;;  %9356 = vst [vmem:[#allocation11_spill] sm:$0xff] %v8202_v61  ;;  %v9359_v37 = vld [vmem:[#allocation7_spill] sm:$0xff]  ;;  %v8210_v48 = vpop.f32.mrf.mxu0 }
 0x117   : > { %v4269_v58 = vrot.slane %v9353_v45, 4  ;;  %6077 = vmatprep.mubr.msk.bf16.mxu0 %vm769_vm3, %v9354_v20  ;;  %v3666_v55 = vshll.u32 %v8153_v4, 16  ;;  %v4274_v19 = vrot.slane %v7564_v11, 5  ;;  %v9355_v14 = vcombine.low %v7813_v54, %v7838_v62  ;;  %v9360_v45 = vld [vmem:[#allocation5_spill] sm:$0xff] }
 0x118   : > { %v3663_v33 = vor.u32 %v3662_v1, %v8155_v10  ;;  %v3677_v15 = vor.u32 %v9358_v16, %v9357_v53  ;;  %v3687_v20 = vor.u32 %v9360_v45, %v9359_v37  ;;  %v3690_v9 = vshll.u32 %v8180_v3, 16 }
 0x119   : > { %6040 = vmatmul.mubr.msk.bf16.gmra.mxu1 %vm769_vm3, %v9355_v14  ;;  %v9361_v11 = vcombine.low %v7982_v60, %v7986_v34  ;;  %v8216_v54 = vcombine.low %v3611_v21, %v3621_v51  ;;  %v8218_v62 = vcombine.low %v3635_v52, %v3645_v59  ;;  %v8222_v1 = vsel %vm6651_vm7, %v4269_v58, %v4270_v30  ;;  %v5385_v30 = vld [vmem:[%s6321_s29 + $0x1d0] sm:$0x1] }
 0x11a   : > { %v5483_v14 = vrot.slane %v7554_v12, 9  ;;  %v9362_v53 = vshrl.u32 %v7623_v43, 16  ;;  %v9363_v45 = vshll.u32 %v7623_v43, 16  ;;  %v8229_v60 = vrot.slane %v3704_v26, 5 }
 0x11b   : > { %6043 = vmatprep.mubr.msk.bf16.mxu1 %vm769_vm3, %v9361_v11  ;;  %v9364_v34 = vshrl.u32 %v7635_v35, 16  ;;  %v3654_v51 = vrot.slane %v3653_v0, 4  ;;  %v3668_v52 = vrot.slane %v3666_v55, 5  ;;  %v4276_v59 = vrot.slane %v4274_v19, 4  ;;  %v8235_v11 = vpop.f32.mrf.mxu1 }
 0x11c   : > { %v3697_v16 = vrot.slane %v9362_v53, 4  ;;  %v3700_v41 = vrot.slane %v9363_v45, 5  ;;  %v4277_v58 = vrot.slane %v8153_v4, 5  ;;  %9365 = vst [vmem:[#allocation3_spill] sm:$0xff] %v8235_v11  ;;  %v3664_v12 = vrot.slane %v3663_v33, 4  ;;  %v8240_v45 = vpop.f32.mrf.mxu0 }
 0x11d   : > { %v3710_v21 = vrot.slane %v9364_v34, 4  ;;  %v3678_v57 = vrot.slane %v3677_v15, 4  ;;  %v3688_v61 = vrot.slane %v3687_v20, 4  ;;  %v3692_v53 = vrot.slane %v3690_v9, 5 }
 0x11e   : > { %v9366_v26 = vcombine.low %v7977_v42, %v7989_v7  ;;  %v8248_v0 = vsel %vm6651_vm7, %v5483_v14, %v4274_v19  ;;  %v9367_v4 = vrot.slane %v7580_v6, 5  ;;  %v4284_v33 = vrot.slane %v8180_v3, 5  ;;  %v8261_v14 = vpop.f32.mrf.mxu0 }
 0x11f   : > { %v4288_v15 = vrot.slane %v7635_v35, 5  ;;  %v9368_v20 = vcombine.low %v8068_v27, %v8087_v17  ;;  %v3701_v9 = vor.u32 %v3700_v41, %v3697_v16  ;;  %v3711_v34 = vor.u32 %v3710_v21, %v8229_v60  ;;  %v9371_v17 = vld [vmem:[#allocation15_spill] sm:$0xff]  ;;  %v9372_v41 = vld [vmem:[#allocation26_spill] sm:$0xff] }
 0x120   : > { %6078 = vmatmul.mubr.msk.bf16.gmra.mxu0 %vm769_vm3, %v9366_v26  ;;  %v4283_v55 = vrot.slane %v9367_v4, 4  ;;  %v3714_v26 = vshll.u32 %v5385_v30, 16  ;;  %v3725_v19 = vor.u32 %v7705_v2, %v7703_v29  ;;  %v3659_v3 = vsel %vm6366_vm4, %v3654_v51, %v8155_v10  ;;  %v8277_v29 = vpop.f32.mrf.mxu1 }
 0x121   : > { %6117 = vmatprep.mubr.msk.bf16.mxu0 %vm769_vm3, %v9368_v20  ;;  %v9369_v35 = vmov %v9367_v4  ;;  %v9370_v4 = vrot.slane %v7570_v24, 9  ;;  %v3735_v16 = vor.u32 %v9372_v41, %v9371_v17  ;;  %v3738_v21 = vshll.u32 %v8238_v40, 16  ;;  %9373 = vst [vmem:[#allocation25_spill] sm:$0xff] %v8277_v29  ;;  %v8294_v20 = vpop.f32.mrf.mxu0 }
 0x122   : > { %v9374_v2 = vcombine.low %v7885_v13, %v7915_v38  ;;  %v3669_v6 = vsel %vm6366_vm4, %v3664_v12, %v3668_v52  ;;  %v8287_v24 = vsel %vm6651_vm7, %v4276_v59, %v4277_v58  ;;  %v3683_v10 = vsel %vm6366_vm4, %v3678_v57, %v9359_v37  ;;  %v8303_v58 = vpop.f32.mrf.mxu1 }
 0x123   : > { %v8272_v27 = vsel %vm6651_vm7, %v9370_v4, %v9369_v35  ;;  %v3693_v51 = vsel %vm6366_vm4, %v3688_v61, %v3692_v53  ;;  %v8300_v13 = vsel %vm6651_vm7, %v4283_v55, %v4284_v33  ;;  %v5485_v38 = vrot.slane %v7623_v43, 9  ;;  %9375 = vst [vmem:[#allocation2_spill] sm:$0xff] %v8303_v58  ;;  %v8305_v61 = vpop.f32.mrf.mxu0  ;;  %v9458_v56 = vld [vmem:[#allocation3_spill] sm:$0xff] }
 0x124   : > { %6044 = vmatmul.mubr.msk.bf16.gmra.mxu1 %vm769_vm3, %v9374_v2  ;;  %v4290_v52 = vrot.slane %v4288_v15, 4  ;;  %v4291_v59 = vrot.slane %v5385_v30, 5  ;;  %v3702_v12 = vrot.slane %v3701_v9, 4  ;;  %v3712_v57 = vrot.slane %v3711_v34, 4  ;;  %v8310_v33 = vpop.f32.mrf.mxu1  ;;  %v9378_v34 = vld [vmem:[#allocation18_spill] sm:$0xff] }
 0x125   : > { %6083 = vmatprep.mubr.msk.bf16.mxu1 %vm769_vm3, %v8134_v44  ;;  %v3716_v37 = vrot.slane %v3714_v26, 5  ;;  %v3726_v35 = vrot.slane %v3725_v19, 4  ;;  %v3736_v53 = vrot.slane %v3735_v16, 4  ;;  %v3740_v4 = vrot.slane %v3738_v21, 5  ;;  %9377 = vst [vmem:[#allocation9_spill] sm:$0xff] %v8310_v33  ;;  %v5915_v19 = vpop.f32.mrf.mxu0 }
 0x126   : > { %v9376_v44 = vrot.slane %v7652_v5, 5  ;;  %v4298_v55 = vrot.slane %v8238_v40, 5  ;;  %v5499_v43 = vcombine.low %v8174_v50, %v8222_v1  ;;  %v8314_v30 = vcombine.low %v3659_v3, %v3669_v6  ;;  %v9380_v1 = vld [vmem:[#allocation16_spill] sm:$0xff]  ;;  %v8335_v6 = vpop.f32.mrf.mxu1 }
 0x127   : > { %v5500_v9 = vcombine.low %v8248_v0, %v8287_v24  ;;  %v3752_v26 = vshll.u32 %v9378_v34, 16  ;;  %v9379_v16 = vcombine.low %v8076_v47, %v8092_v39  ;;  %v8325_v40 = vsel %vm6651_vm7, %v5485_v38, %v4288_v15  ;;  %9383 = vst [vmem:[#allocation12_spill] sm:$0xff] %v8335_v6 }
 0x128   : > { %v4297_v41 = vrot.slane %v9376_v44, 4  ;;  %v8329_v50 = vsel %vm6651_vm7, %v4290_v52, %v4291_v59  ;;  %v9381_v3 = vshrl.u32 %v9380_v1, 16  ;;  %v9382_v0 = vshll.u32 %v9380_v1, 16  ;;  %v5391_v52 = vld [vmem:[%s6321_s29 + $0x1e8] sm:$0x1]  ;;  %v1541_v59 = vpop.f32.mrf.mxu0 }
 0x129   : > { %6118 = vmatmul.mubr.msk.bf16.vlgmr.msra.gmra.mxu0 %vm769_vm3, %v9379_v16  ;;  %v9384_v47 = vcombine.low %v8146_v46, %v8150_v23  ;;  %v8341_v39 = vcombine.low %v3683_v10, %v3693_v51  ;;  %v3707_v24 = vsel %vm6366_vm4, %v3702_v12, %v8229_v60  ;;  %v3717_v38 = vsel %vm6366_vm4, %v3712_v57, %v3716_v37  ;;  %v9386_v51 = vld [vmem:[#allocation17_spill] sm:$0xff]  ;;  %v5881_v12 = vpop.f32.mrf.mxu1 }
 0x12a   : > { %v3745_v21 = vrot.slane %v9381_v3, 4  ;;  %v3748_v2 = vrot.slane %v9382_v0, 5  ;;  %v3731_v46 = vsel %vm6366_vm4, %v3726_v35, %v9371_v17  ;;  %v3741_v23 = vsel %vm6366_vm4, %v3736_v53, %v3740_v4  ;;  %v8378_v53 = vld [vmem:[%s6321_s29 + $0x1f4] sm:$0x1]  ;;  %v9389_v4 = vld [vmem:[#allocation27_spill] sm:$0xff] }
 0x12b   : > { %6121 = vmatprep.mubr.msk.bf16.mxu0 %vm769_vm3, %v9384_v47  ;;  %v9385_v10 = vmov %v9376_v44  ;;  %v9387_v44 = vrot.slane %v9386_v51, 9  ;;  %v8366_v60 = vsel %vm6651_vm7, %v4297_v41, %v4298_v55  ;;  %v8372_v57 = vrot.slane %v3752_v26, 5  ;;  %v5916_v41 = vpop.f32.mrf.mxu0  ;;  %v1148_v47 = vpop.f32.mrf.mxu1  ;;  %v9390_v51 = vld [vmem:[#allocation28_spill] sm:$0xff] }
 0x12c   : > { %6084 = vmatmul.mubr.msk.bf16.vlgmr.msra.gmra.mxu1 %vm769_vm3, %v8136_v36  ;;  %v9388_v5 = vshrl.u32 %v9378_v34, 16  ;;  %v4302_v35 = vrot.slane %v9378_v34, 5  ;;  %v1157_v3 = vadd.f32 %v5881_v12, %v9389_v4  ;;  %v8383_v55 = vcombine.low %v3707_v24, %v3717_v38  ;;  %v9393_v4 = vld [vmem:[#allocation34_spill] sm:$0xff]  ;;  %v9394_v24 = vld [vmem:[#allocation21_spill] sm:$0xff] }
 0x12d   : > { %v8362_v16 = vsel %vm6651_vm7, %v9387_v44, %v9385_v10  ;;  %6087 = vmatprep.mubr.msk.bf16.mxu1 %vm769_vm3, %v8216_v54  ;;  %v3749_v36 = vor.u32 %v3748_v2, %v3745_v21  ;;  %v3762_v0 = vshll.u32 %v5391_v52, 16  ;;  %v8385_v26 = vcombine.low %v3731_v46, %v3741_v23  ;;  %v9391_v44 = vld [vmem:[#allocation29_spill] sm:$0xff]  ;;  %v1544_v54 = vpop.f32.mrf.mxu0  ;;  %v5882_v46 = vpop.f32.mrf.mxu1 }
 0x12e   : > { %v3758_v37 = vrot.slane %v9388_v5, 4  ;;  %v5487_v34 = vrot.slane %v9380_v1, 9  ;;  %v3773_v5 = vor.u32 %v9391_v44, %v9390_v51  ;;  %v8392_v12 = vadd.f32 %v5915_v19, %v1157_v3  ;;  %v9395_v38 = vld [vmem:[#allocation33_spill] sm:$0xff]  ;;  %v9396_v1 = vld [vmem:[#allocation31_spill] sm:$0xff] }
 0x12f   : > { %v1149_v17 = vadd.f32 %v1148_v47, %v9393_v4  ;;  %v3783_v21 = vor.u32 %v9395_v38, %v9394_v24  ;;  %v3786_v2 = vshll.u32 %v8378_v53, 16  ;;  %v4304_v10 = vrot.slane %v4302_v35, 4  ;;  %v9398_v19 = vld [vmem:[#allocation37_spill] sm:$0xff]  ;;  %v5919_v51 = vpop.f32.mrf.mxu0  ;;  %v1151_v4 = vpop.f32.mrf.mxu1 }
 0x130   : > { %9392 = vst [vmem:[#allocation10_spill] sm:$0xff] %v8392_v12  ;;  %v3759_v23 = vor.u32 %v3758_v37, %v8372_v57  ;;  %v4305_v15 = vrot.slane %v5391_v52, 5  ;;  %v3800_v6 = vshll.u32 %v9396_v1, 16  ;;  %v1160_v3 = vadd.f32 %v5882_v46, %v9398_v19 }
 0x131   : > { %v8400_v33 = vadd.f32 %v1541_v59, %v1149_v17  ;;  %6122 = vmatmul.mubr.msk.bf16.gmra.mxu0 %vm769_vm3, %v5499_v43  ;;  %v8404_v47 = vrot.slane %v3749_v36, 4  ;;  %v8406_v44 = vrot.slane %v3762_v0, 5  ;;  %v8411_v37 = vsel %vm6651_vm7, %v5487_v34, %v4302_v35  ;;  %v8416_v59 = vld [vmem:[%s6321_s29 + $0x200] sm:$0x1]  ;;  %v1557_v12 = vpop.f32.mrf.mxu0  ;;  %v5885_v35 = vpop.f32.mrf.mxu1 }
 0x132   : > { %6125 = vmatprep.mubr.msk.bf16.mxu0 %vm769_vm3, %v5500_v9  ;;  %v8413_v52 = vrot.slane %v3773_v5, 4  ;;  %v9399_v17 = vld [vmem:[#allocation30_spill] sm:$0xff]  ;;  %v8422_v19 = vadd.f32 %v5916_v41, %v1160_v3  ;;  %v8425_v9 = vrot.slane %v3783_v21, 4  ;;  %v8427_v58 = vrot.slane %v3786_v2, 5  ;;  %v9406_v21 = vld [vmem:[#allocation43_spill] sm:$0xff] }
 0x133   : > { %9397 = vst [vmem:[#allocation13_spill] sm:$0xff] %v8400_v33  ;;  %v9400_v38 = vshrl.u32 %v9399_v17, 16  ;;  %v9401_v43 = vshll.u32 %v9399_v17, 16  ;;  %v9403_v0 = vld [vmem:[#allocation38_spill] sm:$0xff]  ;;  %v3760_v34 = vrot.slane %v3759_v23, 4  ;;  %v8433_v5 = vsel %vm6651_vm7, %v4304_v10, %v4305_v15  ;;  %v5920_v2 = vpop.f32.mrf.mxu0  ;;  %v9407_v10 = vld [vmem:[#allocation20_spill] sm:$0xff] }
 0x134   : > { %9402 = vst [vmem:[#allocation4_spill] sm:$0xff] %v8422_v19  ;;  %v1152_v33 = vadd.f32 %v1151_v4, %v9403_v0  ;;  %6088 = vmatmul.mubr.msk.bf16.gmra.mxu1 %vm769_vm3, %v8218_v62  ;;  %v9404_v41 = vshrl.u32 %v9396_v1, 16  ;;  %v3755_v62 = vsel %vm6366_vm4, %v8404_v47, %v8372_v57  ;;  %v3810_v15 = vshll.u32 %v8416_v59, 16  ;;  %v9409_v23 = vld [vmem:[#allocation19_spill] sm:$0xff] }
 0x135   : > { %v3793_v46 = vrot.slane %v9400_v38, 4  ;;  %v3796_v36 = vrot.slane %v9401_v43, 5  ;;  %v8435_v38 = vrot.slane %v3800_v6, 5  ;;  %v1173_v43 = vadd.f32 %v5885_v35, %v9406_v21  ;;  %6091 = vmatprep.mubr.msk.bf16.mxu1 %vm769_vm3, %v8314_v30  ;;  %v1164_v6 = vpop.f32.mrf.mxu1 }
 0x136   : > { %v3806_v3 = vrot.slane %v9404_v41, 4  ;;  %v8439_v4 = vadd.f32 %v1544_v54, %v1152_v33  ;;  %v9408_v54 = vrot.slane %v9407_v10, 5  ;;  %v9410_v0 = vrot.slane %v9409_v23, 9  ;;  %v9411_v41 = vld [vmem:[#allocation45_spill] sm:$0xff]  ;;  %v9417_v10 = vld [vmem:[#allocation23_spill] sm:$0xff] }
 0x137   : > { %v3797_v35 = vor.u32 %v3796_v36, %v3793_v46  ;;  %v4316_v57 = vrot.slane %v9396_v1, 5  ;;  %v8462_v47 = vadd.f32 %v5919_v51, %v1173_v43  ;;  %v1165_v21 = vadd.f32 %v1164_v6, %v9411_v41  ;;  %v5886_v11 = vpop.f32.mrf.mxu1  ;;  %v8479_v36 = vld [vmem:[%s6321_s29 + $0x20c] sm:$0x1]  ;;  %v9419_v41 = vld [vmem:[#allocation40_spill] sm:$0xff] }
 0x138   : > { %9405 = vst [vmem:[#allocation7_spill] sm:$0xff] %v8439_v4  ;;  %v8459_v30 = vsel %vm6651_vm7, %v9410_v0, %v9408_v54  ;;  %v1560_v4 = vpop.f32.mrf.mxu0  ;;  %v5504_v19 = vcombine.low %v8411_v37, %v8433_v5  ;;  %v9412_v33 = vmov %v9408_v54  ;;  %v3765_v54 = vsel %vm6366_vm4, %v3760_v34, %v8406_v44  ;;  %v9413_v5 = vld [vmem:[#allocation51_spill] sm:$0xff] }
 0x139   : > { %v4311_v29 = vrot.slane %v9412_v33, 4  ;;  %v3789_v1 = vsel %vm6366_vm4, %v8425_v9, %v8427_v58  ;;  %v4312_v51 = vrot.slane %v8378_v53, 5  ;;  %v3807_v46 = vor.u32 %v3806_v3, %v8435_v38  ;;  %v1167_v58 = vpop.f32.mrf.mxu1 }
 0x13a   : > { %v8481_v37 = vadd.f32 %v1557_v12, %v1165_v21  ;;  %v1176_v43 = vadd.f32 %v5886_v11, %v9413_v5  ;;  %v5923_v6 = vpop.f32.mrf.mxu0  ;;  %v9414_v33 = vcombine.low %v8272_v27, %v8300_v13  ;;  %v3812_v44 = vrot.slane %v3810_v15, 5  ;;  %v9416_v11 = vld [vmem:[#allocation39_spill] sm:$0xff] }
 0x13b   : > { %v5489_v34 = vrot.slane %v9399_v17, 9  ;;  %v9415_v53 = vcombine.low %v8325_v40, %v8329_v50  ;;  %v3798_v9 = vrot.slane %v3797_v35, 4  ;;  %v4318_v12 = vrot.slane %v4316_v57, 4  ;;  %v9418_v27 = vld [vmem:[#allocation55_spill] sm:$0xff]  ;;  %v9420_v17 = vld [vmem:[#allocation41_spill] sm:$0xff]  ;;  %v5889_v40 = vpop.f32.mrf.mxu1 }
 0x13c   : > { %6126 = vmatmul.mubr.msk.bf16.gmra.mxu0 %vm769_vm3, %v9414_v33  ;;  %v4319_v3 = vrot.slane %v8416_v59, 5  ;;  %v3821_v23 = vor.u32 %v9417_v10, %v9416_v11  ;;  %v8496_v0 = vadd.f32 %v5920_v2, %v1176_v43  ;;  %v1168_v13 = vadd.f32 %v1167_v58, %v9418_v27  ;;  %v1573_v15 = vpop.f32.mrf.mxu0  ;;  %6092 = vmatmul.mubr.msk.bf16.gmra.mxu1 %vm769_vm3, %v8341_v39 }
 0x13d   : > { %6129 = vmatprep.mubr.msk.bf16.mxu0 %vm769_vm3, %v9415_v53  ;;  %v3831_v21 = vor.u32 %v9420_v17, %v9419_v41  ;;  %v3834_v5 = vshll.u32 %v8479_v36, 16  ;;  %v3808_v50 = vrot.slane %v3807_v46, 4  ;;  %v9421_v59 = vshrl.u32 %v7880_v18, 16  ;;  %6095 = vmatprep.mubr.msk.bf16.mxu1 %vm769_vm3, %v8383_v55  ;;  %v1180_v46 = vpop.f32.mrf.mxu1 }
 0x13e   : > { %v9422_v33 = vshll.u32 %v7880_v18, 16  ;;  %v3848_v43 = vshll.u32 %v7906_v8, 16  ;;  %v8509_v58 = vadd.f32 %v1560_v4, %v1168_v13  ;;  %v1189_v53 = vadd.f32 %v5889_v40, %v8083_v63  ;;  %v5924_v11 = vpop.f32.mrf.mxu0 }
 0x13f   : > { %v3841_v35 = vrot.slane %v9421_v59, 4  ;;  %v5455_v10 = vcombine.low %v3755_v62, %v3765_v54  ;;  %v8516_v39 = vsel %vm6651_vm7, %v4311_v29, %v4312_v51  ;;  %v3803_v27 = vsel %vm6366_vm4, %v3798_v9, %v8435_v38  ;;  %v9423_v62 = vld [vmem:[#allocation14_spill] sm:$0xff]  ;;  %v5890_v40 = vpop.f32.mrf.mxu1 }
 0x140   : > { %v3844_v2 = vrot.slane %v9422_v33, 5  ;;  %v8523_v4 = vsel %vm6651_vm7, %v5489_v34, %v4316_v57  ;;  %v8527_v63 = vsel %vm6651_vm7, %v4318_v12, %v4319_v3  ;;  %v3822_v13 = vrot.slane %v3821_v23, 4  ;;  %v1576_v54 = vpop.f32.mrf.mxu0 }
 0x141   : > { %v8529_v55 = vadd.f32 %v5923_v6, %v1189_v53  ;;  %v1181_v29 = vadd.f32 %v1180_v46, %v9423_v62  ;;  %v3832_v51 = vrot.slane %v3831_v21, 4  ;;  %v3836_v17 = vrot.slane %v3834_v5, 5  ;;  %v9426_v21 = vld [vmem:[#allocation35_spill] sm:$0xff] }
 0x142   : > { %v3813_v38 = vsel %vm6366_vm4, %v3808_v50, %v3812_v44  ;;  %v3845_v9 = vor.u32 %v3844_v2, %v3841_v35  ;;  %v8534_v57 = vrot.slane %v3848_v43, 5  ;;  %v9424_v34 = vshrl.u32 %v7906_v8, 16  ;;  %v5927_v23 = vpop.f32.mrf.mxu0  ;;  %v5403_v50 = vld [vmem:[%s6321_s29 + $0x218] sm:$0x1]  ;;  %v1183_v35 = vpop.f32.mrf.mxu1 }
 0x143   : > { %v8538_v3 = vadd.f32 %v1573_v15, %v1181_v29  ;;  %v1192_v6 = vadd.f32 %v5890_v40, %v8163_v22  ;;  %v9425_v59 = vcombine.low %v8362_v16, %v8366_v60  ;;  %v9427_v5 = vrot.slane %v9426_v21, 5  ;;  %v9432_v29 = vld [vmem:[#allocation46_spill] sm:$0xff] }
 0x144   : > { %v3854_v12 = vrot.slane %v9424_v34, 4  ;;  %v4326_v44 = vrot.slane %v8479_v36, 5  ;;  %v9428_v22 = vsel %vm6366_vm4, %v8413_v52, %v9394_v24  ;;  %v5505_v16 = vcombine.low %v8459_v30, %v8516_v39  ;;  %v1589_v43 = vpop.f32.mrf.mxu0  ;;  %v5893_v52 = vpop.f32.mrf.mxu1  ;;  %6096 = vmatmul.mubr.msk.bf16.gmra.mxu1 %vm769_vm3, %v8385_v26 }
 0x145   : > { %6130 = vmatmul.mubr.msk.bf16.gmra.mxu0 %vm769_vm3, %v9425_v59  ;;  %v4325_v33 = vrot.slane %v9427_v5, 4  ;;  %v5456_v15 = vcombine.low %v9428_v22, %v3789_v1  ;;  %v5506_v60 = vcombine.low %v8523_v4, %v8527_v63  ;;  %v3827_v36 = vsel %vm6366_vm4, %v3822_v13, %v9419_v41  ;;  %6099 = vmatprep.mubr.msk.bf16.mxu1 %vm769_vm3, %v5455_v10 }
 0x146   : > { %6133 = vmatprep.mubr.msk.bf16.mxu0 %vm769_vm3, %v5504_v19  ;;  %v8562_v2 = vadd.f32 %v5924_v11, %v1192_v6  ;;  %v1184_v19 = vadd.f32 %v1183_v35, %v8210_v48  ;;  %v3837_v53 = vsel %vm6366_vm4, %v3832_v51, %v3836_v17  ;;  %v4330_v24 = vrot.slane %v7906_v8, 5  ;;  %v5928_v46 = vpop.f32.mrf.mxu0  ;;  %v9430_v8 = vld [vmem:[#allocation24_spill] sm:$0xff]  ;;  %v1196_v13 = vpop.f32.mrf.mxu1 }
 0x147   : > { %v5457_v30 = vcombine.low %v3803_v27, %v3813_v38  ;;  %v8570_v1 = vrot.slane %v3845_v9, 4  ;;  %v3855_v39 = vor.u32 %v3854_v12, %v8534_v57  ;;  %v3858_v41 = vshll.u32 %v5403_v50, 16 }
 0x148   : > { %v8573_v11 = vadd.f32 %v1576_v54, %v1184_v19  ;;  %v1205_v48 = vadd.f32 %v5893_v52, %v8240_v45  ;;  %v9429_v4 = vmov %v9427_v5  ;;  %v9431_v63 = vrot.slane %v9430_v8, 9  ;;  %v9433_v54 = vld [vmem:[#allocation47_spill] sm:$0xff]  ;;  %v1592_v38 = vpop.f32.mrf.mxu0  ;;  %v5894_v12 = vpop.f32.mrf.mxu1  ;;  %v9438_v8 = vld [vmem:[#allocation49_spill] sm:$0xff] }
 0x149   : > { %v8587_v27 = vsel %vm6651_vm7, %v4325_v33, %v4326_v44  ;;  %v8589_v62 = vcombine.low %v3827_v36, %v3837_v53  ;;  %v5491_v45 = vrot.slane %v7880_v18, 9  ;;  %v3869_v10 = vor.u32 %v9433_v54, %v9432_v29  ;;  %v5406_v33 = vld [vmem:[%s6321_s29 + $0x224] sm:$0x1] }
 0x14a   : > { %v8583_v26 = vsel %vm6651_vm7, %v9431_v63, %v9429_v4  ;;  %v3896_v51 = vshll.u32 %v7960_v32, 16  ;;  %v8595_v17 = vadd.f32 %v5927_v23, %v1205_v48  ;;  %v1197_v40 = vadd.f32 %v1196_v13, %v8261_v14  ;;  %v5931_v14 = vpop.f32.mrf.mxu0  ;;  %v1199_v36 = vpop.f32.mrf.mxu1  ;;  %v9437_v4 = vld [vmem:[#allocation48_spill] sm:$0xff] }
 0x14b   : > { %v4332_v9 = vrot.slane %v4330_v24, 4  ;;  %v4333_v34 = vrot.slane %v5403_v50, 5  ;;  %v5507_v6 = vcombine.low %v8583_v26, %v8587_v27  ;;  %v3851_v18 = vsel %vm6366_vm4, %v8570_v1, %v8534_v57  ;;  %v9440_v13 = vld [vmem:[#allocation32_spill] sm:$0xff] }
 0x14c   : > { %v3856_v59 = vrot.slane %v3855_v39, 4  ;;  %v3860_v21 = vrot.slane %v3858_v41, 5  ;;  %v8604_v5 = vadd.f32 %v1589_v43, %v1197_v40  ;;  %v1208_v23 = vadd.f32 %v5894_v12, %v8294_v20  ;;  %v1605_v1 = vpop.f32.mrf.mxu0  ;;  %v5409_v41 = vld [vmem:[%s6321_s29 + $0x230] sm:$0x1]  ;;  %v5897_v48 = vpop.f32.mrf.mxu1  ;;  %6100 = vmatmul.mubr.msk.bf16.gmra.mxu1 %vm769_vm3, %v5456_v15 }
 0x14d   : > { %6134 = vmatmul.mubr.msk.bf16.gmra.mxu0 %vm769_vm3, %v5505_v16  ;;  %v9434_v44 = vshrl.u32 %v7957_v28, 16  ;;  %v9435_v35 = vshll.u32 %v7957_v28, 16  ;;  %v4331_v57 = vsel %vm6651_vm7, %v5491_v45, %v4330_v24  ;;  %v8616_v19 = vrot.slane %v3869_v10, 4  ;;  %6103 = vmatprep.mubr.msk.bf16.mxu1 %vm769_vm3, %v5457_v30  ;;  %v9441_v12 = vld [vmem:[#allocation36_spill] sm:$0xff] }
 0x14e   : > { %6137 = vmatprep.mubr.msk.bf16.mxu0 %vm769_vm3, %v5506_v60  ;;  %v8618_v20 = vrot.slane %v3896_v51, 5  ;;  %v9436_v43 = vshrl.u32 %v7960_v32, 16  ;;  %v8622_v53 = vadd.f32 %v5928_v46, %v1208_v23  ;;  %v1200_v52 = vadd.f32 %v1199_v36, %v8305_v61  ;;  %v5932_v29 = vpop.f32.mrf.mxu0  ;;  %v1212_v15 = vpop.f32.mrf.mxu1 }
 0x14f   : > { %v3889_v50 = vrot.slane %v9434_v44, 4  ;;  %v3892_v22 = vrot.slane %v9435_v35, 5  ;;  %v4334_v39 = vsel %vm6651_vm7, %v4332_v9, %v4333_v34  ;;  %v4344_v60 = vrot.slane %v7960_v32, 5 }
 0x150   : > { %v3902_v16 = vrot.slane %v9436_v43, 4  ;;  %v3861_v24 = vsel %vm6366_vm4, %v3856_v59, %v3860_v21  ;;  %v3879_v63 = vor.u32 %v9438_v8, %v9437_v4  ;;  %v3882_v46 = vshll.u32 %v5406_v33, 16  ;;  %v5898_v44 = vpop.f32.mrf.mxu1 }
 0x151   : > { %v9439_v26 = vrot.slane %v7909_v25, 5  ;;  %v8636_v27 = vadd.f32 %v1592_v38, %v1200_v52  ;;  %v1221_v45 = vadd.f32 %v5897_v48, %v9440_v13  ;;  %v4340_v32 = vrot.slane %v5406_v33, 5  ;;  %v1608_v38 = vpop.f32.mrf.mxu0 }
 0x152   : > { %v3893_v54 = vor.u32 %v3892_v22, %v3889_v50  ;;  %v5508_v10 = vcombine.low %v4331_v57, %v4334_v39  ;;  %v3903_v51 = vor.u32 %v3902_v16, %v8618_v20  ;;  %v3906_v40 = vshll.u32 %v5409_v41, 16  ;;  %v1215_v39 = vpop.f32.mrf.mxu1 }
 0x153   : > { %v4339_v61 = vrot.slane %v9439_v26, 4  ;;  %v5493_v9 = vrot.slane %v7957_v28, 9  ;;  %v8642_v34 = vadd.f32 %v5931_v14, %v1221_v45  ;;  %v1213_v59 = vadd.f32 %v1212_v15, %v9441_v12  ;;  %v9444_v14 = vld [vmem:[#allocation22_spill] sm:$0xff]  ;;  %v5935_v43 = vpop.f32.mrf.mxu0  ;;  %v9448_v45 = vld [vmem:[#allocation56_spill] sm:$0xff] }
 0x154   : > { %v4346_v21 = vrot.slane %v4344_v60, 4  ;;  %v4347_v23 = vrot.slane %v5409_v41, 5  ;;  %v5459_v35 = vcombine.low %v3851_v18, %v3861_v24  ;;  %v3880_v30 = vrot.slane %v3879_v63, 4  ;;  %v5412_v41 = vld [vmem:[%s6321_s29 + $0x23c] sm:$0x1]  ;;  %6104 = vmatmul.mubr.msk.bf16.gmra.mxu1 %vm769_vm3, %v8589_v62 }
 0x155   : > { %v3884_v33 = vrot.slane %v3882_v46, 5  ;;  %v9442_v50 = vmov %v9439_v26  ;;  %v9443_v22 = vrot.slane %v7897_v49, 9  ;;  %v8651_v28 = vadd.f32 %v1605_v1, %v1213_v59  ;;  %6138 = vmatmul.mubr.msk.bf16.gmra.mxu0 %vm769_vm3, %v5507_v6  ;;  %v9445_v6 = vld [vmem:[#allocation42_spill] sm:$0xff]  ;;  %v1621_v8 = vpop.f32.mrf.mxu0  ;;  %v5901_v46 = vpop.f32.mrf.mxu1  ;;  %v9446_v26 = vld [vmem:[#allocation52_spill] sm:$0xff] }
 0x156   : > { %v1224_v57 = vadd.f32 %v5898_v44, %v9444_v14  ;;  %v4341_v18 = vsel %vm6651_vm7, %v4339_v61, %v4340_v32  ;;  %v3894_v16 = vrot.slane %v3893_v54, 4  ;;  %v4351_v52 = vrot.slane %v7989_v7, 5  ;;  %6141 = vmatprep.mubr.msk.bf16.mxu0 %vm769_vm3, %v5508_v10  ;;  %v9447_v61 = vld [vmem:[#allocation54_spill] sm:$0xff]  ;;  %6107 = vmatprep.mubr.msk.bf16.mxu1 %vm769_vm3, %v5459_v35 }
 0x157   : > { %v4338_v36 = vsel %vm6651_vm7, %v9443_v22, %v9442_v50  ;;  %v3875_v49 = vsel %vm6366_vm4, %v8616_v19, %v9437_v4  ;;  %v3904_v25 = vrot.slane %v3903_v51, 4  ;;  %v3908_v1 = vrot.slane %v3906_v40, 5  ;;  %v5936_v10 = vpop.f32.mrf.mxu0  ;;  %v1228_v40 = vpop.f32.mrf.mxu1 }
 0x158   : > { %v8664_v48 = vadd.f32 %v5932_v29, %v1224_v57  ;;  %v1216_v24 = vadd.f32 %v1215_v39, %v9445_v6  ;;  %v4345_v63 = vsel %vm6651_vm7, %v5493_v9, %v4344_v60  ;;  %v4348_v7 = vsel %vm6651_vm7, %v4346_v21, %v4347_v23  ;;  %v9449_v29 = vld [vmem:[#allocation58_spill] sm:$0xff]  ;;  %v9450_v60 = vld [vmem:[#allocation44_spill] sm:$0xff] }
 0x159   : > { %v3885_v19 = vsel %vm6366_vm4, %v3880_v30, %v3884_v33  ;;  %v5509_v4 = vcombine.low %v4338_v36, %v4341_v18  ;;  %v3917_v13 = vor.u32 %v9447_v61, %v9446_v26  ;;  %v3927_v32 = vor.u32 %v9449_v29, %v9448_v45  ;;  %v1624_v30 = vpop.f32.mrf.mxu0  ;;  %v5902_v33 = vpop.f32.mrf.mxu1  ;;  %v9456_v61 = vld [vmem:[#allocation6_spill] sm:$0xff] }
 0x15a   : > { %v8679_v54 = vadd.f32 %v1608_v38, %v1216_v24  ;;  %v1237_v15 = vadd.f32 %v5901_v46, %v9450_v60  ;;  %v3899_v62 = vsel %vm6366_vm4, %v3894_v16, %v8618_v20  ;;  %v3930_v51 = vshll.u32 %v5412_v41, 16  ;;  %v9451_v38 = vld [vmem:[#allocation50_spill] sm:$0xff]  ;;  %v9452_v20 = vld [vmem:[#allocation53_spill] sm:$0xff] }
 0x15b   : > { %v3909_v9 = vsel %vm6366_vm4, %v3904_v25, %v3908_v1  ;;  %v5510_v12 = vcombine.low %v4345_v63, %v4348_v7  ;;  %v4353_v59 = vrot.slane %v4351_v52, 4  ;;  %v4354_v21 = vrot.slane %v5412_v41, 5  ;;  %v5939_v57 = vpop.f32.mrf.mxu0  ;;  %v1231_v39 = vpop.f32.mrf.mxu1  ;;  %v9454_v41 = vld [vmem:[#allocation57_spill] sm:$0xff] }
 0x15c   : > { %v8688_v23 = vadd.f32 %v5935_v43, %v1237_v15  ;;  %v1229_v44 = vadd.f32 %v1228_v40, %v9451_v38  ;;  %v5460_v50 = vcombine.low %v3875_v49, %v3885_v19  ;;  %v3918_v35 = vrot.slane %v3917_v13, 4  ;;  %v9457_v15 = vld [vmem:[#allocation11_spill] sm:$0xff]  ;;  %v9459_v38 = vld [vmem:[#allocation25_spill] sm:$0xff] }
 0x15d   : > { %v3928_v22 = vrot.slane %v3927_v32, 4  ;;  %v1240_v14 = vadd.f32 %v5902_v33, %v9452_v20  ;;  %6142 = vmatmul.mubr.msk.bf16.gmra.mxu0 %vm769_vm3, %v5509_v4  ;;  %v5461_v18 = vcombine.low %v3899_v62, %v3909_v9  ;;  %v3932_v16 = vrot.slane %v3930_v51, 5  ;;  %v1637_v24 = vpop.f32.mrf.mxu0 }
 0x15e   : > { %v8691_v36 = vadd.f32 %v1621_v8, %v1229_v44  ;;  %6145 = vmatprep.mubr.msk.bf16.mxu0 %vm769_vm3, %v5510_v12  ;;  %v9453_v43 = vrot.slane %v7977_v42, 9  ;;  %v4355_v49 = vsel %vm6651_vm7, %v4353_v59, %v4354_v21  ;;  %v1232_v6 = vadd.f32 %v1231_v39, %v9454_v41  ;;  %v5905_v8 = vpop.f32.mrf.mxu1  ;;  %6108 = vmatmul.mubr.msk.bf16.gmra.mxu1 %vm769_vm3, %v5460_v50  ;;  %v9455_v42 = vld [vmem:[#allocation8_spill] sm:$0xff] }
 0x15f   : > { %v8702_v1 = vadd.f32 %v5936_v10, %v1240_v14  ;;  %v3923_v63 = vsel %vm6366_vm4, %v3918_v35, %v9448_v45  ;;  %v1253_v46 = vadd.f32 %v5905_v8, %v9455_v42  ;;  %6111 = vmatprep.mubr.msk.bf16.mxu1 %vm769_vm3, %v5461_v18  ;;  %v3933_v31 = vsel %vm6366_vm4, %v3928_v22, %v3932_v16  ;;  %v9460_v35 = vld [vmem:[#allocation2_spill] sm:$0xff]  ;;  %v9461_v18 = vld [vmem:[#allocation9_spill] sm:$0xff] }
 0x160   : > { %v4352_v25 = vsel %vm6651_vm7, %v9453_v43, %v4351_v52  ;;  %v8709_v7 = vadd.f32 %v1624_v30, %v1232_v6  ;;  %v5940_v52 = vpop.f32.mrf.mxu0  ;;  %v1244_v4 = vpop.f32.mrf.mxu1  ;;  %v5462_v60 = vcombine.low %v3923_v63, %v3933_v31  ;;  %v9463_v63 = vld [vmem:[#allocation10_spill] sm:$0xff] }
 0x161   : > { %v5511_v19 = vcombine.low %v4352_v25, %v4355_v49  ;;  %v8715_v26 = vadd.f32 %v5939_v57, %v1253_v46  ;;  %v1245_v13 = vadd.f32 %v1244_v4, %v9456_v61  ;;  %v9462_v49 = vld [vmem:[#allocation12_spill] sm:$0xff] }
 0x162   : > { %v1640_v29 = vpop.f32.mrf.mxu0  ;;  %v5906_v32 = vpop.f32.mrf.mxu1 }
 0x163   : > { %v8718_v45 = vadd.f32 %v1637_v24, %v1245_v13  ;;  %v1256_v10 = vadd.f32 %v5906_v32, %v9457_v15  ;;  %v9465_v32 = vld [vmem:[#allocation4_spill] sm:$0xff] }
 0x164   : > { %v5943_v62 = vpop.f32.mrf.mxu0  ;;  %v1247_v51 = vpop.f32.mrf.mxu1 }
 0x165   : > { %6146 = vmatmul.mubr.msk.bf16.gmra.mxu0 %vm769_vm3, %v5511_v19  ;;  %v8722_v40 = vadd.f32 %v5940_v52, %v1256_v10  ;;  %v1248_v9 = vadd.f32 %v1247_v51, %v9458_v56  ;;  %v9464_v19 = vld [vmem:[#allocation13_spill] sm:$0xff]  ;;  %v9466_v51 = vld [vmem:[#allocation7_spill] sm:$0xff] }
 0x166   : > { %v1653_v12 = vpop.f32.mrf.mxu0  ;;  %v5909_v59 = vpop.f32.mrf.mxu1  ;;  %6112 = vmatmul.mubr.msk.bf16.gmra.mxu1 %vm769_vm3, %v5462_v60 }
 0x167   : > { %v8726_v21 = vadd.f32 %v1640_v29, %v1248_v9  ;;  %v1269_v44 = vadd.f32 %v5909_v59, %v9459_v38 }
 0x168   : > { %v5944_v30 = vpop.f32.mrf.mxu0  ;;  %v1260_v33 = vpop.f32.mrf.mxu1 }
 0x169   : > { %v8729_v50 = vadd.f32 %v5943_v62, %v1269_v44  ;;  %v1261_v22 = vadd.f32 %v1260_v33, %v9460_v35 }
 0x16a   : > { %v1656_v20 = vpop.f32.mrf.mxu0  ;;  %v5910_v14 = vpop.f32.mrf.mxu1 }
 0x16b   : > { %v8732_v57 = vadd.f32 %v1653_v12, %v1261_v22  ;;  %v1272_v16 = vadd.f32 %v5910_v14, %v9461_v18 }
 0x16c   : > { %v5983_v39 = vpop.f32.mrf.mxu0  ;;  %v1263_v43 = vpop.f32.mrf.mxu1 }
 0x16d   : > { %v8735_v25 = vadd.f32 %v5944_v30, %v1272_v16  ;;  %v1264_v41 = vadd.f32 %v1263_v43, %v9462_v49 }
 0x16e   : > { %v2594_v6 = vpop.f32.mrf.mxu0  ;;  %v5949_v24 = vpop.f32.mrf.mxu1 }
 0x16f   : > { %v8738_v8 = vadd.f32 %v1656_v20, %v1264_v41  ;;  %v2045_v42 = vadd.f32 %v5949_v24, %v9463_v63 }
 0x170   : > { %v5984_v46 = vpop.f32.mrf.mxu0  ;;  %v1916_v52 = vpop.f32.mrf.mxu1 }
 0x171   : > { %v8741_v31 = vadd.f32 %v5983_v39, %v2045_v42  ;;  %v2043_v4 = vadd.f32 %v1916_v52, %v9464_v19 }
 0x172   : > { %v2597_v61 = vpop.f32.mrf.mxu0  ;;  %v5950_v13 = vpop.f32.mrf.mxu1 }
 0x173   : > { %v8744_v29 = vadd.f32 %v2594_v6, %v2043_v4  ;;  %v2046_v60 = vadd.f32 %v5950_v13, %v9465_v32 }
 0x174   : > { %v5987_v15 = vpop.f32.mrf.mxu0  ;;  %v1919_v10 = vpop.f32.mrf.mxu1 }
 0x175   : > { %v8747_v62 = vadd.f32 %v5984_v46, %v2046_v60  ;;  %v2044_v56 = vadd.f32 %v1919_v10, %v9466_v51 }
 0x176   : > { %v2610_v9 = vpop.f32.mrf.mxu0  ;;  %v5953_v12 = vpop.f32.mrf.mxu1 }
 0x177   : > { %v8750_v59 = vadd.f32 %v2597_v61, %v2044_v56  ;;  %v2049_v38 = vadd.f32 %v5953_v12, %v8462_v47 }
 0x178   : > { %v5988_v44 = vpop.f32.mrf.mxu0  ;;  %v1932_v30 = vpop.f32.mrf.mxu1 }
 0x179   : > { %v8753_v33 = vadd.f32 %v5987_v15, %v2049_v38  ;;  %v2047_v35 = vadd.f32 %v1932_v30, %v8481_v37 }
 0x17a   : > { %v2613_v22 = vpop.f32.mrf.mxu0  ;;  %v5954_v20 = vpop.f32.mrf.mxu1 }
 0x17b   : > { %v8756_v14 = vadd.f32 %v2610_v9, %v2047_v35  ;;  %v2050_v18 = vadd.f32 %v5954_v20, %v8496_v0 }
 0x17c   : > { %v5991_v16 = vpop.f32.mrf.mxu0  ;;  %v1935_v39 = vpop.f32.mrf.mxu1 }
 0x17d   : > { %v8759_v43 = vadd.f32 %v5988_v44, %v2050_v18  ;;  %v2048_v49 = vadd.f32 %v1935_v39, %v8509_v58 }
 0x17e   : > { %v2626_v41 = vpop.f32.mrf.mxu0  ;;  %v5957_v47 = vpop.f32.mrf.mxu1 }
 0x17f   : > { %v8762_v6 = vadd.f32 %v2613_v22, %v2048_v49  ;;  %v2053_v24 = vadd.f32 %v5957_v47, %v8529_v55 }
 0x180   : > { %v5992_v63 = vpop.f32.mrf.mxu0  ;;  %v1948_v37 = vpop.f32.mrf.mxu1 }
 0x181   : > { %v8765_v42 = vadd.f32 %v5991_v16, %v2053_v24  ;;  %v2051_v46 = vadd.f32 %v1948_v37, %v8538_v3 }
 0x182   : > { %v2629_v52 = vpop.f32.mrf.mxu0  ;;  %v5958_v0 = vpop.f32.mrf.mxu1 }
 0x183   : > { %v8768_v19 = vadd.f32 %v2626_v41, %v2051_v46  ;;  %v2054_v4 = vadd.f32 %v5958_v0, %v8562_v2 }
 0x184   : > { %v5995_v61 = vpop.f32.mrf.mxu0  ;;  %v1951_v58 = vpop.f32.mrf.mxu1 }
 0x185   : > { %v8771_v13 = vadd.f32 %v5992_v63, %v2054_v4  ;;  %v2052_v32 = vadd.f32 %v1951_v58, %v8573_v11 }
 0x186   : > { %v2642_v60 = vpop.f32.mrf.mxu0  ;;  %v5961_v55 = vpop.f32.mrf.mxu1 }
 0x187   : > { %v8774_v15 = vadd.f32 %v2629_v52, %v2052_v32  ;;  %v2057_v10 = vadd.f32 %v5961_v55, %v8595_v17 }
 0x188   : > { %v5996_v51 = vpop.f32.mrf.mxu0  ;;  %v1964_v3 = vpop.f32.mrf.mxu1 }
 0x189   : > { %v8777_v56 = vadd.f32 %v5995_v61, %v2057_v10  ;;  %v2055_v9 = vadd.f32 %v1964_v3, %v8604_v5 }
 0x18a   : > { %v2645_v12 = vpop.f32.mrf.mxu0  ;;  %v5962_v2 = vpop.f32.mrf.mxu1 }
 0x18b   : > { %v8780_v38 = vadd.f32 %v2642_v60, %v2055_v9  ;;  %v2058_v44 = vadd.f32 %v5962_v2, %v8622_v53 }
 0x18c   : > { %v5999_v30 = vpop.f32.mrf.mxu0  ;;  %v1967_v11 = vpop.f32.mrf.mxu1 }
 0x18d   : > { %v8783_v35 = vadd.f32 %v5996_v51, %v2058_v44  ;;  %v2056_v22 = vadd.f32 %v1967_v11, %v8636_v27 }
 0x18e   : > { %v2658_v20 = vpop.f32.mrf.mxu0  ;;  %v5965_v17 = vpop.f32.mrf.mxu1 }
 0x18f   : > { %v8786_v18 = vadd.f32 %v2645_v12, %v2056_v22  ;;  %v2061_v16 = vadd.f32 %v5965_v17, %v8642_v34 }
 0x190   : > { %v6000_v39 = vpop.f32.mrf.mxu0  ;;  %v1980_v5 = vpop.f32.mrf.mxu1 }
 0x191   : > { %v8789_v49 = vadd.f32 %v5999_v30, %v2061_v16  ;;  %v2059_v41 = vadd.f32 %v1980_v5, %v8651_v28 }
 0x192   : > { %v2661_v47 = vpop.f32.mrf.mxu0  ;;  %v5966_v53 = vpop.f32.mrf.mxu1 }
 0x193   : > { %v8792_v24 = vadd.f32 %v2658_v20, %v2059_v41  ;;  %v2062_v63 = vadd.f32 %v5966_v53, %v8664_v48 }
 0x194   : > { %v6003_v37 = vpop.f32.mrf.mxu0  ;;  %v1983_v27 = vpop.f32.mrf.mxu1 }
 0x195   : > { %v8795_v46 = vadd.f32 %v6000_v39, %v2062_v63  ;;  %v2060_v52 = vadd.f32 %v1983_v27, %v8679_v54 }
 0x196   : > { %v2674_v0 = vpop.f32.mrf.mxu0  ;;  %v5969_v34 = vpop.f32.mrf.mxu1 }
 0x197   : > { %v8798_v4 = vadd.f32 %v2661_v47, %v2060_v52  ;;  %v2065_v61 = vadd.f32 %v5969_v34, %v8688_v23 }
 0x198   : > { %v6004_v58 = vpop.f32.mrf.mxu0  ;;  %v1996_v28 = vpop.f32.mrf.mxu1 }
 0x199   : > { %v8801_v32 = vadd.f32 %v6003_v37, %v2065_v61  ;;  %v2063_v60 = vadd.f32 %v1996_v28, %v8691_v36 }
 0x19a   : > { %v2677_v55 = vpop.f32.mrf.mxu0  ;;  %v5970_v48 = vpop.f32.mrf.mxu1 }
 0x19b   : > { %v8804_v10 = vadd.f32 %v2674_v0, %v2063_v60  ;;  %v2066_v51 = vadd.f32 %v5970_v48, %v8702_v1 }
 0x19c   : > { %v6007_v3 = vpop.f32.mrf.mxu0  ;;  %v1999_v54 = vpop.f32.mrf.mxu1 }
 0x19d   : > { %9467 = vst [vmem:[#allocation5_spill] sm:$0xff] %v8804_v10  ;;  %v8807_v9 = vadd.f32 %v6004_v58, %v2066_v51  ;;  %v2064_v12 = vadd.f32 %v1999_v54, %v8709_v7 }
 0x19e   : > { %v2690_v2 = vpop.f32.mrf.mxu0  ;;  %v5973_v23 = vpop.f32.mrf.mxu1 }
 0x19f   : > { %9468 = vst [vmem:[#allocation15_spill] sm:$0xff] %v8807_v9  ;;  %v8810_v44 = vadd.f32 %v2677_v55, %v2064_v12  ;;  %v2069_v30 = vadd.f32 %v5973_v23, %v8715_v26 }
 0x1a0   : > { %v6008_v11 = vpop.f32.mrf.mxu0  ;;  %v2012_v36 = vpop.f32.mrf.mxu1 }
 0x1a1   : > { %9469 = vst [vmem:[#allocation26_spill] sm:$0xff] %v8810_v44  ;;  %v8813_v22 = vadd.f32 %v6007_v3, %v2069_v30  ;;  %v2067_v20 = vadd.f32 %v2012_v36, %v8718_v45 }
 0x1a2   : > { %v2693_v17 = vpop.f32.mrf.mxu0  ;;  %v5974_v1 = vpop.f32.mrf.mxu1 }
 0x1a3   : > { %v8816_v16 = vadd.f32 %v2690_v2, %v2067_v20  ;;  %v2070_v39 = vadd.f32 %v5974_v1, %v8722_v40 }
 0x1a4   : > { %v6011_v5 = vpop.f32.mrf.mxu0  ;;  %v2015_v7 = vpop.f32.mrf.mxu1 }
 0x1a5   : > { %9470 = vst [vmem:[#allocation18_spill] sm:$0xff] %v8816_v16  ;;  %v8819_v41 = vadd.f32 %v6008_v11, %v2070_v39  ;;  %v2068_v47 = vadd.f32 %v2015_v7, %v8726_v21 }
 0x1a6   : > { %v2706_v53 = vpop.f32.mrf.mxu0  ;;  %v5977_v26 = vpop.f32.mrf.mxu1 }
 0x1a7   : > { %9471 = vst [vmem:[#allocation16_spill] sm:$0xff] %v8819_v41  ;;  %v8822_v63 = vadd.f32 %v2693_v17, %v2068_v47  ;;  %v2073_v37 = vadd.f32 %v5977_v26, %v8729_v50 }
 0x1a8   : > { %v6012_v27 = vpop.f32.mrf.mxu0  ;;  %v2028_v45 = vpop.f32.mrf.mxu1 }
 0x1a9   : > { %9472 = vst [vmem:[#allocation17_spill] sm:$0xff] %v8822_v63  ;;  %v8825_v52 = vadd.f32 %v6011_v5, %v2073_v37  ;;  %v2071_v0 = vadd.f32 %v2028_v45, %v8732_v57 }
 0x1aa   : > { %v2709_v34 = vpop.f32.mrf.mxu0  ;;  %v5978_v40 = vpop.f32.mrf.mxu1 }
 0x1ab   : > { %v8828_v61 = vadd.f32 %v2706_v53, %v2071_v0  ;;  %v2074_v58 = vadd.f32 %v5978_v40, %v8735_v25 }
 0x1ac   : > { %v6051_v28 = vpop.f32.mrf.mxu0  ;;  %v2031_v21 = vpop.f32.mrf.mxu1 }
 0x1ad   : > { %9473 = vst [vmem:[#allocation27_spill] sm:$0xff] %v8828_v61  ;;  %v8831_v60 = vadd.f32 %v6012_v27, %v2074_v58  ;;  %v2072_v55 = vadd.f32 %v2031_v21, %v8738_v8 }
 0x1ae   : > { %v3391_v48 = vpop.f32.mrf.mxu0  ;;  %v6017_v50 = vpop.f32.mrf.mxu1 }
 0x1af   : > { %9474 = vst [vmem:[#allocation28_spill] sm:$0xff] %v8831_v60  ;;  %v8834_v51 = vadd.f32 %v2709_v34, %v2072_v55  ;;  %v3145_v3 = vadd.f32 %v6017_v50, %v8741_v31 }
 0x1b0   : > { %v8837_v54 = vpop.f32.mrf.mxu0  ;;  %v3016_v57 = vpop.f32.mrf.mxu1 }
 0x1b1   : > { %9475 = vst [vmem:[#allocation29_spill] sm:$0xff] %v8834_v51  ;;  %v8839_v12 = vadd.f32 %v6051_v28, %v3145_v3  ;;  %v3143_v2 = vadd.f32 %v3016_v57, %v8744_v29 }
 0x1b2   : > { %v8842_v25 = vpop.f32.mrf.mxu0  ;;  %v8844_v23 = vpop.f32.mrf.mxu1 }
 0x1b3   : > { %v8846_v30 = vadd.f32 %v3391_v48, %v3143_v2 }
 0x1b4   : > { %v6055_v8 = vpop.f32.mrf.mxu0  ;;  %v8848_v11 = vpop.f32.mrf.mxu1 }
 0x1b6   : > { %v8850_v36 = vpop.f32.mrf.mxu0  ;;  %v6021_v20 = vpop.f32.mrf.mxu1 }
 0x1b7   : > { %v3149_v31 = vadd.f32 %v6021_v20, %v8753_v33 }
 0x1b8   : > { %v8853_v17 = vpop.f32.mrf.mxu0  ;;  %v8855_v1 = vpop.f32.mrf.mxu1 }
 0x1b9   : > { %v8857_v39 = vadd.f32 %v6055_v8, %v3149_v31 }
 0x1ba   : > { %v8859_v29 = vpop.f32.mrf.mxu0  ;;  %v8861_v5 = vpop.f32.mrf.mxu1 }
 0x1bc   : > { %v6059_v7 = vpop.f32.mrf.mxu0  ;;  %v8863_v47 = vpop.f32.mrf.mxu1 }
 0x1be   : > { %v8865_v53 = vpop.f32.mrf.mxu0  ;;  %v6025_v26 = vpop.f32.mrf.mxu1 }
 0x1bf   : > { %v3153_v37 = vadd.f32 %v6025_v26, %v8765_v42 }
 0x1c0   : > { %v8868_v27 = vpop.f32.mrf.mxu0  ;;  %v8870_v33 = vpop.f32.mrf.mxu1 }
 0x1c1   : > { %v8872_v45 = vadd.f32 %v6059_v7, %v3153_v37 }
 0x1c2   : > { %v8874_v0 = vpop.f32.mrf.mxu0  ;;  %v8876_v34 = vpop.f32.mrf.mxu1 }
 0x1c4   : > { %v6063_v40 = vpop.f32.mrf.mxu0  ;;  %v8878_v58 = vpop.f32.mrf.mxu1 }
 0x1c6   : > { %v8880_v28 = vpop.f32.mrf.mxu0  ;;  %v6029_v21 = vpop.f32.mrf.mxu1 }
 0x1c7   : > { %v3157_v55 = vadd.f32 %v6029_v21, %v8777_v56 }
 0x1c8   : > { %v8883_v48 = vpop.f32.mrf.mxu0  ;;  %v8885_v42 = vpop.f32.mrf.mxu1 }
 0x1c9   : > { %v8887_v50 = vadd.f32 %v6063_v40, %v3157_v55 }
 0x1ca   : > { %v8889_v3 = vpop.f32.mrf.mxu0  ;;  %v8891_v57 = vpop.f32.mrf.mxu1 }
 0x1cc   : > { %v6067_v2 = vpop.f32.mrf.mxu0  ;;  %v8893_v8 = vpop.f32.mrf.mxu1 }
 0x1ce   : > { %v8895_v20 = vpop.f32.mrf.mxu0  ;;  %v6033_v31 = vpop.f32.mrf.mxu1 }
 0x1cf   : > { %v3161_v7 = vadd.f32 %v6033_v31, %v8789_v49 }
 0x1d0   : > { %v8898_v26 = vpop.f32.mrf.mxu0  ;;  %v8900_v56 = vpop.f32.mrf.mxu1 }
 0x1d1   : > { %v8902_v37 = vadd.f32 %v6067_v2, %v3161_v7 }
 0x1d2   : > { %v8904_v40 = vpop.f32.mrf.mxu0  ;;  %v8906_v21 = vpop.f32.mrf.mxu1 }
 0x1d3   : > { %9476 = vst [vmem:[#allocation34_spill] sm:$0xff] %v8904_v40 }
 0x1d4   : > { %v6071_v55 = vpop.f32.mrf.mxu0  ;;  %v8908_v51 = vpop.f32.mrf.mxu1 }
 0x1d6   : > { %v8910_v60 = vpop.f32.mrf.mxu0  ;;  %v6037_v61 = vpop.f32.mrf.mxu1 }
 0x1d7   : > { %9477 = vst [vmem:[#allocation21_spill] sm:$0xff] %v8910_v60  ;;  %v3165_v63 = vadd.f32 %v6037_v61, %v8801_v32 }
 0x1d8   : > { %v8913_v41 = vpop.f32.mrf.mxu0  ;;  %v8915_v49 = vpop.f32.mrf.mxu1 }
 0x1d9   : > { %9478 = vst [vmem:[#allocation33_spill] sm:$0xff] %v8913_v41  ;;  %v8917_v31 = vadd.f32 %v6071_v55, %v3165_v63 }
 0x1da   : > { %v8919_v2 = vpop.f32.mrf.mxu0  ;;  %v8921_v7 = vpop.f32.mrf.mxu1 }
 0x1db   : > { %9479 = vst [vmem:[#allocation31_spill] sm:$0xff] %v8917_v31  ;;  %9480 = vst [vmem:[#allocation37_spill] sm:$0xff] %v8919_v2 }
 0x1dc   : > { %v6075_v16 = vpop.f32.mrf.mxu0  ;;  %v8923_v44 = vpop.f32.mrf.mxu1 }
 0x1dd   : > { %9481 = vst [vmem:[#allocation30_spill] sm:$0xff] %v8923_v44 }
 0x1de   : > { %v8925_v9 = vpop.f32.mrf.mxu0  ;;  %v6041_v10 = vpop.f32.mrf.mxu1 }
 0x1df   : > { %9482 = vst [vmem:[#allocation38_spill] sm:$0xff] %v8925_v9  ;;  %v3169_v60 = vadd.f32 %v6041_v10, %v8813_v22 }
 0x1e0   : > { %v8928_v40 = vpop.f32.mrf.mxu0  ;;  %v8930_v32 = vpop.f32.mrf.mxu1 }
 0x1e1   : > { %9483 = vst [vmem:[#allocation43_spill] sm:$0xff] %v8928_v40  ;;  %9484 = vst [vmem:[#allocation20_spill] sm:$0xff] %v8930_v32  ;;  %v8932_v61 = vadd.f32 %v6075_v16, %v3169_v60 }
 0x1e2   : > { %v8934_v63 = vpop.f32.mrf.mxu0  ;;  %v8936_v55 = vpop.f32.mrf.mxu1 }
 0x1e3   : > { %9485 = vst [vmem:[#allocation19_spill] sm:$0xff] %v8932_v61  ;;  %9486 = vst [vmem:[#allocation45_spill] sm:$0xff] %v8934_v63 }
 0x1e4   : > { %9487 = vst [vmem:[#allocation51_spill] sm:$0xff] %v8936_v55  ;;  %v6079_v2 = vpop.f32.mrf.mxu0  ;;  %v8938_v31 = vpop.f32.mrf.mxu1 }
 0x1e5   : > { %9488 = vst [vmem:[#allocation39_spill] sm:$0xff] %v8938_v31 }
 0x1e6   : > { %v8940_v41 = vpop.f32.mrf.mxu0  ;;  %v6045_v9 = vpop.f32.mrf.mxu1 }
 0x1e7   : > { %9489 = vst [vmem:[#allocation23_spill] sm:$0xff] %v8940_v41  ;;  %v3173_v10 = vadd.f32 %v6045_v9, %v8825_v52  ;;  %v3146_v41 = vadd.f32 %v8844_v23, %v8747_v62  ;;  %v3144_v9 = vadd.f32 %v8848_v11, %v8750_v59  ;;  %v3147_v59 = vadd.f32 %v8855_v1, %v8756_v14 }
 0x1e8   : > { %v8943_v22 = vpop.f32.mrf.mxu0  ;;  %v8945_v40 = vpop.f32.mrf.mxu1  ;;  %v3150_v11 = vadd.f32 %v8861_v5, %v8759_v43 }
 0x1e9   : > { %9490 = vst [vmem:[#allocation55_spill] sm:$0xff] %v8943_v22  ;;  %9491 = vst [vmem:[#allocation40_spill] sm:$0xff] %v8945_v40  ;;  %v8947_v32 = vadd.f32 %v6079_v2, %v3173_v10  ;;  %v3521_v10 = vadd.f32 %v8837_v54, %v3146_v41  ;;  %v3519_v62 = vadd.f32 %v8842_v25, %v3144_v9 }
 0x1ea   : > { %v8949_v16 = vpop.f32.mrf.mxu0  ;;  %v8951_v60 = vpop.f32.mrf.mxu1  ;;  %v3522_v43 = vadd.f32 %v8850_v36, %v3147_v59  ;;  %v3525_v5 = vadd.f32 %v8853_v17, %v3150_v11 }
 0x1eb   : > { %9492 = vst [vmem:[#allocation41_spill] sm:$0xff] %v8947_v32  ;;  %9493 = vst [vmem:[#allocation14_spill] sm:$0xff] %v8949_v16 }
 0x1ec   : > { %9494 = vst [vmem:[#allocation35_spill] sm:$0xff] %v8951_v60  ;;  %v6119_v63 = vpop.f32.mrf.mxu0  ;;  %v8954_v61 = vpop.f32.mrf.mxu1 }
 0x1ed   : > { %9495 = vst [vmem:[#allocation24_spill] sm:$0xff] %v8954_v61 }
 0x1ee   : > { %v4491_v31 = vpop.f32.mrf.mxu0  ;;  %v6085_v55 = vpop.f32.mrf.mxu1 }
 0x1ef   : > { %v4198_v16 = vadd.f32 %v6085_v55, %v8839_v12 }
 0x1f0   : > { %v6120_v52 = vpop.f32.mrf.mxu0  ;;  %v4069_v2 = vpop.f32.mrf.mxu1 }
 0x1f1   : > { %v4196_v32 = vadd.f32 %v4069_v2, %v8846_v30  ;;  %v4620_v44 = vadd.f32 %v6119_v63, %v4198_v16  ;;  %v3148_v30 = vadd.f32 %v8863_v47, %v8762_v6 }
 0x1f2   : > { %v4494_v22 = vpop.f32.mrf.mxu0  ;;  %v6086_v61 = vpop.f32.mrf.mxu1 }
 0x1f3   : > { %v4199_v23 = vadd.f32 %v6086_v61, %v3521_v10  ;;  %v4618_v41 = vadd.f32 %v4491_v31, %v4196_v32  ;;  %v3523_v9 = vadd.f32 %v8859_v29, %v3148_v30  ;;  %v4812_v10 = vmul.f32 %v4620_v44, %v4620_v44 }
 0x1f4   : > { %v6123_v60 = vpop.f32.mrf.mxu0  ;;  %v4072_v40 = vpop.f32.mrf.mxu1 }
 0x1f5   : > { %v4621_v54 = vadd.f32 %v6120_v52, %v4199_v23  ;;  %v4197_v12 = vadd.f32 %v4072_v40, %v3519_v62  ;;  %v4810_v32 = vmul.f32 %v4618_v41, %v4618_v41  ;;  %v3154_v23 = vadd.f32 %v8876_v34, %v8771_v13 }
 0x1f6   : > { %v4507_v55 = vpop.f32.mrf.mxu0  ;;  %v6089_v25 = vpop.f32.mrf.mxu1 }
 0x1f7   : > { %v5603_v14 = vpack.c.bf16 %v4621_v54, %v4620_v44  ;;  %v4619_v1 = vadd.f32 %v4494_v22, %v4197_v12  ;;  %v4202_v40 = vadd.f32 %v6089_v25, %v8857_v39  ;;  %v3151_v22 = vadd.f32 %v8870_v33, %v8768_v19 }
 0x1f8   : > { %v6124_v61 = vpop.f32.mrf.mxu0  ;;  %v4085_v31 = vpop.f32.mrf.mxu1  ;;  %v4813_v59 = vmul.f32 %v4621_v54, %v4621_v54 }
 0x1f9   : > { %5675 = vst [vmem:[%s8977_s23 + $0x8] sm:$0xff] %v5603_v14   ;;  %v5598_v6 = vpack.c.bf16 %v4619_v1, %v4618_v41  ;;  %v4811_v47 = vmul.f32 %v4619_v1, %v4619_v1  ;;  %v4842_v63 = vadd.f32 %v4619_v1, %v4618_v41  ;;  %v4200_v52 = vadd.f32 %v4085_v31, %v3522_v43 }
 0x1fa   : > { %v4510_v16 = vpop.f32.mrf.mxu0  ;;  %v6090_v2 = vpop.f32.mrf.mxu1  ;;  %v4624_v11 = vadd.f32 %v6123_v60, %v4202_v40  ;;  %v3526_v14 = vadd.f32 %v8865_v53, %v3151_v22  ;;  %v3529_v40 = vadd.f32 %v8868_v27, %v3154_v23 }
 0x1fb   : > { %5599 = vst [vmem:[%s8977_s23] sm:$0xff] %v5598_v6   ;;  %v4843_v36 = vadd.f32 %v4842_v63, %v4620_v44  ;;  %v4873_v17 = vadd.f32 %v4811_v47, %v4810_v32  ;;  %v4203_v62 = vadd.f32 %v6090_v2, %v3525_v5  ;;  %v4622_v41 = vadd.f32 %v4507_v55, %v4200_v52 }
 0x1fc   : > { %v6127_v39 = vpop.f32.mrf.mxu0  ;;  %v4088_v12 = vpop.f32.mrf.mxu1  ;;  %v3152_v44 = vadd.f32 %v8878_v58, %v8774_v15  ;;  %v4816_v52 = vmul.f32 %v4624_v11, %v4624_v11 }
 0x1fd   : > { %v4874_v25 = vadd.f32 %v4873_v17, %v4812_v10  ;;  %v4844_v29 = vadd.f32 %v4843_v36, %v4621_v54  ;;  %v4625_v30 = vadd.f32 %v6124_v61, %v4203_v62  ;;  %v4201_v19 = vadd.f32 %v4088_v12, %v3523_v9 }
 0x1fe   : > { %v4523_v33 = vpop.f32.mrf.mxu0  ;;  %v6093_v1 = vpop.f32.mrf.mxu1  ;;  %v4814_v43 = vmul.f32 %v4622_v41, %v4622_v41  ;;  %v3527_v63 = vadd.f32 %v8874_v0, %v3152_v44  ;;  %v3155_v9 = vadd.f32 %v8885_v42, %v8780_v38 }
 0x1ff   : > { %v4845_v5 = vadd.f32 %v4844_v29, %v4622_v41  ;;  %v4875_v31 = vadd.f32 %v4874_v25, %v4813_v59  ;;  %v5613_v13 = vpack.c.bf16 %v4625_v30, %v4624_v11  ;;  %v4623_v60 = vadd.f32 %v4510_v16, %v4201_v19 }
 0x200   : > { %v6128_v34 = vpop.f32.mrf.mxu0  ;;  %v4101_v55 = vpop.f32.mrf.mxu1  ;;  %v4206_v61 = vadd.f32 %v6093_v1, %v8872_v45  ;;  %v3158_v16 = vadd.f32 %v8891_v57, %v8783_v35  ;;  %v4817_v0 = vmul.f32 %v4625_v30, %v4625_v30  ;;  %v3530_v42 = vadd.f32 %v8880_v28, %v3155_v9 }
 0x201   : > { %v4876_v54 = vadd.f32 %v4875_v31, %v4814_v43  ;;  %5677 = vst [vmem:[%s8977_s23 + $0x18] sm:$0xff] %v5613_v13   ;;  %v4204_v32 = vadd.f32 %v4101_v55, %v3526_v14  ;;  %v5608_v6 = vpack.c.bf16 %v4623_v60, %v4622_v41  ;;  %v4815_v47 = vmul.f32 %v4623_v60, %v4623_v60 }
 0x202   : > { %v4526_v53 = vpop.f32.mrf.mxu0  ;;  %v4846_v15 = vadd.f32 %v4845_v5, %v4623_v60  ;;  %v6094_v58 = vpop.f32.mrf.mxu1  ;;  %v4628_v17 = vadd.f32 %v6127_v39, %v4206_v61  ;;  %v3156_v35 = vadd.f32 %v8893_v8, %v8786_v18  ;;  %v3533_v29 = vadd.f32 %v8883_v48, %v3158_v16 }
 0x203   : > { %v4207_v27 = vadd.f32 %v6094_v58, %v3529_v40  ;;  %5676 = vst [vmem:[%s8977_s23 + $0x10] sm:$0xff] %v5608_v6   ;;  %v4877_v45 = vadd.f32 %v4876_v54, %v4815_v47  ;;  %v4626_v10 = vadd.f32 %v4523_v33, %v4204_v32  ;;  %v3159_v48 = vadd.f32 %v8900_v56, %v8792_v24 }
 0x204   : > { %v4847_v2 = vadd.f32 %v4846_v15, %v4624_v11  ;;  %v4104_v36 = vpop.f32.mrf.mxu1  ;;  %v3531_v8 = vadd.f32 %v8889_v3, %v3156_v35  ;;  %v3162_v13 = vadd.f32 %v8906_v21, %v8795_v46  ;;  %v4820_v55 = vmul.f32 %v4628_v17, %v4628_v17 }
 0x205   : > { %v6131_v22 = vpop.f32.mrf.mxu0  ;;  %v4629_v62 = vadd.f32 %v6128_v34, %v4207_v27  ;;  %v4205_v23 = vadd.f32 %v4104_v36, %v3527_v63  ;;  %v4878_v41 = vadd.f32 %v4877_v45, %v4816_v52  ;;  %v4818_v19 = vmul.f32 %v4626_v10, %v4626_v10 }
 0x206   : > { %v4848_v12 = vadd.f32 %v4847_v2, %v4625_v30  ;;  %v6097_v38 = vpop.f32.mrf.mxu1  ;;  %v3534_v56 = vadd.f32 %v8895_v20, %v3159_v48  ;;  %v3160_v46 = vadd.f32 %v8908_v51, %v8798_v4  ;;  %v3537_v16 = vadd.f32 %v8898_v26, %v3162_v13  ;;  %v9496_v51 = vld [vmem:[#allocation34_spill] sm:$0xff]  ;;  %v9502_v48 = vld [vmem:[#allocation33_spill] sm:$0xff] }
 0x207   : > { %v4539_v59 = vpop.f32.mrf.mxu0  ;;  %v5623_v57 = vpack.c.bf16 %v4629_v62, %v4628_v17  ;;  %v4627_v25 = vadd.f32 %v4526_v53, %v4205_v23  ;;  %v4879_v33 = vadd.f32 %v4878_v41, %v4817_v0  ;;  %v4210_v30 = vadd.f32 %v6097_v38, %v8887_v50  ;;  %v9497_v0 = vld [vmem:[#allocation5_spill] sm:$0xff]  ;;  %v9498_v41 = vld [vmem:[#allocation15_spill] sm:$0xff] }
 0x208   : > { %v4849_v39 = vadd.f32 %v4848_v12, %v4626_v10  ;;  %v4117_v14 = vpop.f32.mrf.mxu1  ;;  %v4821_v3 = vmul.f32 %v4629_v62, %v4629_v62  ;;  %v3163_v26 = vadd.f32 %v8915_v49, %v9497_v0  ;;  %v3166_v12 = vadd.f32 %v8921_v7, %v9498_v41  ;;  %v9500_v7 = vld [vmem:[#allocation26_spill] sm:$0xff] }
 0x209   : > { %v6132_v11 = vpop.f32.mrf.mxu0  ;;  %5679 = vst [vmem:[%s8977_s23 + $0x28] sm:$0xff] %v5623_v57   ;;  %v5618_v44 = vpack.c.bf16 %v4627_v25, %v4626_v10  ;;  %v4819_v1 = vmul.f32 %v4627_v25, %v4627_v25  ;;  %v4208_v43 = vadd.f32 %v4117_v14, %v3530_v42  ;;  %v4880_v5 = vadd.f32 %v4879_v33, %v4818_v19 }
 0x20a   : > { %v4850_v31 = vadd.f32 %v4849_v39, %v4627_v25  ;;  %v6098_v18 = vpop.f32.mrf.mxu1  ;;  %v4632_v32 = vadd.f32 %v6131_v22, %v4210_v30  ;;  %v9499_v30 = vld [vmem:[#allocation21_spill] sm:$0xff]  ;;  %v3541_v13 = vadd.f32 %v9502_v48, %v3166_v12  ;;  %v9516_v48 = vld [vmem:[#allocation40_spill] sm:$0xff] }
 0x20b   : > { %v4542_v28 = vpop.f32.mrf.mxu0  ;;  %5678 = vst [vmem:[%s8977_s23 + $0x20] sm:$0xff] %v5618_v44   ;;  %v4211_v34 = vadd.f32 %v6098_v18, %v3533_v29  ;;  %v4881_v54 = vadd.f32 %v4880_v5, %v4819_v1  ;;  %v4630_v50 = vadd.f32 %v4539_v59, %v4208_v43  ;;  %v3535_v59 = vadd.f32 %v9496_v51, %v3160_v46  ;;  %v9506_v46 = vld [vmem:[#allocation20_spill] sm:$0xff]  ;;  %v9510_v12 = vld [vmem:[#allocation17_spill] sm:$0xff] }
 0x20c   : > { %v4851_v40 = vadd.f32 %v4850_v31, %v4628_v17  ;;  %v4120_v61 = vpop.f32.mrf.mxu1  ;;  %v4824_v35 = vmul.f32 %v4632_v32, %v4632_v32  ;;  %v3538_v43 = vadd.f32 %v9499_v30, %v3163_v26  ;;  %v9509_v26 = vld [vmem:[#allocation38_spill] sm:$0xff] }
 0x20d   : > { %v6135_v60 = vpop.f32.mrf.mxu0  ;;  %v4633_v53 = vadd.f32 %v6132_v11, %v4211_v34  ;;  %v4209_v6 = vadd.f32 %v4120_v61, %v3531_v8  ;;  %v4882_v15 = vadd.f32 %v4881_v54, %v4820_v55  ;;  %v4822_v27 = vmul.f32 %v4630_v50, %v4630_v50  ;;  %v9503_v61 = vld [vmem:[#allocation31_spill] sm:$0xff] }
 0x20e   : > { %v4852_v58 = vadd.f32 %v4851_v40, %v4629_v62  ;;  %v6101_v24 = vpop.f32.mrf.mxu1 }
 0x20f   : > { %v4555_v47 = vpop.f32.mrf.mxu0  ;;  %v5633_v21 = vpack.c.bf16 %v4633_v53, %v4632_v32  ;;  %v4631_v63 = vadd.f32 %v4542_v28, %v4209_v6  ;;  %v4883_v52 = vadd.f32 %v4882_v15, %v4821_v3  ;;  %v4214_v36 = vadd.f32 %v6101_v24, %v8902_v37  ;;  %v9501_v28 = vld [vmem:[#allocation30_spill] sm:$0xff] }
 0x210   : > { %v4853_v22 = vadd.f32 %v4852_v58, %v4630_v50  ;;  %v4133_v2 = vpop.f32.mrf.mxu1  ;;  %v4825_v14 = vmul.f32 %v4633_v53, %v4633_v53  ;;  %v3164_v5 = vadd.f32 %v9501_v28, %v9500_v7  ;;  %v9504_v58 = vld [vmem:[#allocation37_spill] sm:$0xff] }
 0x211   : > { %v6136_v9 = vpop.f32.mrf.mxu0  ;;  %5681 = vst [vmem:[%s8977_s23 + $0x38] sm:$0xff] %v5633_v21   ;;  %v5628_v45 = vpack.c.bf16 %v4631_v63, %v4630_v50  ;;  %v4823_v10 = vmul.f32 %v4631_v63, %v4631_v63  ;;  %v4212_v17 = vadd.f32 %v4133_v2, %v3534_v56  ;;  %v4884_v62 = vadd.f32 %v4883_v52, %v4822_v27  ;;  %v9505_v56 = vld [vmem:[#allocation18_spill] sm:$0xff] }
 0x212   : > { %v4854_v23 = vadd.f32 %v4853_v22, %v4631_v63  ;;  %v6102_v4 = vpop.f32.mrf.mxu1  ;;  %v4636_v29 = vadd.f32 %v6135_v60, %v4214_v36  ;;  %v3539_v24 = vadd.f32 %v9504_v58, %v3164_v5  ;;  %v3167_v21 = vadd.f32 %v9506_v46, %v9505_v56  ;;  %v9507_v63 = vld [vmem:[#allocation16_spill] sm:$0xff] }
 0x213   : > { %v4558_v20 = vpop.f32.mrf.mxu0  ;;  %5680 = vst [vmem:[%s8977_s23 + $0x30] sm:$0xff] %v5628_v45   ;;  %v4215_v38 = vadd.f32 %v6102_v4, %v3537_v16  ;;  %v4885_v25 = vadd.f32 %v4884_v62, %v4823_v10  ;;  %v4634_v37 = vadd.f32 %v4555_v47, %v4212_v17 }
 0x214   : > { %v4855_v57 = vadd.f32 %v4854_v23, %v4632_v32  ;;  %v4136_v11 = vpop.f32.mrf.mxu1  ;;  %v4828_v52 = vmul.f32 %v4636_v29, %v4636_v29  ;;  %v3542_v41 = vadd.f32 %v9509_v26, %v3167_v21 }
 0x215   : > { %v6139_v42 = vpop.f32.mrf.mxu0  ;;  %v4637_v19 = vadd.f32 %v6136_v9, %v4215_v38  ;;  %v4213_v39 = vadd.f32 %v4136_v11, %v3535_v59  ;;  %v4886_v44 = vadd.f32 %v4885_v25, %v4824_v35  ;;  %v4826_v34 = vmul.f32 %v4634_v37, %v4634_v37  ;;  %v9508_v9 = vld [vmem:[#allocation51_spill] sm:$0xff] }
 0x216   : > { %v4856_v1 = vadd.f32 %v4855_v57, %v4633_v53  ;;  %v6105_v49 = vpop.f32.mrf.mxu1  ;;  %v3170_v16 = vadd.f32 %v9508_v9, %v9507_v63  ;;  %v9511_v38 = vld [vmem:[#allocation39_spill] sm:$0xff] }
 0x217   : > { %v4571_v33 = vpop.f32.mrf.mxu0  ;;  %v5643_v31 = vpack.c.bf16 %v4637_v19, %v4636_v29  ;;  %v4635_v18 = vadd.f32 %v4558_v20, %v4213_v39  ;;  %v4887_v55 = vadd.f32 %v4886_v44, %v4825_v14  ;;  %v4218_v32 = vadd.f32 %v6105_v49, %v9503_v61  ;;  %v9512_v11 = vld [vmem:[#allocation43_spill] sm:$0xff] }
 0x218   : > { %v4857_v60 = vadd.f32 %v4856_v1, %v4634_v37  ;;  %v4149_v40 = vpop.f32.mrf.mxu1  ;;  %v4829_v4 = vmul.f32 %v4637_v19, %v4637_v19  ;;  %v3168_v35 = vadd.f32 %v9511_v38, %v9510_v12  ;;  %v9519_v63 = vld [vmem:[#allocation23_spill] sm:$0xff] }
 0x219   : > { %v6140_v8 = vpop.f32.mrf.mxu0  ;;  %5683 = vst [vmem:[%s8977_s23 + $0x48] sm:$0xff] %v5643_v31   ;;  %v5638_v54 = vpack.c.bf16 %v4635_v18, %v4634_v37  ;;  %v4827_v50 = vmul.f32 %v4635_v18, %v4635_v18  ;;  %v4216_v53 = vadd.f32 %v4149_v40, %v3538_v43  ;;  %v4888_v47 = vadd.f32 %v4887_v55, %v4826_v34  ;;  %v9514_v31 = vld [vmem:[#allocation45_spill] sm:$0xff]  ;;  %v9517_v34 = vld [vmem:[#allocation28_spill] sm:$0xff] }
 0x21a   : > { %v4858_v3 = vadd.f32 %v4857_v60, %v4635_v18  ;;  %v6106_v15 = vpop.f32.mrf.mxu1  ;;  %v4640_v17 = vadd.f32 %v6139_v42, %v4218_v32  ;;  %v3543_v18 = vadd.f32 %v9514_v31, %v3168_v35  ;;  %v9518_v60 = vld [vmem:[#allocation35_spill] sm:$0xff]  ;;  %v9524_v35 = vld [vmem:[#allocation14_spill] sm:$0xff] }
 0x21b   : > { %v4574_v6 = vpop.f32.mrf.mxu0  ;;  %5682 = vst [vmem:[%s8977_s23 + $0x40] sm:$0xff] %v5638_v54   ;;  %v4219_v27 = vadd.f32 %v6106_v15, %v3541_v13  ;;  %v4889_v45 = vadd.f32 %v4888_v47, %v4827_v50  ;;  %v4638_v10 = vadd.f32 %v4571_v33, %v4216_v53  ;;  %v3174_v55 = vadd.f32 %v9518_v60, %v9517_v34 }
 0x21c   : > { %v4859_v2 = vadd.f32 %v4858_v3, %v4636_v29  ;;  %v4152_v36 = vpop.f32.mrf.mxu1  ;;  %v3545_v29 = vadd.f32 %v9512_v11, %v3170_v16  ;;  %v4832_v50 = vmul.f32 %v4640_v17, %v4640_v17  ;;  %v9520_v16 = vld [vmem:[#allocation29_spill] sm:$0xff] }
 0x21d   : > { %v6143_v22 = vpop.f32.mrf.mxu0  ;;  %v4641_v20 = vadd.f32 %v6140_v8, %v4219_v27  ;;  %v4217_v62 = vadd.f32 %v4152_v36, %v3539_v24  ;;  %v4890_v51 = vadd.f32 %v4889_v45, %v4828_v52  ;;  %v4830_v39 = vmul.f32 %v4638_v10, %v4638_v10  ;;  %v9515_v8 = vld [vmem:[#allocation27_spill] sm:$0xff]  ;;  %v9521_v27 = vld [vmem:[#allocation24_spill] sm:$0xff] }
 0x21e   : > { %v4860_v59 = vadd.f32 %v4859_v2, %v4637_v19  ;;  %v6109_v0 = vpop.f32.mrf.mxu1  ;;  %v9513_v19 = vld [vmem:[#allocation19_spill] sm:$0xff]  ;;  %v3171_v13 = vadd.f32 %v9516_v48, %v9515_v8  ;;  %v3172_v52 = vadd.f32 %v9521_v27, %v9520_v16 }
 0x21f   : > { %v4587_v23 = vpop.f32.mrf.mxu0  ;;  %v5653_v57 = vpack.c.bf16 %v4641_v20, %v4640_v17  ;;  %v4639_v25 = vadd.f32 %v4574_v6, %v4217_v62  ;;  %v4891_v33 = vadd.f32 %v4890_v51, %v4829_v4  ;;  %v4222_v49 = vadd.f32 %v6109_v0, %v9513_v19 }
 0x220   : > { %v4861_v42 = vadd.f32 %v4860_v59, %v4638_v10  ;;  %v4165_v14 = vpop.f32.mrf.mxu1  ;;  %v4833_v58 = vmul.f32 %v4641_v20, %v4641_v20  ;;  %v3546_v9 = vadd.f32 %v9519_v63, %v3171_v13 }
 0x221   : > { %v6144_v37 = vpop.f32.mrf.mxu0  ;;  %5685 = vst [vmem:[%s8977_s23 + $0x58] sm:$0xff] %v5653_v57   ;;  %v5648_v44 = vpack.c.bf16 %v4639_v25, %v4638_v10  ;;  %v4831_v1 = vmul.f32 %v4639_v25, %v4639_v25  ;;  %v4220_v30 = vadd.f32 %v4165_v14, %v3542_v41  ;;  %v4892_v7 = vadd.f32 %v4891_v33, %v4830_v39  ;;  %v9522_v10 = vld [vmem:[#allocation55_spill] sm:$0xff] }
 0x222   : > { %v4862_v28 = vadd.f32 %v4861_v42, %v4639_v25  ;;  %v6110_v5 = vpop.f32.mrf.mxu1  ;;  %v4644_v47 = vadd.f32 %v6143_v22, %v4222_v49  ;;  %v3549_v36 = vadd.f32 %v9522_v10, %v3174_v55  ;;  %v3547_v57 = vadd.f32 %v9524_v35, %v3172_v52 }
 0x223   : > { %v4590_v43 = vpop.f32.mrf.mxu0  ;;  %5684 = vst [vmem:[%s8977_s23 + $0x50] sm:$0xff] %v5648_v44   ;;  %v4223_v40 = vadd.f32 %v6110_v5, %v3545_v29  ;;  %v4893_v32 = vadd.f32 %v4892_v7, %v4831_v1  ;;  %v4642_v53 = vadd.f32 %v4587_v23, %v4220_v30 }
 0x224   : > { %v4863_v61 = vadd.f32 %v4862_v28, %v4640_v17  ;;  %v4168_v6 = vpop.f32.mrf.mxu1 }
 0x225   : > { %v6147_v54 = vpop.f32.mrf.mxu0  ;;  %v4645_v3 = vadd.f32 %v6144_v37, %v4223_v40  ;;  %v4221_v15 = vadd.f32 %v4168_v6, %v3543_v18  ;;  %v4894_v24 = vadd.f32 %v4893_v32, %v4832_v50  ;;  %v4834_v17 = vmul.f32 %v4642_v53, %v4642_v53 }
 0x226   : > { %v4864_v56 = vadd.f32 %v4863_v61, %v4641_v20  ;;  %v6113_v46 = vpop.f32.mrf.mxu1  ;;  %v9523_v20 = vld [vmem:[#allocation41_spill] sm:$0xff]  ;;  %v4836_v37 = vmul.f32 %v4644_v47, %v4644_v47 }
 0x227   : > { %v4603_v21 = vpop.f32.mrf.mxu0  ;;  %v5663_v2 = vpack.c.bf16 %v4645_v3, %v4644_v47  ;;  %v4643_v45 = vadd.f32 %v4590_v43, %v4221_v15  ;;  %v4895_v62 = vadd.f32 %v4894_v24, %v4833_v58  ;;  %v4226_v59 = vadd.f32 %v6113_v46, %v9523_v20 }
 0x228   : > { %v4865_v22 = vadd.f32 %v4864_v56, %v4642_v53  ;;  %v4181_v23 = vpop.f32.mrf.mxu1  ;;  %v4837_v1 = vmul.f32 %v4645_v3, %v4645_v3 }
 0x229   : > { %5687 = vst [vmem:[%s8977_s23 + $0x68] sm:$0xff] %v5663_v2   ;;  %v5658_v4 = vpack.c.bf16 %v4643_v45, %v4642_v53  ;;  %v4835_v51 = vmul.f32 %v4643_v45, %v4643_v45  ;;  %v4224_v0 = vadd.f32 %v4181_v23, %v3546_v9  ;;  %v4896_v26 = vadd.f32 %v4895_v62, %v4834_v17  ;;  %v6148_v38 = vpop.f32.mrf.mxu0 }
 0x22a   : > { %v4866_v41 = vadd.f32 %v4865_v22, %v4643_v45  ;;  %v6114_v12 = vpop.f32.mrf.mxu1  ;;  %v4648_v33 = vadd.f32 %v6147_v54, %v4226_v59 }
 0x22b   : > { %5686 = vst [vmem:[%s8977_s23 + $0x60] sm:$0xff] %v5658_v4   ;;  %v4227_v25 = vadd.f32 %v6114_v12, %v3549_v36  ;;  %v4897_v29 = vadd.f32 %v4896_v26, %v4835_v51  ;;  %v4646_v39 = vadd.f32 %v4603_v21, %v4224_v0  ;;  %v4606_v30 = vpop.f32.mrf.mxu0 }
 0x22c   : > { %v4867_v11 = vadd.f32 %v4866_v41, %v4644_v47  ;;  %v4184_v42 = vpop.f32.mrf.mxu1  ;;  %v4840_v34 = vmul.f32 %v4648_v33, %v4648_v33 }
 0x22d   : > { %v4649_v14 = vadd.f32 %v6148_v38, %v4227_v25  ;;  %v4225_v44 = vadd.f32 %v4184_v42, %v3547_v57  ;;  %v4898_v19 = vadd.f32 %v4897_v29, %v4836_v37  ;;  %v4838_v28 = vmul.f32 %v4646_v39, %v4646_v39 }
 0x22e   : > { %v4868_v49 = vadd.f32 %v4867_v11, %v4645_v3 }
 0x22f   : > { %v5673_v43 = vpack.c.bf16 %v4649_v14, %v4648_v33  ;;  %v4647_v7 = vadd.f32 %v4606_v30, %v4225_v44  ;;  %v4899_v31 = vadd.f32 %v4898_v19, %v4837_v1  ;;  %v4841_v40 = vmul.f32 %v4649_v14, %v4649_v14 }
 0x230   : > { %v4869_v5 = vadd.f32 %v4868_v49, %v4646_v39 }
 0x231   : > { %5689 = vst [vmem:[%s8977_s23 + $0x78] sm:$0xff] %v5673_v43   ;;  %v5668_v18 = vpack.c.bf16 %v4647_v7, %v4646_v39  ;;  %v4839_v8 = vmul.f32 %v4647_v7, %v4647_v7  ;;  %v4900_v48 = vadd.f32 %v4899_v31, %v4838_v28 }
 0x232   : > { %v4870_v13 = vadd.f32 %v4869_v5, %v4647_v7 }
 0x233   : > { %5688 = vst [vmem:[%s8977_s23 + $0x70] sm:$0xff] %v5668_v18   ;;  %v4901_v55 = vadd.f32 %v4900_v48, %v4839_v8 }
 0x234   : > { %v4871_v60 = vadd.f32 %v4870_v13, %v4648_v33 }
 0x235   : > { %v4902_v50 = vadd.f32 %v4901_v55, %v4840_v34 }
 0x236   : > { %v4872_v54 = vadd.f32 %v4871_v60, %v4649_v14 }
 0x237   : > { %v4903_v61 = vadd.f32 %v4902_v50, %v4841_v40 }
 0x238   : > { %4904 = vst [vmem:[%s274_s27] sm:$0xff] %v4872_v54 }
 0x239   : > { %4905 = vst [vmem:[%s281_s30] sm:$0xff] %v4903_v61 }
 0x23a PF: > { %s15_s17 = sadd.s32 1, %s6256_s17   ;;  %s9525_s15 = smov %s6252_s16 }
 0x23b   : > { %p12_p6 = scmp.ge.s32.totalorder %s15_s17, 4   ;;  %s9526_s16 = smov %s9528_s18 }
 0x23d   :  { %14 = sbr.rel (!%p12_p6) target bundleno = 2 (0x2), region = 92 }

</bundles_post_ra>
